<compile_context>
chip_gen: v7x
topology: tpu7x:2x2x1
jax: 0.10.0
libtpu: 0.0.40
codegen_flags: <defaults>
</compile_context>

<pallas_src>
import jax
import jax.numpy as jnp
from jax.experimental import pallas as pl
from jax.experimental.pallas import tpu as pltpu

D_IN = 500
D_H = 1000
D_OUT = 2
BN_EPS = 1e-5

# Lane-padded sizes used inside the kernel (readout is NOT padded).
K_PAD = 512     # 500 -> 512 (contraction dim of layer1)
H_PAD = 1024    # 1000 -> 1024 (hidden features)


def _bn_relu_bf16(h, gamma, beta):
    """Training-mode BatchNorm1d + ReLU, folded into one f32 FMA, bf16 output.

    Stats and scale/shift stay in f32 (v5e has no bf16 VPU/EUP path anyway);
    only the post-ReLU activation is packed to bf16 for the next MXU matmul.
    Padded feature columns are all-zero with gamma=beta=0, so they stay 0.
    """
    mu = jnp.mean(h, axis=0, keepdims=True)
    d = h - mu
    var = jnp.mean(d * d, axis=0, keepdims=True)           # centered (two-pass) form
    scale = gamma * jax.lax.rsqrt(var + BN_EPS)             # EUP rsqrt
    shift = beta - scale * mu
    return jnp.maximum(h * scale + shift, 0.0).astype(jnp.bfloat16)


def linear5_kernel(
    x_ref,                      # (B, 500)  f32
    w1_ref, g1_ref, be1_ref,    # (512,1024) bf16, (1,1024) f32, (1,1024) f32
    w2_ref, g2_ref, be2_ref,    # (1024,1024) bf16, (1,1024) f32, (1,1024) f32
    w3_ref, b3_ref,             # (1024,2) bf16, (1,2) f32
    o_ref,                      # (B, 2)   f32
    xb_ref,                     # scratch: (B, 512) bf16
):
    # In-kernel cast + lane-pad of x: zeroed bf16 scratch, masked store of the
    # 500 real columns.  (Replaces the wrapper-side jnp.pad/astype.)
    xb_ref[...] = jnp.zeros_like(xb_ref)
    xb_ref[:, :D_IN] = x_ref[...].astype(jnp.bfloat16)

    # layer1 (+ BN1 + ReLU). b1 omitted: training-mode BN subtracts the batch mean.
    h1 = jnp.dot(xb_ref[...], w1_ref[...], preferred_element_type=jnp.float32)
    h1 = _bn_relu_bf16(h1, g1_ref[...], be1_ref[...])       # (B, 1024) bf16

    # layer2 (+ BN2 + ReLU). b2 omitted for the same reason.
    h2 = jnp.dot(h1, w2_ref[...], preferred_element_type=jnp.float32)
    h2 = _bn_relu_bf16(h2, g2_ref[...], be2_ref[...])       # (B, 1024) bf16

    # readout: unpadded (1024, 2) weight; (B, 2) masked lane store.
    o_ref[...] = (
        jnp.dot(h2, w3_ref[...], preferred_element_type=jnp.float32) + b3_ref[...]
    ).astype(o_ref.dtype)


def _pad2(a, rows, cols, dtype):
    a = a.astype(dtype)
    return jnp.pad(a, ((0, rows - a.shape[0]), (0, cols - a.shape[1])))


def prepare_params(params):
    """Cast weights to bf16 and zero-pad to lane multiples, once (readout unpadded)."""
    (w1, _b1, g1, be1, w2, _b2, g2, be2, w3, b3) = params
    w1p = _pad2(w1, K_PAD, H_PAD, jnp.bfloat16)             # (512, 1024)
    w2p = _pad2(w2, H_PAD, H_PAD, jnp.bfloat16)             # (1024, 1024)
    w3p = _pad2(w3, H_PAD, D_OUT, jnp.bfloat16)             # (1024, 2) -- no N padding
    # gamma/beta padded with ZEROS so padded features stay exactly 0 after BN.
    g1p = _pad2(g1, 1, H_PAD, jnp.float32)
    be1p = _pad2(be1, 1, H_PAD, jnp.float32)
    g2p = _pad2(g2, 1, H_PAD, jnp.float32)
    be2p = _pad2(be2, 1, H_PAD, jnp.float32)
    b3p = b3.astype(jnp.float32)                            # (1, 2)
    return (w1p, g1p, be1p, w2p, g2p, be2p, w3p, b3p)


def _vmem_limit_bytes(batch):
    """Footprint-derived VMEM request, clamped to the chip's actual capacity."""
    weights = 2 * (K_PAD * H_PAD + H_PAD * H_PAD + H_PAD * D_OUT)     # bf16
    vectors = 4 * (4 * H_PAD + D_OUT)                                 # f32 BN params + b3
    per_row = (4 * D_IN          # x f32 input block
               + 2 * K_PAD       # bf16 padded-x scratch
               + 2 * 4 * H_PAD   # h1/h2 f32 pre-activation temporaries
               + 2 * 2 * H_PAD   # h1/h2 bf16 activations
               + 4 * D_OUT)      # output block
    need = weights + vectors + batch * per_row
    try:
        capacity = pltpu.get_tpu_info().vmem_capacity_bytes
    except Exception:  # conservative fallback: v7x per-TensorCore VMEM
        capacity = 64 * 1024 * 1024
    # Gridless call (nothing pipelined): need + compiler slack, capped to capacity
    # minus headroom so the same code is safe on v5e/v6e (128 MiB) and v7x (64 MiB).
    return int(max(min(need + (16 << 20), capacity - (8 << 20)), 1 << 20))


@jax.jit
def linear5_forward(x, prepped_params):
    """x: (B, 500) float32 -> (B, 2) float32."""
    (w1, g1, be1, w2, g2, be2, w3, b3) = prepped_params
    B = x.shape[0]

    vmem = pl.BlockSpec(memory_space=pltpu.MemorySpace.VMEM)
    return pl.pallas_call(
        linear5_kernel,
        out_shape=jax.ShapeDtypeStruct((B, D_OUT), jnp.float32),
        in_specs=[vmem] * 9,
        out_specs=vmem,
        scratch_shapes=[pltpu.VMEM((B, K_PAD), jnp.bfloat16)],
        compiler_params=pltpu.CompilerParams(
            vmem_limit_bytes=_vmem_limit_bytes(B)),
    )(x, w1, g1, be1, w2, g2, be2, w3, b3)


def init_params(key):
    """Deterministic init mimicking nn.Linear defaults (U[-1/sqrt(fan_in), ..])."""
    ks = jax.random.split(key, 6)

    def linear_init(kw, kb, fan_in, fan_out):
        bound = 1.0 / (fan_in ** 0.5)
        # stored already transposed: (in, out)
        w = jax.random.uniform(kw, (fan_in, fan_out), jnp.float32, -bound, bound)
        b = jax.random.uniform(kb, (1, fan_out), jnp.float32, -bound, bound)
        return w, b

    w1, b1 = linear_init(ks[0], ks[1], D_IN, D_H)
    w2, b2 = linear_init(ks[2], ks[3], D_H, D_H)
    w3, b3 = linear_init(ks[4], ks[5], D_H, D_OUT)

    # BatchNorm1d affine defaults: gamma=1, beta=0
    g1 = jnp.ones((1, D_H), jnp.float32)
    be1 = jnp.zeros((1, D_H), jnp.float32)
    g2 = jnp.ones((1, D_H), jnp.float32)
    be2 = jnp.zeros((1, D_H), jnp.float32)

    return (w1, b1, g1, be1, w2, b2, g2, be2, w3, b3)


def reference_forward_f32(x, params):
    """Pure-JAX f32 reference with the exact PyTorch module semantics."""
    (w1, b1, g1, be1, w2, b2, g2, be2, w3, b3) = params

    def bn_relu(h, g, b):
        mu = jnp.mean(h, axis=0, keepdims=True)
        var = jnp.mean((h - mu) ** 2, axis=0, keepdims=True)
        return jnp.maximum(g * (h - mu) / jnp.sqrt(var + BN_EPS) + b, 0.0)

    h = bn_relu(x @ w1 + b1, g1, be1)
    h = bn_relu(h @ w2 + b2, g2, be2)
    return h @ w3 + b3


def reference_forward_bf16(x, params):
    """Pure-JAX reference at the kernel's precision (bf16 matmuls, f32 accum/BN)."""
    (w1, _b1, g1, be1, w2, _b2, g2, be2, w3, b3) = params
    bf = jnp.bfloat16

    def bn_relu(h, g, b):
        mu = jnp.mean(h, axis=0, keepdims=True)
        d = h - mu
        var = jnp.mean(d * d, axis=0, keepdims=True)
        scale = g * jax.lax.rsqrt(var + BN_EPS)
        shift = b - scale * mu
        return jnp.maximum(h * scale + shift, 0.0).astype(bf)

    h = jnp.dot(x.astype(bf), w1.astype(bf), preferred_element_type=jnp.float32)
    h = bn_relu(h, g1, be1)
    h = jnp.dot(h, w2.astype(bf), preferred_element_type=jnp.float32)
    h = bn_relu(h, g2, be2)
    return jnp.dot(h, w3.astype(bf), preferred_element_type=jnp.float32) + b3


if __name__ == "__main__":
    key = jax.random.PRNGKey(0)
    kx, kp = jax.random.split(key)

    B = 8  # small batch (BN training mode needs B >= 2)
    x = jax.random.normal(kx, (B, D_IN), jnp.float32)
    params = init_params(kp)
    prepped = prepare_params(params)

    out = linear5_forward(x, prepped)
    out = jax.block_until_ready(out)

    assert out.shape == (B, D_OUT), out.shape

    # Tight check against a pure-JAX reference at the same (bf16) precision.
    ref_bf16 = reference_forward_bf16(x, params)
    err_bf16 = float(jnp.max(jnp.abs(out - ref_bf16)))
    assert jnp.allclose(out, ref_bf16, atol=5e-3, rtol=5e-3), err_bf16

    # Loose check against the exact f32 module semantics (bf16 weight cast).
    ref_f32 = reference_forward_f32(x, params)
    err_f32 = float(jnp.max(jnp.abs(out - ref_f32)))
    assert jnp.allclose(out, ref_f32, atol=5e-2, rtol=5e-2), err_f32

    print("KERNEL_OK")
</pallas_src>

<mosaic_0001>
module attributes {stable_mosaic.version = 11 : i64} {
  func.func @linear5_kernel(%arg0: memref<8x500xf32, #tpu.memory_space<vmem>>, %arg1: memref<512x1024xbf16, #tpu.memory_space<vmem>>, %arg2: memref<1x1024xf32, #tpu.memory_space<vmem>>, %arg3: memref<1x1024xf32, #tpu.memory_space<vmem>>, %arg4: memref<1024x1024xbf16, #tpu.memory_space<vmem>>, %arg5: memref<1x1024xf32, #tpu.memory_space<vmem>>, %arg6: memref<1x1024xf32, #tpu.memory_space<vmem>>, %arg7: memref<1024x2xbf16, #tpu.memory_space<vmem>>, %arg8: memref<1x2xf32, #tpu.memory_space<vmem>>, %arg9: memref<8x2xf32, #tpu.memory_space<vmem>>, %arg10: memref<8x512xbf16, #tpu.memory_space<vmem>>) attributes {dimension_semantics = [], scalar_prefetch = 0 : i64, scratch_operands = 1 : i64, tpu.core_type = #tpu.core_type<tc>} {
    %cst = arith.constant 0.000000e+00 : bf16
    %0 = vector.broadcast %cst : bf16 to vector<8x512xbf16>
    %c0 = arith.constant 0 : index
    %c0_0 = arith.constant 0 : index
    %1 = vector.load %arg10[%c0, %c0_0] : memref<8x512xbf16, #tpu.memory_space<vmem>>, vector<8x512xbf16>
    tpu.vector_store %arg10[%c0, %c0_0], %0 {strides = array<i32>} : memref<8x512xbf16, #tpu.memory_space<vmem>>, vector<8x512xbf16>,
    %c0_1 = arith.constant 0 : index
    %c0_2 = arith.constant 0 : index
    %2 = vector.load %arg0[%c0_1, %c0_2] : memref<8x500xf32, #tpu.memory_space<vmem>>, vector<8x500xf32>
    %3 = arith.truncf %2 : vector<8x500xf32> to vector<8x500xbf16>
    %c0_3 = arith.constant 0 : index
    %c0_4 = arith.constant 0 : index
    %4 = vector.load %arg10[%c0_3, %c0_4] : memref<8x512xbf16, #tpu.memory_space<vmem>>, vector<8x500xbf16>
    tpu.vector_store %arg10[%c0_3, %c0_4], %3 {strides = array<i32>} : memref<8x512xbf16, #tpu.memory_space<vmem>>, vector<8x500xbf16>,
    %c0_5 = arith.constant 0 : index
    %c0_6 = arith.constant 0 : index
    %5 = vector.load %arg10[%c0_5, %c0_6] : memref<8x512xbf16, #tpu.memory_space<vmem>>, vector<8x512xbf16>
    %c0_7 = arith.constant 0 : index
    %c0_8 = arith.constant 0 : index
    %6 = vector.load %arg1[%c0_7, %c0_8] : memref<512x1024xbf16, #tpu.memory_space<vmem>>, vector<512x1024xbf16>
    %cst_9 = arith.constant dense<0.000000e+00> : vector<8x1024xf32>
    %7 = tpu.matmul %5, %6, %cst_9 {dimension_numbers = #tpu.dot_dimension_numbers<[1], [0], [0], [1], [0, 0, 1, 1], [], []>} : vector<8x512xbf16>, vector<512x1024xbf16>, vector<8x1024xf32> -> vector<8x1024xf32>
    %c0_10 = arith.constant 0 : index
    %c0_11 = arith.constant 0 : index
    %8 = vector.load %arg2[%c0_10, %c0_11] : memref<1x1024xf32, #tpu.memory_space<vmem>>, vector<1x1024xf32>
    %c0_12 = arith.constant 0 : index
    %c0_13 = arith.constant 0 : index
    %9 = vector.load %arg3[%c0_12, %c0_13] : memref<1x1024xf32, #tpu.memory_space<vmem>>, vector<1x1024xf32>
    %cst_14 = arith.constant dense<0.000000e+00> : vector<1024xf32>
    %10 = vector.multi_reduction <add>, %7, %cst_14 [0] : vector<8x1024xf32> to vector<1024xf32>
    %11 = vector.shape_cast %10 : vector<1024xf32> to vector<1x1024xf32>
    %cst_15 = arith.constant 8.000000e+00 : f32
    %12 = vector.broadcast %cst_15 : f32 to vector<1x1024xf32>
    %13 = arith.divf %11, %12 : vector<1x1024xf32>
    %14 = vector.broadcast %13 : vector<1x1024xf32> to vector<8x1024xf32>
    %15 = arith.subf %7, %14 : vector<8x1024xf32>
    %16 = arith.mulf %15, %15 : vector<8x1024xf32>
    %cst_16 = arith.constant dense<0.000000e+00> : vector<1024xf32>
    %17 = vector.multi_reduction <add>, %16, %cst_16 [0] : vector<8x1024xf32> to vector<1024xf32>
    %18 = vector.shape_cast %17 : vector<1024xf32> to vector<1x1024xf32>
    %cst_17 = arith.constant 8.000000e+00 : f32
    %19 = vector.broadcast %cst_17 : f32 to vector<1x1024xf32>
    %20 = arith.divf %18, %19 : vector<1x1024xf32>
    %cst_18 = arith.constant 9.99999974E-6 : f32
    %21 = vector.broadcast %cst_18 : f32 to vector<1x1024xf32>
    %22 = arith.addf %20, %21 : vector<1x1024xf32>
    %23 = math.rsqrt %22 : vector<1x1024xf32>
    %24 = arith.mulf %8, %23 : vector<1x1024xf32>
    %25 = arith.mulf %24, %13 : vector<1x1024xf32>
    %26 = arith.subf %9, %25 : vector<1x1024xf32>
    %27 = vector.broadcast %24 : vector<1x1024xf32> to vector<8x1024xf32>
    %28 = arith.mulf %7, %27 : vector<8x1024xf32>
    %29 = vector.broadcast %26 : vector<1x1024xf32> to vector<8x1024xf32>
    %30 = arith.addf %28, %29 : vector<8x1024xf32>
    %cst_19 = arith.constant 0.000000e+00 : f32
    %31 = vector.broadcast %cst_19 : f32 to vector<8x1024xf32>
    %32 = arith.maximumf %30, %31 : vector<8x1024xf32>
    %33 = arith.truncf %32 : vector<8x1024xf32> to vector<8x1024xbf16>
    %c0_20 = arith.constant 0 : index
    %c0_21 = arith.constant 0 : index
    %34 = vector.load %arg4[%c0_20, %c0_21] : memref<1024x1024xbf16, #tpu.memory_space<vmem>>, vector<1024x1024xbf16>
    %cst_22 = arith.constant dense<0.000000e+00> : vector<8x1024xf32>
    %35 = tpu.matmul %33, %34, %cst_22 {dimension_numbers = #tpu.dot_dimension_numbers<[1], [0], [0], [1], [0, 0, 1, 1], [], []>} : vector<8x1024xbf16>, vector<1024x1024xbf16>, vector<8x1024xf32> -> vector<8x1024xf32>
    %c0_23 = arith.constant 0 : index
    %c0_24 = arith.constant 0 : index
    %36 = vector.load %arg5[%c0_23, %c0_24] : memref<1x1024xf32, #tpu.memory_space<vmem>>, vector<1x1024xf32>
    %c0_25 = arith.constant 0 : index
    %c0_26 = arith.constant 0 : index
    %37 = vector.load %arg6[%c0_25, %c0_26] : memref<1x1024xf32, #tpu.memory_space<vmem>>, vector<1x1024xf32>
    %cst_27 = arith.constant dense<0.000000e+00> : vector<1024xf32>
    %38 = vector.multi_reduction <add>, %35, %cst_27 [0] : vector<8x1024xf32> to vector<1024xf32>
    %39 = vector.shape_cast %38 : vector<1024xf32> to vector<1x1024xf32>
    %cst_28 = arith.constant 8.000000e+00 : f32
    %40 = vector.broadcast %cst_28 : f32 to vector<1x1024xf32>
    %41 = arith.divf %39, %40 : vector<1x1024xf32>
    %42 = vector.broadcast %41 : vector<1x1024xf32> to vector<8x1024xf32>
    %43 = arith.subf %35, %42 : vector<8x1024xf32>
    %44 = arith.mulf %43, %43 : vector<8x1024xf32>
    %cst_29 = arith.constant dense<0.000000e+00> : vector<1024xf32>
    %45 = vector.multi_reduction <add>, %44, %cst_29 [0] : vector<8x1024xf32> to vector<1024xf32>
    %46 = vector.shape_cast %45 : vector<1024xf32> to vector<1x1024xf32>
    %cst_30 = arith.constant 8.000000e+00 : f32
    %47 = vector.broadcast %cst_30 : f32 to vector<1x1024xf32>
    %48 = arith.divf %46, %47 : vector<1x1024xf32>
    %cst_31 = arith.constant 9.99999974E-6 : f32
    %49 = vector.broadcast %cst_31 : f32 to vector<1x1024xf32>
    %50 = arith.addf %48, %49 : vector<1x1024xf32>
    %51 = math.rsqrt %50 : vector<1x1024xf32>
    %52 = arith.mulf %36, %51 : vector<1x1024xf32>
    %53 = arith.mulf %52, %41 : vector<1x1024xf32>
    %54 = arith.subf %37, %53 : vector<1x1024xf32>
    %55 = vector.broadcast %52 : vector<1x1024xf32> to vector<8x1024xf32>
    %56 = arith.mulf %35, %55 : vector<8x1024xf32>
    %57 = vector.broadcast %54 : vector<1x1024xf32> to vector<8x1024xf32>
    %58 = arith.addf %56, %57 : vector<8x1024xf32>
    %cst_32 = arith.constant 0.000000e+00 : f32
    %59 = vector.broadcast %cst_32 : f32 to vector<8x1024xf32>
    %60 = arith.maximumf %58, %59 : vector<8x1024xf32>
    %61 = arith.truncf %60 : vector<8x1024xf32> to vector<8x1024xbf16>
    %c0_33 = arith.constant 0 : index
    %c0_34 = arith.constant 0 : index
    %62 = vector.load %arg7[%c0_33, %c0_34] : memref<1024x2xbf16, #tpu.memory_space<vmem>>, vector<1024x2xbf16>
    %cst_35 = arith.constant dense<0.000000e+00> : vector<8x2xf32>
    %63 = tpu.matmul %61, %62, %cst_35 {dimension_numbers = #tpu.dot_dimension_numbers<[1], [0], [0], [1], [0, 0, 1, 1], [], []>} : vector<8x1024xbf16>, vector<1024x2xbf16>, vector<8x2xf32> -> vector<8x2xf32>
    %c0_36 = arith.constant 0 : index
    %c0_37 = arith.constant 0 : index
    %64 = vector.load %arg8[%c0_36, %c0_37] : memref<1x2xf32, #tpu.memory_space<vmem>>, vector<1x2xf32>
    %65 = vector.broadcast %64 : vector<1x2xf32> to vector<8x2xf32>
    %66 = arith.addf %63, %65 : vector<8x2xf32>
    %c0_38 = arith.constant 0 : index
    %c0_39 = arith.constant 0 : index
    %67 = vector.load %arg9[%c0_38, %c0_39] : memref<8x2xf32, #tpu.memory_space<vmem>>, vector<8x2xf32>
    tpu.vector_store %arg9[%c0_38, %c0_39], %66 {strides = array<i32>} : memref<8x2xf32, #tpu.memory_space<vmem>>, vector<8x2xf32>,
    return
  }
}

</mosaic_0001>

<bundles_post_ra>
// kernel: linear5_forward.1
= control target key start
LH: loop header
LB: loop body
LE: loop exit
PB: predicated region body
PF: predicated region fallthrough
CT: control target
= control target key end

     0   :  { %14 = vsyncpa [#allocation4], 0  ;;  %s9233_s0 = inlined_call_operand.hbm [shape: f32[8,500], index: 0, kind: input, shape index: {}]   ;;  %s9234_s1 = inlined_call_operand.hbm [shape: bf16[512,1024], index: 1, kind: input, shape index: {}]   ;;  %s9235_s2 = inlined_call_operand.hbm [shape: f32[1,1024], index: 2, kind: input, shape index: {}]   ;;  %s9236_s3 = inlined_call_operand.hbm [shape: f32[1,1024], index: 3, kind: input, shape index: {}]   ;;  %s9237_s4 = inlined_call_operand.hbm [shape: bf16[1024,1024], index: 4, kind: input, shape index: {}]   ;;  %s9238_s5 = inlined_call_operand.hbm [shape: f32[1,1024], index: 5, kind: input, shape index: {}]   ;;  %s9239_s6 = inlined_call_operand.hbm [shape: f32[1,1024], index: 6, kind: input, shape index: {}]   ;;  %s9240_s7 = inlined_call_operand.vmem [shape: bf16[1024,2], index: 7, kind: input, shape index: {}]   ;;  %s9241_s8 = inlined_call_operand.hbm [shape: f32[1,2], index: 8, kind: input, shape index: {}]   ;;  %s9242_s9 = inlined_call_operand.vmem [shape: f32[8,2], index: 9, kind: output, shape index: {}]  }
   0x1   :  { %15 = vsyncpa [#allocation6], 0 }
   0x2   :  { %16 = vsyncpa [#allocation9], 0 }
   0x3   :  { %17 = vsyncpa [#allocation12], 0 }
   0x4   :  { %18 = vsyncpa [#allocation15], 0  ;;  %s8505_s30 = smov [#allocation5]   ;;  %s8319_s13 = scalar_lea.hbm %s9234_s1, 32768 }
   0x5   :  { %s34_s10 = sshll.u32 %s8505_s30, 4  ;;  %p8320_p0 = scmp.ne.s32.totalorder %s9234_s1, %s8319_s13  ;;  %s35_s10 = int_to_ptr.vmem [resolvable:$true] %s34_s10 }
   0x6   :  { %p8323_p1 = scmp.lt.u32.totalorder %s8319_s13, %s9234_s1 }
   0x8   :  { %p8325_p2 = pnand %p8323_p1, %p8320_p0 }
   0xa   :  { %8328 = shalt.err (!%p8325_p2)
}
   0xb   :  { %s8329_s18 = scalar_lea.vmem %s35_s10, 32768  ;;  %p8334_p4 = scmp.lt.s32.totalorder %s35_s10, %s35_s10 }
   0xc   :  { %p8330_p3 = scmp.ne.s32.totalorder %s35_s10, %s8329_s18  ;;  %p8335_p5 = scmp.lt.s32.totalorder %s8329_s18, %s8329_s18 }
   0xe   :  { %p8336_p6 = por %p8335_p5, %p8334_p4 }
  0x10   :  { %p8337_p7 = pnand %p8336_p6, %p8330_p3 }
  0x12   :  { %8340 = shalt.err (!%p8337_p7)
}
  0x13   :  { %s8506_s19 = smov 512   ;;  %s8507_s20 = smov 32  }
  0x14   :  { %40 = dma.hbm_to_vmem [thread:$0]  %s9234_s1, 32768, %s35_s10, [#allocation6], %s8506_s19, %s8506_s19, %s8507_s20  }
  0x15   :  { %s8508_s23 = smov [#allocation8]   ;;  %s8509_s25 = smov [#allocation11]  }
  0x16   :  { %s57_s24 = sshll.u32 %s8508_s23, 4  ;;  %s79_s26 = sshll.u32 %s8509_s25, 4  ;;  %s58_s24 = int_to_ptr.vmem [resolvable:$true] %s57_s24  ;;  %s80_s26 = int_to_ptr.vmem [resolvable:$true] %s79_s26 }
  0x17   :  { %s8341_s29 = scalar_lea.hbm %s9236_s3, 128 }
  0x18   :  { %p8342_p8 = scmp.ne.s32.totalorder %s9236_s3, %s8341_s29  ;;  %p8345_p9 = scmp.lt.u32.totalorder %s8341_s29, %s9236_s3 }
  0x1a   :  { %p8347_p10 = pnand %p8345_p9, %p8342_p8 }
  0x1c   :  { %8350 = shalt.err (!%p8347_p10)
}
  0x1d   :  { %s8351_s1 = scalar_lea.vmem %s58_s24, 128  ;;  %p8356_p12 = scmp.lt.s32.totalorder %s58_s24, %s58_s24 }
  0x1e   :  { %p8352_p11 = scmp.ne.s32.totalorder %s58_s24, %s8351_s1  ;;  %p8357_p13 = scmp.lt.s32.totalorder %s8351_s1, %s8351_s1 }
  0x20   :  { %p8358_p0 = por %p8357_p13, %p8356_p12 }
  0x22   :  { %p8359_p1 = pnand %p8358_p0, %p8352_p11 }
  0x24   :  { %8362 = shalt.err (!%p8359_p1)
}
  0x25   :  { %60 = dma.hbm_to_vmem [thread:$0]  %s9236_s3, 128, %s58_s24, [#allocation9]  }
  0x26   :  { %s8363_s17 = scalar_lea.hbm %s9238_s5, 128 }
  0x27   :  { %p8364_p2 = scmp.ne.s32.totalorder %s9238_s5, %s8363_s17  ;;  %p8367_p3 = scmp.lt.u32.totalorder %s8363_s17, %s9238_s5 }
  0x29   :  { %p8369_p4 = pnand %p8367_p3, %p8364_p2 }
  0x2b   :  { %8372 = shalt.err (!%p8369_p4)
}
  0x2c   :  { %s8373_s25 = scalar_lea.vmem %s80_s26, 128  ;;  %p8378_p6 = scmp.lt.s32.totalorder %s80_s26, %s80_s26 }
  0x2d   :  { %p8374_p5 = scmp.ne.s32.totalorder %s80_s26, %s8373_s25  ;;  %p8379_p7 = scmp.lt.s32.totalorder %s8373_s25, %s8373_s25 }
  0x2f   :  { %p8380_p8 = por %p8379_p7, %p8378_p6 }
  0x31   :  { %p8381_p9 = pnand %p8380_p8, %p8374_p5 }
  0x33   :  { %8384 = shalt.err (!%p8381_p9)
}
  0x34   :  { %82 = dma.hbm_to_vmem [thread:$0]  %s9238_s5, 128, %s80_s26, [#allocation12]  }
  0x35   :  { %s8510_s27 = smov [#allocation3]   ;;  %s8511_s29 = smov [#allocation7]  }
  0x36   :  { %s25_s28 = sshll.u32 %s8510_s27, 4  ;;  %s47_s30 = sshll.u32 %s8511_s29, 4  ;;  %s26_s28 = int_to_ptr.vmem [resolvable:$true] %s25_s28  ;;  %s48_s30 = int_to_ptr.vmem [resolvable:$true] %s47_s30 }
  0x37   :  { %s8385_s13 = scalar_lea.hbm %s9233_s0, 512 }
  0x38   :  { %p8386_p10 = scmp.ne.s32.totalorder %s9233_s0, %s8385_s13  ;;  %p8389_p11 = scmp.lt.u32.totalorder %s8385_s13, %s9233_s0 }
  0x3a   :  { %p8391_p12 = pnand %p8389_p11, %p8386_p10 }
  0x3c   :  { %8394 = shalt.err (!%p8391_p12)
}
  0x3d   :  { %s8395_s5 = scalar_lea.vmem %s26_s28, 512  ;;  %p8400_p0 = scmp.lt.s32.totalorder %s26_s28, %s26_s28 }
  0x3e   :  { %p8396_p13 = scmp.ne.s32.totalorder %s26_s28, %s8395_s5  ;;  %p8401_p1 = scmp.lt.s32.totalorder %s8395_s5, %s8395_s5 }
  0x40   :  { %p8402_p2 = por %p8401_p1, %p8400_p0 }
  0x42   :  { %p8403_p3 = pnand %p8402_p2, %p8396_p13 }
  0x44   :  { %8406 = shalt.err (!%p8403_p3)
}
  0x45   :  { %28 = dma.hbm_to_vmem [thread:$0]  %s9233_s0, 512, %s26_s28, [#allocation4]  }
  0x46   :  { %s8407_s21 = scalar_lea.hbm %s9235_s2, 128 }
  0x47   :  { %p8408_p4 = scmp.ne.s32.totalorder %s9235_s2, %s8407_s21  ;;  %p8411_p5 = scmp.lt.u32.totalorder %s8407_s21, %s9235_s2 }
  0x49   :  { %p8413_p6 = pnand %p8411_p5, %p8408_p4 }
  0x4b   :  { %8416 = shalt.err (!%p8413_p6)
}
  0x4c   :  { %s8417_s24 = scalar_lea.vmem %s48_s30, 128  ;;  %p8422_p8 = scmp.lt.s32.totalorder %s48_s30, %s48_s30 }
  0x4d   :  { %p8418_p7 = scmp.ne.s32.totalorder %s48_s30, %s8417_s24  ;;  %p8423_p9 = scmp.lt.s32.totalorder %s8417_s24, %s8417_s24 }
  0x4f   :  { %p8424_p10 = por %p8423_p9, %p8422_p8 }
  0x51   :  { %p8425_p11 = pnand %p8424_p10, %p8418_p7 }
  0x53   :  { %8428 = shalt.err (!%p8425_p11)
}
  0x54   :  { %50 = dma.hbm_to_vmem [thread:$0]  %s9235_s2, 128, %s48_s30, [#allocation6]  }
  0x55   :  { %s8512_s28 = smov [#allocation10]   ;;  %s8513_s11 = smov [#allocation13]  }
  0x56   :  { %s66_s29 = sshll.u32 %s8512_s28, 4  ;;  %s89_s12 = sshll.u32 %s8513_s11, 4  ;;  %s67_s29 = int_to_ptr.vmem [resolvable:$true] %s66_s29  ;;  %s90_s12 = int_to_ptr.vmem [resolvable:$true] %s89_s12 }
  0x57   :  { %s8429_s10 = scalar_lea.hbm %s9237_s4, 65536 }
  0x58   :  { %p8430_p12 = scmp.ne.s32.totalorder %s9237_s4, %s8429_s10  ;;  %p8433_p13 = scmp.lt.u32.totalorder %s8429_s10, %s9237_s4 }
  0x5a   :  { %p8435_p0 = pnand %p8433_p13, %p8430_p12 }
  0x5c   :  { %8438 = shalt.err (!%p8435_p0)
}
  0x5d   :  { %s8439_s2 = scalar_lea.vmem %s67_s29, 65536  ;;  %p8444_p2 = scmp.lt.s32.totalorder %s67_s29, %s67_s29 }
  0x5e   :  { %p8440_p1 = scmp.ne.s32.totalorder %s67_s29, %s8439_s2  ;;  %p8445_p3 = scmp.lt.s32.totalorder %s8439_s2, %s8439_s2 }
  0x60   :  { %p8446_p4 = por %p8445_p3, %p8444_p2 }
  0x62   :  { %p8447_p5 = pnand %p8446_p4, %p8440_p1 }
  0x64   :  { %8450 = shalt.err (!%p8447_p5)
}
  0x65   :  { %72 = dma.hbm_to_vmem [thread:$0]  %s9237_s4, 65536, %s67_s29, [#allocation9], %s8506_s19, %s8506_s19, %s8507_s20  }
  0x66   :  { %s8451_s21 = scalar_lea.hbm %s9239_s6, 128 }
  0x67   :  { %p8452_p6 = scmp.ne.s32.totalorder %s9239_s6, %s8451_s21  ;;  %p8455_p7 = scmp.lt.u32.totalorder %s8451_s21, %s9239_s6 }
  0x69   :  { %p8457_p8 = pnand %p8455_p7, %p8452_p6 }
  0x6b   :  { %8460 = shalt.err (!%p8457_p8)
}
  0x6c   :  { %s8461_s24 = scalar_lea.vmem %s90_s12, 128  ;;  %p8466_p10 = scmp.lt.s32.totalorder %s90_s12, %s90_s12 }
  0x6d   :  { %p8462_p9 = scmp.ne.s32.totalorder %s90_s12, %s8461_s24  ;;  %p8467_p11 = scmp.lt.s32.totalorder %s8461_s24, %s8461_s24 }
  0x6f   :  { %p8468_p12 = por %p8467_p11, %p8466_p10 }
  0x71   :  { %p8469_p13 = pnand %p8468_p12, %p8462_p9 }
  0x73   :  { %8472 = shalt.err (!%p8469_p13)
}
  0x74   :  { %92 = dma.hbm_to_vmem [thread:$0]  %s9239_s6, 128, %s90_s12, [#allocation12]  }
  0x75   :  { %s8514_s20 = smov [#allocation14]   ;;  %s8473_s29 = scalar_lea.hbm %s9241_s8, 16 }
  0x76   :  { %s101_s0 = sshll.u32 %s8514_s20, 4  ;;  %p8474_p0 = scmp.ne.s32.totalorder %s9241_s8, %s8473_s29  ;;  %s102_s0 = int_to_ptr.vmem [resolvable:$true] %s101_s0 }
  0x77   :  { %p8477_p1 = scmp.lt.u32.totalorder %s8473_s29, %s9241_s8 }
  0x79   :  { %p8479_p2 = pnand %p8477_p1, %p8474_p0 }
  0x7b   :  { %8482 = shalt.err (!%p8479_p2)
}
  0x7c   :  { %s8483_s14 = scalar_lea.vmem %s102_s0, 16  ;;  %s8487_s6 = scalar_lea.vmem %s102_s0, 32 }
  0x7d   :  { %p8484_p3 = scmp.ne.s32.totalorder %s102_s0, %s8483_s14  ;;  %p8488_p4 = scmp.lt.s32.totalorder %s102_s0, %s102_s0 }
  0x7e   :  { %p8489_p5 = scmp.lt.s32.totalorder %s8487_s6, %s8483_s14 }
  0x80   :  { %p8490_p6 = por %p8489_p5, %p8488_p4 }
  0x82   :  { %p8491_p7 = pnand %p8490_p6, %p8484_p3 }
  0x84   :  { %8494 = shalt.err (!%p8491_p7)
}
  0x85   :  { %104 = dma.hbm_to_vmem [thread:$0]  %s9241_s8, 16, %s102_s0, [#allocation15]  }
  0x86   :  { %8495 = dma.done.wait [#allocation4], 512  }
  0x87   :  { %8496 = vsyncadd [#allocation4], 4294966784 }
  0x88   :  { %8497 = dma.done.wait [#allocation6], 32896  }
  0x89   :  { %8498 = vsyncadd [#allocation6], 4294934400 }
  0x8a   :  { %8499 = dma.done.wait [#allocation9], 65664  }
  0x8b   :  { %8500 = vsyncadd [#allocation9], 4294901632 }
  0x8c   :  { %8501 = dma.done.wait [#allocation12], 256  }
  0x8d   :  { %8502 = vsyncadd [#allocation12], 4294967040 }
  0x8e   :  { %8503 = dma.done.wait [#allocation15], 16  }
  0x8f   :  { %8504 = vsyncadd [#allocation15], 4294967280  ;;  %v8515_v0 = vmov 0   ;;  %v159_v1 = vld [vmem:[#allocation5] sm:$0xff]  ;;  %v160_v3 = vld [vmem:[#allocation5 + $0x8] sm:$0xff]  ;;  %vm153_vm0 = vcmask 1043456  }
  0x90   :  { %131 = vst [vmem:[#allocation2 + $0x8] sm:$0xff] %v8515_v0  ;;  %v163_v2 = vld [vmem:[#allocation5 + $0x20] sm:$0xff]  ;;  %v164_v5 = vld [vmem:[#allocation5 + $0x28] sm:$0xff]  ;;  %vm154_vm1 = vcmask 949252   ;;  %vm7203_vm3 = vcmask 15360  }
  0x91   :  { %v7221_v4 = vcombine.high %v159_v1, %v163_v2  ;;  %v7220_v6 = vcombine.low %v159_v1, %v163_v2  ;;  %v167_v7 = vld [vmem:[#allocation5 + $0x40] sm:$0xff]  ;;  %v7223_v9 = vcombine.high %v160_v3, %v164_v5  ;;  %v7222_v10 = vcombine.low %v160_v3, %v164_v5  ;;  %v168_v12 = vld [vmem:[#allocation5 + $0x48] sm:$0xff]  ;;  %vm8675_vm2 = vmor %vm154_vm1, %vm153_vm0 }
  0x92   :  { %v171_v8 = vld [vmem:[#allocation5 + $0x60] sm:$0xff]  ;;  %v172_v13 = vld [vmem:[#allocation5 + $0x68] sm:$0xff] }
  0x93   :  { %v7229_v11 = vcombine.high %v167_v7, %v171_v8  ;;  %v175_v14 = vld [vmem:[#allocation5 + $0x80] sm:$0xff]  ;;  %1709 = vmatprep.subr.bf16.mxu0 %v7221_v4  ;;  %v7231_v15 = vcombine.high %v168_v12, %v172_v13  ;;  %v176_v17 = vld [vmem:[#allocation5 + $0x88] sm:$0xff]  ;;  %1791 = vmatprep.subr.bf16.mxu1 %v7223_v9  ;;  %v7228_v19 = vcombine.low %v167_v7, %v171_v8 }
  0x94   :  { %v179_v16 = vld [vmem:[#allocation5 + $0xa0] sm:$0xff]  ;;  %v180_v18 = vld [vmem:[#allocation5 + $0xa8] sm:$0xff]  ;;  %1710 = vmatpush1.bf16.msra.mxu0 %v7220_v6  ;;  %1792 = vmatpush1.bf16.msra.mxu1 %v7222_v10  ;;  %v7230_v20 = vcombine.low %v168_v12, %v172_v13 }
  0x95   :  { %1711 = vmatprep.subr.bf16.mxu0 %v7229_v11  ;;  %v7237_v21 = vcombine.high %v175_v14, %v179_v16  ;;  %1793 = vmatprep.subr.bf16.mxu1 %v7231_v15  ;;  %v7239_v22 = vcombine.high %v176_v17, %v180_v18  ;;  %v183_v23 = vld [vmem:[#allocation5 + $0xc0] sm:$0xff]  ;;  %v184_v25 = vld [vmem:[#allocation5 + $0xc8] sm:$0xff]  ;;  %v7236_v27 = vcombine.low %v175_v14, %v179_v16 }
  0x96   :  { %v187_v24 = vld [vmem:[#allocation5 + $0xe0] sm:$0xff]  ;;  %v188_v26 = vld [vmem:[#allocation5 + $0xe8] sm:$0xff]  ;;  %v7238_v28 = vcombine.low %v176_v17, %v180_v18 }
  0x97   :  { %v7245_v29 = vcombine.high %v183_v23, %v187_v24  ;;  %v7247_v30 = vcombine.high %v184_v25, %v188_v26  ;;  %v191_v31 = vld [vmem:[#allocation5 + $0x100] sm:$0xff]  ;;  %v192_v33 = vld [vmem:[#allocation5 + $0x108] sm:$0xff]  ;;  %v7244_v35 = vcombine.low %v183_v23, %v187_v24  ;;  %v7246_v36 = vcombine.low %v184_v25, %v188_v26 }
  0x98   :  { %1712 = vmatpush1.bf16.msra.mxu0 %v7228_v19  ;;  %1794 = vmatpush1.bf16.msra.mxu1 %v7230_v20  ;;  %v195_v32 = vld [vmem:[#allocation5 + $0x120] sm:$0xff]  ;;  %v196_v34 = vld [vmem:[#allocation5 + $0x128] sm:$0xff] }
  0x99   :  { %1713 = vmatprep.subr.bf16.mxu0 %v7237_v21  ;;  %1795 = vmatprep.subr.bf16.mxu1 %v7239_v22  ;;  %v7253_v37 = vcombine.high %v191_v31, %v195_v32  ;;  %v7255_v38 = vcombine.high %v192_v33, %v196_v34  ;;  %v199_v39 = vld [vmem:[#allocation5 + $0x140] sm:$0xff]  ;;  %v200_v41 = vld [vmem:[#allocation5 + $0x148] sm:$0xff]  ;;  %v7252_v43 = vcombine.low %v191_v31, %v195_v32 }
  0x9a   :  { %v203_v40 = vld [vmem:[#allocation5 + $0x160] sm:$0xff]  ;;  %v204_v42 = vld [vmem:[#allocation5 + $0x168] sm:$0xff]  ;;  %v7254_v44 = vcombine.low %v192_v33, %v196_v34 }
  0x9b   :  { %v7261_v45 = vcombine.high %v199_v39, %v203_v40  ;;  %v7263_v46 = vcombine.high %v200_v41, %v204_v42  ;;  %v207_v47 = vld [vmem:[#allocation5 + $0x180] sm:$0xff]  ;;  %v208_v49 = vld [vmem:[#allocation5 + $0x188] sm:$0xff]  ;;  %v7260_v51 = vcombine.low %v199_v39, %v203_v40  ;;  %v7262_v52 = vcombine.low %v200_v41, %v204_v42  ;;  %v134_v39 = vld [vmem:[#allocation3 + $0x10] sm:$0xff] }
  0x9c   :  { %1714 = vmatpush1.bf16.msra.mxu0 %v7236_v27  ;;  %1796 = vmatpush1.bf16.msra.mxu1 %v7238_v28  ;;  %v211_v48 = vld [vmem:[#allocation5 + $0x1a0] sm:$0xff]  ;;  %v212_v50 = vld [vmem:[#allocation5 + $0x1a8] sm:$0xff]  ;;  %v135_v40 = vld [vmem:[#allocation3 + $0x18] sm:$0xff] }
  0x9d   :  { %1715 = vmatprep.subr.bf16.mxu0 %v7245_v29  ;;  %1797 = vmatprep.subr.bf16.mxu1 %v7247_v30  ;;  %v7269_v53 = vcombine.high %v207_v47, %v211_v48  ;;  %v8669_v54 = vld [vmem:[#allocation3] sm:$0xff]  ;;  %v133_v55 = vld [vmem:[#allocation3 + $0x8] sm:$0xff]  ;;  %v7271_v56 = vcombine.high %v208_v49, %v212_v50  ;;  %v7268_v61 = vcombine.low %v207_v47, %v211_v48 }
  0x9e   :  { %v215_v57 = vld [vmem:[#allocation5 + $0x1c0] sm:$0xff]  ;;  %v216_v59 = vld [vmem:[#allocation5 + $0x1c8] sm:$0xff]  ;;  %v8671_v62 = vpack.c.bf16 %v133_v55, %v133_v55  ;;  %v7270_v63 = vcombine.low %v208_v49, %v212_v50  ;;  %v8054_v42 = vpack.c.bf16 %v135_v40, %v134_v39 }
  0x9f   :  { %v219_v58 = vld [vmem:[#allocation5 + $0x1e0] sm:$0xff]  ;;  %v220_v60 = vld [vmem:[#allocation5 + $0x1e8] sm:$0xff] }
  0xa0   :  { %1716 = vmatpush1.bf16.msra.mxu0 %v7244_v35  ;;  %1798 = vmatpush1.bf16.msra.mxu1 %v7246_v36  ;;  %v7277_v0 = vcombine.high %v215_v57, %v219_v58  ;;  %v7279_v1 = vcombine.high %v216_v59, %v220_v60  ;;  %v223_v2 = vld [vmem:[#allocation5 + $0x200] sm:$0xff]  ;;  %v224_v4 = vld [vmem:[#allocation5 + $0x208] sm:$0xff]  ;;  %v7276_v6 = vcombine.low %v215_v57, %v219_v58 }
  0xa1   :  { %1717 = vmatprep.subr.bf16.mxu0 %v7253_v37  ;;  %1799 = vmatprep.subr.bf16.mxu1 %v7255_v38  ;;  %v227_v3 = vld [vmem:[#allocation5 + $0x220] sm:$0xff]  ;;  %v228_v5 = vld [vmem:[#allocation5 + $0x228] sm:$0xff]  ;;  %v7278_v7 = vcombine.low %v216_v59, %v220_v60  ;;  %156 = vst.msk [vmem:[#allocation2 + $0x8] sm:$0xff] %vm8675_vm2, %v8054_v42 }
  0xa2   :  { %1741 = vmatprep.mubr.bf16.mxu0 %v8671_v62  ;;  %1823 = vmatprep.mubr.bf16.mxu1 %v8671_v62  ;;  %v7285_v8 = vcombine.high %v223_v2, %v227_v3  ;;  %v7287_v9 = vcombine.high %v224_v4, %v228_v5  ;;  %v231_v10 = vld [vmem:[#allocation5 + $0x240] sm:$0xff]  ;;  %v232_v12 = vld [vmem:[#allocation5 + $0x248] sm:$0xff]  ;;  %v7284_v14 = vcombine.low %v223_v2, %v227_v3 }
  0xa3   :  { %v235_v11 = vld [vmem:[#allocation5 + $0x260] sm:$0xff]  ;;  %v236_v13 = vld [vmem:[#allocation5 + $0x268] sm:$0xff]  ;;  %v7286_v15 = vcombine.low %v224_v4, %v228_v5 }
  0xa4   :  { %1718 = vmatpush1.bf16.msra.mxu0 %v7252_v43  ;;  %1800 = vmatpush1.bf16.msra.mxu1 %v7254_v44  ;;  %v7293_v16 = vcombine.high %v231_v10, %v235_v11  ;;  %v7295_v17 = vcombine.high %v232_v12, %v236_v13  ;;  %v239_v18 = vld [vmem:[#allocation5 + $0x280] sm:$0xff]  ;;  %v240_v20 = vld [vmem:[#allocation5 + $0x288] sm:$0xff]  ;;  %v7292_v22 = vcombine.low %v231_v10, %v235_v11 }
  0xa5   :  { %1719 = vmatprep.subr.bf16.mxu0 %v7261_v45  ;;  %1801 = vmatprep.subr.bf16.mxu1 %v7263_v46  ;;  %v243_v19 = vld [vmem:[#allocation5 + $0x2a0] sm:$0xff]  ;;  %v244_v21 = vld [vmem:[#allocation5 + $0x2a8] sm:$0xff]  ;;  %v7294_v23 = vcombine.low %v232_v12, %v236_v13 }
  0xa6   :  { %v7301_v24 = vcombine.high %v239_v18, %v243_v19  ;;  %v7303_v25 = vcombine.high %v240_v20, %v244_v21  ;;  %v247_v26 = vld [vmem:[#allocation5 + $0x2c0] sm:$0xff]  ;;  %v248_v28 = vld [vmem:[#allocation5 + $0x2c8] sm:$0xff]  ;;  %v7300_v30 = vcombine.low %v239_v18, %v243_v19  ;;  %v7302_v31 = vcombine.low %v240_v20, %v244_v21 }
  0xa7   :  { %v251_v27 = vld [vmem:[#allocation5 + $0x2e0] sm:$0xff]  ;;  %v252_v29 = vld [vmem:[#allocation5 + $0x2e8] sm:$0xff]  ;;  %v8683_v18 = vpack.c.bf16 %v8669_v54, %v8669_v54 }
  0xa8   :  { %1720 = vmatpush1.bf16.msra.mxu0 %v7260_v51  ;;  %1802 = vmatpush1.bf16.msra.mxu1 %v7262_v52  ;;  %v7309_v32 = vcombine.high %v247_v26, %v251_v27  ;;  %v7311_v34 = vcombine.high %v248_v28, %v252_v29  ;;  %v255_v35 = vld [vmem:[#allocation5 + $0x300] sm:$0xff]  ;;  %v256_v37 = vld [vmem:[#allocation5 + $0x308] sm:$0xff]  ;;  %v7308_v41 = vcombine.low %v247_v26, %v251_v27  ;;  %v8685_v21 = vld [vmem:[#allocation2 + $0x8] sm:$0xff] }
  0xa9   :  { %1721 = vmatprep.subr.bf16.mxu0 %v7269_v53  ;;  %1803 = vmatprep.subr.bf16.mxu1 %v7271_v56  ;;  %v259_v36 = vld [vmem:[#allocation5 + $0x320] sm:$0xff]  ;;  %v260_v38 = vld [vmem:[#allocation5 + $0x328] sm:$0xff]  ;;  %v7310_v43 = vcombine.low %v248_v28, %v252_v29  ;;  %v8689_v54 = vcombine.high %v8685_v21, %v8685_v21 }
  0xaa   :  { %v7317_v44 = vcombine.high %v255_v35, %v259_v36  ;;  %v7319_v45 = vcombine.high %v256_v37, %v260_v38  ;;  %v263_v46 = vld [vmem:[#allocation5 + $0x340] sm:$0xff]  ;;  %v264_v48 = vld [vmem:[#allocation5 + $0x348] sm:$0xff]  ;;  %v7316_v50 = vcombine.low %v255_v35, %v259_v36  ;;  %v7318_v51 = vcombine.low %v256_v37, %v260_v38 }
  0xab   :  { %v267_v47 = vld [vmem:[#allocation5 + $0x360] sm:$0xff]  ;;  %v268_v49 = vld [vmem:[#allocation5 + $0x368] sm:$0xff] }
  0xac   :  { %1722 = vmatpush1.bf16.msra.mxu0 %v7268_v61  ;;  %1804 = vmatpush1.bf16.msra.mxu1 %v7270_v63  ;;  %v7325_v52 = vcombine.high %v263_v46, %v267_v47  ;;  %v7327_v53 = vcombine.high %v264_v48, %v268_v49  ;;  %v271_v55 = vld [vmem:[#allocation5 + $0x380] sm:$0xff]  ;;  %v272_v57 = vld [vmem:[#allocation5 + $0x388] sm:$0xff]  ;;  %v7324_v59 = vcombine.low %v263_v46, %v267_v47 }
  0xad   :  { %1723 = vmatprep.subr.bf16.mxu0 %v7277_v0  ;;  %1805 = vmatprep.subr.bf16.mxu1 %v7279_v1  ;;  %v275_v56 = vld [vmem:[#allocation5 + $0x3a0] sm:$0xff]  ;;  %v276_v58 = vld [vmem:[#allocation5 + $0x3a8] sm:$0xff]  ;;  %v7326_v60 = vcombine.low %v264_v48, %v268_v49 }
  0xae   :  { %v7333_v61 = vcombine.high %v271_v55, %v275_v56  ;;  %v7335_v63 = vcombine.high %v272_v57, %v276_v58  ;;  %v279_v0 = vld [vmem:[#allocation5 + $0x3c0] sm:$0xff]  ;;  %v280_v2 = vld [vmem:[#allocation5 + $0x3c8] sm:$0xff]  ;;  %v7332_v4 = vcombine.low %v271_v55, %v275_v56  ;;  %v7334_v5 = vcombine.low %v272_v57, %v276_v58 }
  0xaf   :  { %v283_v1 = vld [vmem:[#allocation5 + $0x3e0] sm:$0xff]  ;;  %v284_v3 = vld [vmem:[#allocation5 + $0x3e8] sm:$0xff] }
  0xb0   :  { %1724 = vmatpush1.bf16.msra.mxu0 %v7276_v6  ;;  %1806 = vmatpush1.bf16.msra.mxu1 %v7278_v7  ;;  %v7341_v6 = vcombine.high %v279_v0, %v283_v1  ;;  %v7343_v7 = vcombine.high %v280_v2, %v284_v3  ;;  %v288_v10 = vld [vmem:[#allocation5 + $0x408] sm:$0xff]  ;;  %v7340_v12 = vcombine.low %v279_v0, %v283_v1  ;;  %v307_v27 = vld [vmem:[#allocation5 + $0x4a0] sm:$0xff] }
  0xb1   :  { %1725 = vmatprep.subr.bf16.mxu0 %v7285_v8  ;;  %1807 = vmatprep.subr.bf16.mxu1 %v7287_v9  ;;  %v287_v8 = vld [vmem:[#allocation5 + $0x400] sm:$0xff]  ;;  %v292_v11 = vld [vmem:[#allocation5 + $0x428] sm:$0xff]  ;;  %v7342_v13 = vcombine.low %v280_v2, %v284_v3 }
  0xb2   :  { %v291_v9 = vld [vmem:[#allocation5 + $0x420] sm:$0xff]  ;;  %v296_v19 = vld [vmem:[#allocation5 + $0x448] sm:$0xff] }
  0xb3   :  { %v300_v20 = vld [vmem:[#allocation5 + $0x468] sm:$0xff]  ;;  %v311_v33 = vld [vmem:[#allocation5 + $0x4c0] sm:$0xff] }
  0xb4   :  { %1726 = vmatpush1.bf16.msra.mxu0 %v7284_v14  ;;  %1808 = vmatpush1.bf16.msra.mxu1 %v7286_v15  ;;  %v7349_v14 = vcombine.high %v287_v8, %v291_v9  ;;  %v7351_v15 = vcombine.high %v288_v10, %v292_v11  ;;  %v7359_v26 = vcombine.high %v296_v19, %v300_v20  ;;  %v304_v28 = vld [vmem:[#allocation5 + $0x488] sm:$0xff]  ;;  %v323_v42 = vld [vmem:[#allocation5 + $0x520] sm:$0xff] }
  0xb5   :  { %1727 = vmatprep.subr.bf16.mxu0 %v7293_v16  ;;  %1809 = vmatprep.subr.bf16.mxu1 %v7295_v17  ;;  %v295_v16 = vld [vmem:[#allocation5 + $0x440] sm:$0xff]  ;;  %v308_v29 = vld [vmem:[#allocation5 + $0x4a8] sm:$0xff] }
  0xb6   :  { %v299_v17 = vld [vmem:[#allocation5 + $0x460] sm:$0xff]  ;;  %v312_v35 = vld [vmem:[#allocation5 + $0x4c8] sm:$0xff]  ;;  %v7367_v36 = vcombine.high %v304_v28, %v308_v29  ;;  %v7366_v39 = vcombine.low %v304_v28, %v308_v29 }
  0xb7   :  { %v316_v37 = vld [vmem:[#allocation5 + $0x4e8] sm:$0xff]  ;;  %v327_v49 = vld [vmem:[#allocation5 + $0x540] sm:$0xff] }
  0xb8   :  { %1728 = vmatpush1.bf16.msra.mxu0 %v7292_v22  ;;  %1810 = vmatpush1.bf16.msra.mxu1 %v7294_v23  ;;  %v7348_v22 = vcombine.low %v287_v8, %v291_v9  ;;  %v7350_v23 = vcombine.low %v288_v10, %v292_v11  ;;  %v7374_v47 = vcombine.low %v312_v35, %v316_v37  ;;  %v335_v58 = vld [vmem:[#allocation5 + $0x580] sm:$0xff] }
  0xb9   :  { %1729 = vmatprep.subr.bf16.mxu0 %v7301_v24  ;;  %1811 = vmatprep.subr.bf16.mxu1 %v7303_v25  ;;  %v7357_v24 = vcombine.high %v295_v16, %v299_v17  ;;  %v303_v25 = vld [vmem:[#allocation5 + $0x480] sm:$0xff] }
  0xba   :  { %v7364_v38 = vcombine.low %v303_v25, %v307_v27  ;;  %v343_v3 = vld [vmem:[#allocation5 + $0x5c0] sm:$0xff] }
  0xbb   :  { %v351_v11 = vld [vmem:[#allocation5 + $0x600] sm:$0xff] }
  0xbc   :  { %1730 = vmatpush1.bf16.msra.mxu0 %v7300_v30  ;;  %1812 = vmatpush1.bf16.msra.mxu1 %v7302_v31  ;;  %v7356_v30 = vcombine.low %v295_v16, %v299_v17  ;;  %v7358_v31 = vcombine.low %v296_v19, %v300_v20  ;;  %v359_v20 = vld [vmem:[#allocation5 + $0x640] sm:$0xff] }
  0xbd   :  { %1731 = vmatprep.subr.bf16.mxu0 %v7309_v32  ;;  %1813 = vmatprep.subr.bf16.mxu1 %v7311_v34  ;;  %v7365_v32 = vcombine.high %v303_v25, %v307_v27  ;;  %v315_v34 = vld [vmem:[#allocation5 + $0x4e0] sm:$0xff]  ;;  %v364_v25 = vld [vmem:[#allocation5 + $0x668] sm:$0xff] }
  0xbe   :  { %v7373_v40 = vcombine.high %v311_v33, %v315_v34  ;;  %v7372_v46 = vcombine.low %v311_v33, %v315_v34  ;;  %v367_v29 = vld [vmem:[#allocation5 + $0x680] sm:$0xff]  ;;  %v372_v33 = vld [vmem:[#allocation5 + $0x6a8] sm:$0xff] }
  0xc0   :  { %1732 = vmatpush1.bf16.msra.mxu0 %v7308_v41  ;;  %1814 = vmatpush1.bf16.msra.mxu1 %v7310_v43  ;;  %v319_v41 = vld [vmem:[#allocation5 + $0x500] sm:$0xff]  ;;  %v320_v43 = vld [vmem:[#allocation5 + $0x508] sm:$0xff] }
  0xc1   :  { %1733 = vmatprep.subr.bf16.mxu0 %v7317_v44  ;;  %1815 = vmatprep.subr.bf16.mxu1 %v7319_v45  ;;  %v7375_v44 = vcombine.high %v312_v35, %v316_v37  ;;  %v324_v45 = vld [vmem:[#allocation5 + $0x528] sm:$0xff]  ;;  %v7381_v48 = vcombine.high %v319_v41, %v323_v42  ;;  %v7380_v55 = vcombine.low %v319_v41, %v323_v42  ;;  %v375_v37 = vld [vmem:[#allocation5 + $0x6c0] sm:$0xff] }
  0xc2   :  { %v7382_v56 = vcombine.low %v320_v43, %v324_v45  ;;  %v380_v41 = vld [vmem:[#allocation5 + $0x6e8] sm:$0xff] }
  0xc4   :  { %1734 = vmatpush1.bf16.msra.mxu0 %v7316_v50  ;;  %1816 = vmatpush1.bf16.msra.mxu1 %v7318_v51  ;;  %v331_v50 = vld [vmem:[#allocation5 + $0x560] sm:$0xff]  ;;  %v328_v51 = vld [vmem:[#allocation5 + $0x548] sm:$0xff] }
  0xc5   :  { %1735 = vmatprep.subr.bf16.mxu0 %v7325_v52  ;;  %1817 = vmatprep.subr.bf16.mxu1 %v7327_v53  ;;  %v7383_v52 = vcombine.high %v320_v43, %v324_v45  ;;  %v332_v53 = vld [vmem:[#allocation5 + $0x568] sm:$0xff]  ;;  %v7389_v57 = vcombine.high %v327_v49, %v331_v50  ;;  %v7388_v0 = vcombine.low %v327_v49, %v331_v50  ;;  %v383_v45 = vld [vmem:[#allocation5 + $0x700] sm:$0xff] }
  0xc6   :  { %v7390_v1 = vcombine.low %v328_v51, %v332_v53  ;;  %v388_v49 = vld [vmem:[#allocation5 + $0x728] sm:$0xff] }
  0xc8   :  { %1736 = vmatpush1.bf16.msra.mxu0 %v7324_v59  ;;  %1818 = vmatpush1.bf16.msra.mxu1 %v7326_v60  ;;  %v339_v59 = vld [vmem:[#allocation5 + $0x5a0] sm:$0xff]  ;;  %v336_v60 = vld [vmem:[#allocation5 + $0x588] sm:$0xff] }
  0xc9   :  { %1737 = vmatprep.subr.bf16.mxu0 %v7333_v61  ;;  %1819 = vmatprep.subr.bf16.mxu1 %v7335_v63  ;;  %v7391_v61 = vcombine.high %v328_v51, %v332_v53  ;;  %v340_v63 = vld [vmem:[#allocation5 + $0x5a8] sm:$0xff]  ;;  %v7397_v2 = vcombine.high %v335_v58, %v339_v59  ;;  %v7396_v8 = vcombine.low %v335_v58, %v339_v59  ;;  %v391_v53 = vld [vmem:[#allocation5 + $0x740] sm:$0xff] }
  0xca   :  { %v7398_v9 = vcombine.low %v336_v60, %v340_v63  ;;  %v396_v58 = vld [vmem:[#allocation5 + $0x768] sm:$0xff] }
  0xcc   :  { %1738 = vmatpush1.bf16.msra.mxu0 %v7332_v4  ;;  %1820 = vmatpush1.bf16.msra.mxu1 %v7334_v5  ;;  %v347_v4 = vld [vmem:[#allocation5 + $0x5e0] sm:$0xff]  ;;  %v344_v5 = vld [vmem:[#allocation5 + $0x5c8] sm:$0xff] }
  0xcd   :  { %1739 = vmatprep.subr.bf16.mxu0 %v7341_v6  ;;  %1821 = vmatprep.subr.bf16.mxu1 %v7343_v7  ;;  %v7399_v6 = vcombine.high %v336_v60, %v340_v63  ;;  %v348_v7 = vld [vmem:[#allocation5 + $0x5e8] sm:$0xff]  ;;  %v7405_v10 = vcombine.high %v343_v3, %v347_v4  ;;  %v7404_v16 = vcombine.low %v343_v3, %v347_v4  ;;  %v399_v63 = vld [vmem:[#allocation5 + $0x780] sm:$0xff] }
  0xce   :  { %v7406_v17 = vcombine.low %v344_v5, %v348_v7  ;;  %v404_v3 = vld [vmem:[#allocation5 + $0x7a8] sm:$0xff] }
  0xd0   :  { %1740 = vmatpush1.bf16.msra.mxu0 %v7340_v12  ;;  %1822 = vmatpush1.bf16.msra.mxu1 %v7342_v13  ;;  %v355_v12 = vld [vmem:[#allocation5 + $0x620] sm:$0xff]  ;;  %v352_v13 = vld [vmem:[#allocation5 + $0x608] sm:$0xff] }
  0xd1   :  { %1750 = vmatprep.subr.bf16.mxu0 %v7349_v14  ;;  %1832 = vmatprep.subr.bf16.mxu1 %v7351_v15  ;;  %v7407_v14 = vcombine.high %v344_v5, %v348_v7  ;;  %v356_v15 = vld [vmem:[#allocation5 + $0x628] sm:$0xff]  ;;  %v7413_v19 = vcombine.high %v351_v11, %v355_v12  ;;  %v407_v7 = vld [vmem:[#allocation5 + $0x7c0] sm:$0xff] }
  0xd2   :  { %v7414_v27 = vcombine.low %v352_v13, %v356_v15 }
  0xd3   :  { %1742 = vmatmul.mubr.bf16.vlgmr.msra.gmra.mrb[0].mxu0 %v8683_v18  ;;  %1824 = vmatmul.mubr.bf16.vlgmr.msra.gmra.mrb[0].mxu1 %v8683_v18 }
  0xd4   :  { %1751 = vmatpush1.bf16.msra.mxu0 %v7348_v22  ;;  %1833 = vmatpush1.bf16.msra.mxu1 %v7350_v23  ;;  %v363_v22 = vld [vmem:[#allocation5 + $0x660] sm:$0xff]  ;;  %v360_v23 = vld [vmem:[#allocation5 + $0x648] sm:$0xff] }
  0xd5   :  { %1752 = vmatprep.subr.bf16.mxu0 %v7357_v24  ;;  %1834 = vmatprep.subr.bf16.mxu1 %v7359_v26  ;;  %v7415_v24 = vcombine.high %v352_v13, %v356_v15  ;;  %v7412_v26 = vcombine.low %v351_v11, %v355_v12  ;;  %v7421_v28 = vcombine.high %v359_v20, %v363_v22  ;;  %v412_v11 = vld [vmem:[#allocation5 + $0x7e8] sm:$0xff]  ;;  %v161_v15 = vld [vmem:[#allocation5 + $0x10] sm:$0xff] }
  0xd6   :  { %1782 = vmatprep.mubr.bf16.mxu0 %v8689_v54  ;;  %1864 = vmatprep.mubr.bf16.mxu1 %v8689_v54  ;;  %v7420_v34 = vcombine.low %v359_v20, %v363_v22  ;;  %v7422_v35 = vcombine.low %v360_v23, %v364_v25  ;;  %v166_v20 = vld [vmem:[#allocation5 + $0x38] sm:$0xff] }
  0xd8   :  { %1753 = vmatpush1.bf16.msra.mxu0 %v7356_v30  ;;  %1835 = vmatpush1.bf16.msra.mxu1 %v7358_v31  ;;  %v371_v30 = vld [vmem:[#allocation5 + $0x6a0] sm:$0xff]  ;;  %v368_v31 = vld [vmem:[#allocation5 + $0x688] sm:$0xff] }
  0xd9   :  { %1754 = vmatprep.subr.bf16.mxu0 %v7365_v32  ;;  %1836 = vmatprep.subr.bf16.mxu1 %v7367_v36  ;;  %v7423_v32 = vcombine.high %v360_v23, %v364_v25  ;;  %v7429_v36 = vcombine.high %v367_v29, %v371_v30  ;;  %v7428_v42 = vcombine.low %v367_v29, %v371_v30  ;;  %v169_v25 = vld [vmem:[#allocation5 + $0x50] sm:$0xff]  ;;  %v174_v29 = vld [vmem:[#allocation5 + $0x78] sm:$0xff] }
  0xda   :  { %v7430_v43 = vcombine.low %v368_v31, %v372_v33  ;;  %v8697_v30 = vcombine.low %v8685_v21, %v8685_v21 }
  0xdc   :  { %1755 = vmatpush1.bf16.msra.mxu0 %v7364_v38  ;;  %1837 = vmatpush1.bf16.msra.mxu1 %v7366_v39  ;;  %v379_v38 = vld [vmem:[#allocation5 + $0x6e0] sm:$0xff]  ;;  %v376_v39 = vld [vmem:[#allocation5 + $0x6c8] sm:$0xff] }
  0xdd   :  { %1756 = vmatprep.subr.bf16.mxu0 %v7373_v40  ;;  %1838 = vmatprep.subr.bf16.mxu1 %v7375_v44  ;;  %v7431_v40 = vcombine.high %v368_v31, %v372_v33  ;;  %v7437_v44 = vcombine.high %v375_v37, %v379_v38  ;;  %v7436_v50 = vcombine.low %v375_v37, %v379_v38  ;;  %v178_v37 = vld [vmem:[#allocation5 + $0x98] sm:$0xff] }
  0xde   :  { %v7438_v51 = vcombine.low %v376_v39, %v380_v41  ;;  %v182_v38 = vld [vmem:[#allocation5 + $0xb8] sm:$0xff] }
  0xe0   :  { %1757 = vmatpush1.bf16.msra.mxu0 %v7372_v46  ;;  %1839 = vmatpush1.bf16.msra.mxu1 %v7374_v47  ;;  %v387_v46 = vld [vmem:[#allocation5 + $0x720] sm:$0xff]  ;;  %v384_v47 = vld [vmem:[#allocation5 + $0x708] sm:$0xff] }
  0xe1   :  { %1758 = vmatprep.subr.bf16.mxu0 %v7381_v48  ;;  %1840 = vmatprep.subr.bf16.mxu1 %v7383_v52  ;;  %v7439_v48 = vcombine.high %v376_v39, %v380_v41  ;;  %v7445_v52 = vcombine.high %v383_v45, %v387_v46  ;;  %v7444_v59 = vcombine.low %v383_v45, %v387_v46  ;;  %v190_v45 = vld [vmem:[#allocation5 + $0xf8] sm:$0xff] }
  0xe2   :  { %v7446_v60 = vcombine.low %v384_v47, %v388_v49  ;;  %v7243_v41 = vcombine.high %v178_v37, %v182_v38 }
  0xe4   :  { %1759 = vmatpush1.bf16.msra.mxu0 %v7380_v55  ;;  %1841 = vmatpush1.bf16.msra.mxu1 %v7382_v56  ;;  %v395_v55 = vld [vmem:[#allocation5 + $0x760] sm:$0xff]  ;;  %v392_v56 = vld [vmem:[#allocation5 + $0x748] sm:$0xff] }
  0xe5   :  { %1760 = vmatprep.subr.bf16.mxu0 %v7389_v57  ;;  %1842 = vmatprep.subr.bf16.mxu1 %v7391_v61  ;;  %v7447_v57 = vcombine.high %v384_v47, %v388_v49  ;;  %v7453_v61 = vcombine.high %v391_v53, %v395_v55  ;;  %v7452_v4 = vcombine.low %v391_v53, %v395_v55  ;;  %v198_v53 = vld [vmem:[#allocation5 + $0x138] sm:$0xff] }
  0xe6   :  { %v7454_v5 = vcombine.low %v392_v56, %v396_v58  ;;  %v7242_v47 = vcombine.low %v178_v37, %v182_v38  ;;  %v241_v38 = vld [vmem:[#allocation5 + $0x290] sm:$0xff] }
  0xe8   :  { %1761 = vmatpush1.bf16.msra.mxu0 %v7388_v0  ;;  %1843 = vmatpush1.bf16.msra.mxu1 %v7390_v1  ;;  %v403_v0 = vld [vmem:[#allocation5 + $0x7a0] sm:$0xff]  ;;  %v400_v1 = vld [vmem:[#allocation5 + $0x788] sm:$0xff] }
  0xe9   :  { %1762 = vmatprep.subr.bf16.mxu0 %v7397_v2  ;;  %1844 = vmatprep.subr.bf16.mxu1 %v7399_v6  ;;  %v7455_v2 = vcombine.high %v392_v56, %v396_v58  ;;  %v7461_v6 = vcombine.high %v399_v63, %v403_v0  ;;  %v7460_v12 = vcombine.low %v399_v63, %v403_v0  ;;  %v201_v58 = vld [vmem:[#allocation5 + $0x150] sm:$0xff] }
  0xea   :  { %v7462_v13 = vcombine.low %v400_v1, %v404_v3 }
  0xec   :  { %1763 = vmatpush1.bf16.msra.mxu0 %v7396_v8  ;;  %1845 = vmatpush1.bf16.msra.mxu1 %v7398_v9  ;;  %v411_v8 = vld [vmem:[#allocation5 + $0x7e0] sm:$0xff]  ;;  %v408_v9 = vld [vmem:[#allocation5 + $0x7c8] sm:$0xff] }
  0xed   :  { %1764 = vmatprep.subr.bf16.mxu0 %v7405_v10  ;;  %1846 = vmatprep.subr.bf16.mxu1 %v7407_v14  ;;  %v7463_v10 = vcombine.high %v400_v1, %v404_v3  ;;  %v7469_v14 = vcombine.high %v407_v7, %v411_v8  ;;  %v7468_v22 = vcombine.low %v407_v7, %v411_v8  ;;  %v209_v3 = vld [vmem:[#allocation5 + $0x190] sm:$0xff] }
  0xee   :  { %v7470_v23 = vcombine.low %v408_v9, %v412_v11 }
  0xf0   :  { %1765 = vmatpush1.bf16.msra.mxu0 %v7404_v16  ;;  %1847 = vmatpush1.bf16.msra.mxu1 %v7406_v17  ;;  %v165_v16 = vld [vmem:[#allocation5 + $0x30] sm:$0xff]  ;;  %v162_v17 = vld [vmem:[#allocation5 + $0x18] sm:$0xff] }
  0xf1   :  { %1766 = vmatprep.subr.bf16.mxu0 %v7413_v19  ;;  %1848 = vmatprep.subr.bf16.mxu1 %v7415_v24  ;;  %v7471_v19 = vcombine.high %v408_v9, %v412_v11  ;;  %v7225_v24 = vcombine.high %v161_v15, %v165_v16  ;;  %v7224_v31 = vcombine.low %v161_v15, %v165_v16  ;;  %v217_v11 = vld [vmem:[#allocation5 + $0x1d0] sm:$0xff] }
  0xf4   :  { %1767 = vmatpush1.bf16.msra.mxu0 %v7412_v26  ;;  %1849 = vmatpush1.bf16.msra.mxu1 %v7414_v27  ;;  %v173_v26 = vld [vmem:[#allocation5 + $0x70] sm:$0xff]  ;;  %v170_v27 = vld [vmem:[#allocation5 + $0x58] sm:$0xff] }
  0xf5   :  { %1768 = vmatprep.subr.bf16.mxu0 %v7421_v28  ;;  %1850 = vmatprep.subr.bf16.mxu1 %v7423_v32  ;;  %v7227_v28 = vcombine.high %v162_v17, %v166_v20  ;;  %v7226_v32 = vcombine.low %v162_v17, %v166_v20  ;;  %v7233_v33 = vcombine.high %v169_v25, %v173_v26  ;;  %v225_v20 = vld [vmem:[#allocation5 + $0x210] sm:$0xff] }
  0xf6   :  { %v7232_v39 = vcombine.low %v169_v25, %v173_v26  ;;  %v7234_v21 = vcombine.low %v170_v27, %v174_v29 }
  0xf8   :  { %1769 = vmatpush1.bf16.msra.mxu0 %v7420_v34  ;;  %1851 = vmatpush1.bf16.msra.mxu1 %v7422_v35  ;;  %v7235_v34 = vcombine.high %v170_v27, %v174_v29  ;;  %v177_v35 = vld [vmem:[#allocation5 + $0x90] sm:$0xff] }
  0xf9   :  { %1770 = vmatprep.subr.bf16.mxu0 %v7429_v36  ;;  %1852 = vmatprep.subr.bf16.mxu1 %v7431_v40  ;;  %v181_v36 = vld [vmem:[#allocation5 + $0xb0] sm:$0xff] }
  0xfa   :  { %v7241_v40 = vcombine.high %v177_v35, %v181_v36  ;;  %v7240_v46 = vcombine.low %v177_v35, %v181_v36  ;;  %v233_v29 = vld [vmem:[#allocation5 + $0x250] sm:$0xff] }
  0xfc   :  { %1771 = vmatpush1.bf16.msra.mxu0 %v7428_v42  ;;  %1853 = vmatpush1.bf16.msra.mxu1 %v7430_v43  ;;  %v185_v42 = vld [vmem:[#allocation5 + $0xd0] sm:$0xff] }
  0xfd   :  { %1772 = vmatprep.subr.bf16.mxu0 %v7437_v44  ;;  %1854 = vmatprep.subr.bf16.mxu1 %v7439_v48  ;;  %v189_v43 = vld [vmem:[#allocation5 + $0xf0] sm:$0xff]  ;;  %v186_v44 = vld [vmem:[#allocation5 + $0xd8] sm:$0xff] }
  0xfe   :  { %v7249_v48 = vcombine.high %v185_v42, %v189_v43  ;;  %v7251_v49 = vcombine.high %v186_v44, %v190_v45  ;;  %v7248_v55 = vcombine.low %v185_v42, %v189_v43  ;;  %v7250_v56 = vcombine.low %v186_v44, %v190_v45  ;;  %v249_v45 = vld [vmem:[#allocation5 + $0x2d0] sm:$0xff] }
 0x100   :  { %1773 = vmatpush1.bf16.msra.mxu0 %v7436_v50  ;;  %1855 = vmatpush1.bf16.msra.mxu1 %v7438_v51  ;;  %v193_v50 = vld [vmem:[#allocation5 + $0x110] sm:$0xff] }
 0x101   :  { %1774 = vmatprep.subr.bf16.mxu0 %v7445_v52  ;;  %1856 = vmatprep.subr.bf16.mxu1 %v7447_v57  ;;  %v197_v51 = vld [vmem:[#allocation5 + $0x130] sm:$0xff]  ;;  %v194_v52 = vld [vmem:[#allocation5 + $0x118] sm:$0xff] }
 0x102   :  { %v7257_v57 = vcombine.high %v193_v50, %v197_v51  ;;  %v7256_v63 = vcombine.low %v193_v50, %v197_v51  ;;  %v7258_v0 = vcombine.low %v194_v52, %v198_v53 }
 0x104   :  { %1775 = vmatpush1.bf16.msra.mxu0 %v7444_v59  ;;  %1857 = vmatpush1.bf16.msra.mxu1 %v7446_v60  ;;  %v205_v59 = vld [vmem:[#allocation5 + $0x170] sm:$0xff]  ;;  %v202_v60 = vld [vmem:[#allocation5 + $0x158] sm:$0xff] }
 0x105   :  { %1776 = vmatprep.subr.bf16.mxu0 %v7453_v61  ;;  %1858 = vmatprep.subr.bf16.mxu1 %v7455_v2  ;;  %v206_v61 = vld [vmem:[#allocation5 + $0x178] sm:$0xff]  ;;  %v7265_v1 = vcombine.high %v201_v58, %v205_v59  ;;  %v7264_v7 = vcombine.low %v201_v58, %v205_v59 }
 0x106   :  { %v7267_v2 = vcombine.high %v202_v60, %v206_v61  ;;  %v7266_v8 = vcombine.low %v202_v60, %v206_v61  ;;  %v265_v61 = vld [vmem:[#allocation5 + $0x350] sm:$0xff] }
 0x108   :  { %1777 = vmatpush1.bf16.msra.mxu0 %v7452_v4  ;;  %1859 = vmatpush1.bf16.msra.mxu1 %v7454_v5  ;;  %v213_v4 = vld [vmem:[#allocation5 + $0x1b0] sm:$0xff]  ;;  %v210_v5 = vld [vmem:[#allocation5 + $0x198] sm:$0xff] }
 0x109   :  { %1778 = vmatprep.subr.bf16.mxu0 %v7461_v6  ;;  %1860 = vmatprep.subr.bf16.mxu1 %v7463_v10  ;;  %v214_v6 = vld [vmem:[#allocation5 + $0x1b8] sm:$0xff]  ;;  %v7273_v9 = vcombine.high %v209_v3, %v213_v4  ;;  %v7272_v15 = vcombine.low %v209_v3, %v213_v4 }
 0x10a   :  { %v7275_v10 = vcombine.high %v210_v5, %v214_v6  ;;  %v7274_v16 = vcombine.low %v210_v5, %v214_v6  ;;  %v273_v6 = vld [vmem:[#allocation5 + $0x390] sm:$0xff] }
 0x10c   :  { %1779 = vmatpush1.bf16.msra.mxu0 %v7460_v12  ;;  %1861 = vmatpush1.bf16.msra.mxu1 %v7462_v13  ;;  %v221_v12 = vld [vmem:[#allocation5 + $0x1f0] sm:$0xff]  ;;  %v218_v13 = vld [vmem:[#allocation5 + $0x1d8] sm:$0xff] }
 0x10d   :  { %1780 = vmatprep.subr.bf16.mxu0 %v7469_v14  ;;  %1862 = vmatprep.subr.bf16.mxu1 %v7471_v19  ;;  %v222_v14 = vld [vmem:[#allocation5 + $0x1f8] sm:$0xff]  ;;  %v7281_v17 = vcombine.high %v217_v11, %v221_v12  ;;  %v7280_v25 = vcombine.low %v217_v11, %v221_v12 }
 0x10e   :  { %v7283_v19 = vcombine.high %v218_v13, %v222_v14  ;;  %v7282_v26 = vcombine.low %v218_v13, %v222_v14  ;;  %v281_v14 = vld [vmem:[#allocation5 + $0x3d0] sm:$0xff] }
 0x110   :  { %1781 = vmatpush1.bf16.msra.mxu0 %v7468_v22  ;;  %1863 = vmatpush1.bf16.msra.mxu1 %v7470_v23  ;;  %v229_v22 = vld [vmem:[#allocation5 + $0x230] sm:$0xff]  ;;  %v226_v23 = vld [vmem:[#allocation5 + $0x218] sm:$0xff] }
 0x111   :  { %1873 = vmatprep.subr.bf16.mxu0 %v7225_v24  ;;  %1955 = vmatprep.subr.bf16.mxu1 %v7227_v28  ;;  %v230_v24 = vld [vmem:[#allocation5 + $0x238] sm:$0xff]  ;;  %v7289_v27 = vcombine.high %v225_v20, %v229_v22 }
 0x112   :  { %v7291_v28 = vcombine.high %v226_v23, %v230_v24  ;;  %v7290_v35 = vcombine.low %v226_v23, %v230_v24  ;;  %v289_v24 = vld [vmem:[#allocation5 + $0x410] sm:$0xff] }
 0x113   :  { %1783 = vmatmul.mubr.bf16.vlgmr.msra.gmra.mrb[0].mxu0 %v8697_v30  ;;  %1865 = vmatmul.mubr.bf16.vlgmr.msra.gmra.mrb[0].mxu1 %v8697_v30 }
 0x114   :  { %1874 = vmatpush1.bf16.msra.mxu0 %v7224_v31  ;;  %1956 = vmatpush1.bf16.msra.mxu1 %v7226_v32  ;;  %v237_v31 = vld [vmem:[#allocation5 + $0x270] sm:$0xff]  ;;  %v234_v32 = vld [vmem:[#allocation5 + $0x258] sm:$0xff] }
 0x115   :  { %1875 = vmatprep.subr.bf16.mxu0 %v7233_v33  ;;  %1957 = vmatprep.subr.bf16.mxu1 %v7235_v34  ;;  %v238_v33 = vld [vmem:[#allocation5 + $0x278] sm:$0xff]  ;;  %v7288_v34 = vcombine.low %v225_v20, %v229_v22  ;;  %v7297_v36 = vcombine.high %v233_v29, %v237_v31 }
 0x116   :  { %1905 = vmatprep.mubr.bf16.mxu0 %v8671_v62  ;;  %1987 = vmatprep.mubr.bf16.mxu1 %v8671_v62  ;;  %v7259_v62 = vcombine.high %v194_v52, %v198_v53  ;;  %v7299_v37 = vcombine.high %v234_v32, %v238_v33  ;;  %v7298_v42 = vcombine.low %v234_v32, %v238_v33  ;;  %v257_v53 = vld [vmem:[#allocation5 + $0x310] sm:$0xff] }
 0x117   :  { %v297_v33 = vld [vmem:[#allocation5 + $0x450] sm:$0xff] }
 0x118   :  { %1876 = vmatpush1.bf16.msra.mxu0 %v7232_v39  ;;  %1958 = vmatpush1.bf16.msra.mxu1 %v7234_v21  ;;  %v245_v39 = vld [vmem:[#allocation5 + $0x2b0] sm:$0xff]  ;;  %v242_v21 = vld [vmem:[#allocation5 + $0x298] sm:$0xff] }
 0x119   :  { %1877 = vmatprep.subr.bf16.mxu0 %v7241_v40  ;;  %1959 = vmatprep.subr.bf16.mxu1 %v7243_v41  ;;  %v246_v40 = vld [vmem:[#allocation5 + $0x2b8] sm:$0xff]  ;;  %v7296_v41 = vcombine.low %v233_v29, %v237_v31  ;;  %v7305_v43 = vcombine.high %v241_v38, %v245_v39 }
 0x11a   :  { %v7307_v44 = vcombine.high %v242_v21, %v246_v40  ;;  %v7306_v50 = vcombine.low %v242_v21, %v246_v40  ;;  %v305_v40 = vld [vmem:[#allocation5 + $0x490] sm:$0xff] }
 0x11c   :  { %1878 = vmatpush1.bf16.msra.mxu0 %v7240_v46  ;;  %1960 = vmatpush1.bf16.msra.mxu1 %v7242_v47  ;;  %v253_v46 = vld [vmem:[#allocation5 + $0x2f0] sm:$0xff]  ;;  %v250_v47 = vld [vmem:[#allocation5 + $0x2d8] sm:$0xff] }
 0x11d   :  { %1879 = vmatprep.subr.bf16.mxu0 %v7249_v48  ;;  %1961 = vmatprep.subr.bf16.mxu1 %v7251_v49  ;;  %v254_v48 = vld [vmem:[#allocation5 + $0x2f8] sm:$0xff]  ;;  %v7304_v49 = vcombine.low %v241_v38, %v245_v39  ;;  %v7313_v51 = vcombine.high %v249_v45, %v253_v46 }
 0x11e   :  { %v7315_v52 = vcombine.high %v250_v47, %v254_v48  ;;  %v7314_v58 = vcombine.low %v250_v47, %v254_v48  ;;  %v313_v48 = vld [vmem:[#allocation5 + $0x4d0] sm:$0xff] }
 0x120   :  { %1880 = vmatpush1.bf16.msra.mxu0 %v7248_v55  ;;  %1962 = vmatpush1.bf16.msra.mxu1 %v7250_v56  ;;  %v261_v55 = vld [vmem:[#allocation5 + $0x330] sm:$0xff]  ;;  %v258_v56 = vld [vmem:[#allocation5 + $0x318] sm:$0xff] }
 0x121   :  { %1881 = vmatprep.subr.bf16.mxu0 %v7257_v57  ;;  %1963 = vmatprep.subr.bf16.mxu1 %v7259_v62  ;;  %v262_v57 = vld [vmem:[#allocation5 + $0x338] sm:$0xff]  ;;  %v7312_v62 = vcombine.low %v249_v45, %v253_v46  ;;  %v7321_v59 = vcombine.high %v257_v53, %v261_v55 }
 0x122   :  { %v7323_v60 = vcombine.high %v258_v56, %v262_v57  ;;  %v7322_v3 = vcombine.low %v258_v56, %v262_v57  ;;  %v321_v56 = vld [vmem:[#allocation5 + $0x510] sm:$0xff] }
 0x123   :  { %v325_v57 = vld [vmem:[#allocation5 + $0x530] sm:$0xff] }
 0x124   :  { %1882 = vmatpush1.bf16.msra.mxu0 %v7256_v63  ;;  %1964 = vmatpush1.bf16.msra.mxu1 %v7258_v0  ;;  %v269_v63 = vld [vmem:[#allocation5 + $0x370] sm:$0xff]  ;;  %v266_v0 = vld [vmem:[#allocation5 + $0x358] sm:$0xff] }
 0x125   :  { %1883 = vmatprep.subr.bf16.mxu0 %v7265_v1  ;;  %1965 = vmatprep.subr.bf16.mxu1 %v7267_v2  ;;  %v270_v1 = vld [vmem:[#allocation5 + $0x378] sm:$0xff]  ;;  %v7320_v2 = vcombine.low %v257_v53, %v261_v55  ;;  %v7329_v4 = vcombine.high %v265_v61, %v269_v63 }
 0x126   :  { %v7331_v5 = vcombine.high %v266_v0, %v270_v1  ;;  %v7330_v11 = vcombine.low %v266_v0, %v270_v1  ;;  %v333_v0 = vld [vmem:[#allocation5 + $0x570] sm:$0xff]  ;;  %v330_v1 = vld [vmem:[#allocation5 + $0x558] sm:$0xff] }
 0x128   :  { %1884 = vmatpush1.bf16.msra.mxu0 %v7264_v7  ;;  %1966 = vmatpush1.bf16.msra.mxu1 %v7266_v8  ;;  %v277_v7 = vld [vmem:[#allocation5 + $0x3b0] sm:$0xff]  ;;  %v274_v8 = vld [vmem:[#allocation5 + $0x398] sm:$0xff] }
 0x129   :  { %1885 = vmatprep.subr.bf16.mxu0 %v7273_v9  ;;  %1967 = vmatprep.subr.bf16.mxu1 %v7275_v10  ;;  %v278_v9 = vld [vmem:[#allocation5 + $0x3b8] sm:$0xff]  ;;  %v7328_v10 = vcombine.low %v265_v61, %v269_v63  ;;  %v7337_v12 = vcombine.high %v273_v6, %v277_v7  ;;  %v7385_v61 = vcombine.high %v321_v56, %v325_v57  ;;  %v329_v63 = vld [vmem:[#allocation5 + $0x550] sm:$0xff] }
 0x12a   :  { %v7339_v13 = vcombine.high %v274_v8, %v278_v9  ;;  %v7338_v20 = vcombine.low %v274_v8, %v278_v9  ;;  %v341_v8 = vld [vmem:[#allocation5 + $0x5b0] sm:$0xff]  ;;  %v338_v9 = vld [vmem:[#allocation5 + $0x598] sm:$0xff] }
 0x12c   :  { %1886 = vmatpush1.bf16.msra.mxu0 %v7272_v15  ;;  %1968 = vmatpush1.bf16.msra.mxu1 %v7274_v16  ;;  %v285_v15 = vld [vmem:[#allocation5 + $0x3f0] sm:$0xff]  ;;  %v282_v16 = vld [vmem:[#allocation5 + $0x3d8] sm:$0xff] }
 0x12d   :  { %1887 = vmatprep.subr.bf16.mxu0 %v7281_v17  ;;  %1969 = vmatprep.subr.bf16.mxu1 %v7283_v19  ;;  %v286_v17 = vld [vmem:[#allocation5 + $0x3f8] sm:$0xff]  ;;  %v7336_v19 = vcombine.low %v273_v6, %v277_v7  ;;  %v7345_v22 = vcombine.high %v281_v14, %v285_v15  ;;  %v337_v7 = vld [vmem:[#allocation5 + $0x590] sm:$0xff] }
 0x12e   :  { %v7347_v23 = vcombine.high %v282_v16, %v286_v17  ;;  %v7346_v29 = vcombine.low %v282_v16, %v286_v17  ;;  %v349_v16 = vld [vmem:[#allocation5 + $0x5f0] sm:$0xff]  ;;  %v346_v17 = vld [vmem:[#allocation5 + $0x5d8] sm:$0xff] }
 0x130   :  { %1888 = vmatpush1.bf16.msra.mxu0 %v7280_v25  ;;  %1970 = vmatpush1.bf16.msra.mxu1 %v7282_v26  ;;  %v293_v25 = vld [vmem:[#allocation5 + $0x430] sm:$0xff]  ;;  %v290_v26 = vld [vmem:[#allocation5 + $0x418] sm:$0xff] }
 0x131   :  { %1889 = vmatprep.subr.bf16.mxu0 %v7289_v27  ;;  %1971 = vmatprep.subr.bf16.mxu1 %v7291_v28  ;;  %v294_v27 = vld [vmem:[#allocation5 + $0x438] sm:$0xff]  ;;  %v7344_v28 = vcombine.low %v281_v14, %v285_v15  ;;  %v7353_v31 = vcombine.high %v289_v24, %v293_v25  ;;  %v345_v15 = vld [vmem:[#allocation5 + $0x5d0] sm:$0xff] }
 0x132   :  { %v7355_v32 = vcombine.high %v290_v26, %v294_v27  ;;  %v7354_v38 = vcombine.low %v290_v26, %v294_v27  ;;  %v357_v26 = vld [vmem:[#allocation5 + $0x630] sm:$0xff]  ;;  %v354_v27 = vld [vmem:[#allocation5 + $0x618] sm:$0xff] }
 0x134   :  { %1890 = vmatpush1.bf16.msra.mxu0 %v7288_v34  ;;  %1972 = vmatpush1.bf16.msra.mxu1 %v7290_v35  ;;  %v301_v34 = vld [vmem:[#allocation5 + $0x470] sm:$0xff]  ;;  %v298_v35 = vld [vmem:[#allocation5 + $0x458] sm:$0xff] }
 0x135   :  { %1891 = vmatprep.subr.bf16.mxu0 %v7297_v36  ;;  %1973 = vmatprep.subr.bf16.mxu1 %v7299_v37  ;;  %v302_v36 = vld [vmem:[#allocation5 + $0x478] sm:$0xff]  ;;  %v7352_v37 = vcombine.low %v289_v24, %v293_v25  ;;  %v7361_v39 = vcombine.high %v297_v33, %v301_v34  ;;  %v353_v25 = vld [vmem:[#allocation5 + $0x610] sm:$0xff] }
 0x136   :  { %v7363_v21 = vcombine.high %v298_v35, %v302_v36  ;;  %v7362_v45 = vcombine.low %v298_v35, %v302_v36  ;;  %v365_v35 = vld [vmem:[#allocation5 + $0x670] sm:$0xff]  ;;  %v362_v36 = vld [vmem:[#allocation5 + $0x658] sm:$0xff] }
 0x138   :  { %1892 = vmatpush1.bf16.msra.mxu0 %v7296_v41  ;;  %1974 = vmatpush1.bf16.msra.mxu1 %v7298_v42  ;;  %v309_v41 = vld [vmem:[#allocation5 + $0x4b0] sm:$0xff]  ;;  %v306_v42 = vld [vmem:[#allocation5 + $0x498] sm:$0xff] }
 0x139   :  { %1893 = vmatprep.subr.bf16.mxu0 %v7305_v43  ;;  %1975 = vmatprep.subr.bf16.mxu1 %v7307_v44  ;;  %v310_v43 = vld [vmem:[#allocation5 + $0x4b8] sm:$0xff]  ;;  %v7360_v44 = vcombine.low %v297_v33, %v301_v34  ;;  %v7369_v46 = vcombine.high %v305_v40, %v309_v41  ;;  %v361_v34 = vld [vmem:[#allocation5 + $0x650] sm:$0xff] }
 0x13a   :  { %v7371_v47 = vcombine.high %v306_v42, %v310_v43 }
 0x13c   :  { %1894 = vmatpush1.bf16.msra.mxu0 %v7304_v49  ;;  %1976 = vmatpush1.bf16.msra.mxu1 %v7306_v50  ;;  %v317_v49 = vld [vmem:[#allocation5 + $0x4f0] sm:$0xff]  ;;  %v314_v50 = vld [vmem:[#allocation5 + $0x4d8] sm:$0xff] }
 0x13d   :  { %1895 = vmatprep.subr.bf16.mxu0 %v7313_v51  ;;  %1977 = vmatprep.subr.bf16.mxu1 %v7315_v52  ;;  %v318_v51 = vld [vmem:[#allocation5 + $0x4f8] sm:$0xff]  ;;  %v7368_v52 = vcombine.low %v305_v40, %v309_v41  ;;  %v7377_v53 = vcombine.high %v313_v48, %v317_v49  ;;  %v369_v41 = vld [vmem:[#allocation5 + $0x690] sm:$0xff] }
 0x13e   :  { %v7379_v55 = vcombine.high %v314_v50, %v318_v51 }
 0x140   :  { %1896 = vmatpush1.bf16.msra.mxu0 %v7312_v62  ;;  %1978 = vmatpush1.bf16.msra.mxu1 %v7314_v58  ;;  %v322_v62 = vld [vmem:[#allocation5 + $0x518] sm:$0xff] }
 0x141   :  { %1897 = vmatprep.subr.bf16.mxu0 %v7321_v59  ;;  %1979 = vmatprep.subr.bf16.mxu1 %v7323_v60  ;;  %v326_v58 = vld [vmem:[#allocation5 + $0x538] sm:$0xff]  ;;  %v7376_v59 = vcombine.low %v313_v48, %v317_v49  ;;  %v7378_v60 = vcombine.low %v314_v50, %v318_v51  ;;  %v377_v49 = vld [vmem:[#allocation5 + $0x6d0] sm:$0xff] }
 0x142   :  { %v381_v50 = vld [vmem:[#allocation5 + $0x6f0] sm:$0xff]  ;;  %v378_v51 = vld [vmem:[#allocation5 + $0x6d8] sm:$0xff] }
 0x144   :  { %1898 = vmatpush1.bf16.msra.mxu0 %v7320_v2  ;;  %1980 = vmatpush1.bf16.msra.mxu1 %v7322_v3  ;;  %v334_v2 = vld [vmem:[#allocation5 + $0x578] sm:$0xff]  ;;  %v7384_v3 = vcombine.low %v321_v56, %v325_v57  ;;  %v385_v57 = vld [vmem:[#allocation5 + $0x710] sm:$0xff] }
 0x145   :  { %1899 = vmatprep.subr.bf16.mxu0 %v7329_v4  ;;  %1981 = vmatprep.subr.bf16.mxu1 %v7331_v5  ;;  %v7386_v4 = vcombine.low %v322_v62, %v326_v58  ;;  %v7393_v5 = vcombine.high %v329_v63, %v333_v0  ;;  %v7395_v6 = vcombine.high %v330_v1, %v334_v2 }
 0x148   :  { %1900 = vmatpush1.bf16.msra.mxu0 %v7328_v10  ;;  %1982 = vmatpush1.bf16.msra.mxu1 %v7330_v11  ;;  %v342_v10 = vld [vmem:[#allocation5 + $0x5b8] sm:$0xff]  ;;  %v7392_v11 = vcombine.low %v329_v63, %v333_v0  ;;  %v393_v0 = vld [vmem:[#allocation5 + $0x750] sm:$0xff] }
 0x149   :  { %1901 = vmatprep.subr.bf16.mxu0 %v7337_v12  ;;  %1983 = vmatprep.subr.bf16.mxu1 %v7339_v13  ;;  %v7394_v12 = vcombine.low %v330_v1, %v334_v2  ;;  %v7401_v13 = vcombine.high %v337_v7, %v341_v8  ;;  %v7403_v14 = vcombine.high %v338_v9, %v342_v10  ;;  %v397_v1 = vld [vmem:[#allocation5 + $0x770] sm:$0xff]  ;;  %v394_v2 = vld [vmem:[#allocation5 + $0x758] sm:$0xff] }
 0x14c   :  { %1902 = vmatpush1.bf16.msra.mxu0 %v7336_v19  ;;  %1984 = vmatpush1.bf16.msra.mxu1 %v7338_v20  ;;  %v350_v19 = vld [vmem:[#allocation5 + $0x5f8] sm:$0xff]  ;;  %v7400_v20 = vcombine.low %v337_v7, %v341_v8  ;;  %v401_v8 = vld [vmem:[#allocation5 + $0x790] sm:$0xff] }
 0x14d   :  { %1903 = vmatprep.subr.bf16.mxu0 %v7345_v22  ;;  %1985 = vmatprep.subr.bf16.mxu1 %v7347_v23  ;;  %v7402_v22 = vcombine.low %v338_v9, %v342_v10  ;;  %v7409_v23 = vcombine.high %v345_v15, %v349_v16  ;;  %v7411_v24 = vcombine.high %v346_v17, %v350_v19  ;;  %v405_v9 = vld [vmem:[#allocation5 + $0x7b0] sm:$0xff]  ;;  %v402_v10 = vld [vmem:[#allocation5 + $0x798] sm:$0xff] }
 0x150   :  { %1904 = vmatpush1.bf16.msra.mxu0 %v7344_v28  ;;  %1986 = vmatpush1.bf16.msra.mxu1 %v7346_v29  ;;  %v358_v28 = vld [vmem:[#allocation5 + $0x638] sm:$0xff]  ;;  %v7408_v29 = vcombine.low %v345_v15, %v349_v16  ;;  %v409_v16 = vld [vmem:[#allocation5 + $0x7d0] sm:$0xff] }
 0x151   :  { %1914 = vmatprep.subr.bf16.mxu0 %v7353_v31  ;;  %1996 = vmatprep.subr.bf16.mxu1 %v7355_v32  ;;  %v7410_v31 = vcombine.low %v346_v17, %v350_v19  ;;  %v7417_v32 = vcombine.high %v353_v25, %v357_v26  ;;  %v7419_v33 = vcombine.high %v354_v27, %v358_v28  ;;  %v413_v17 = vld [vmem:[#allocation5 + $0x7f0] sm:$0xff]  ;;  %v410_v19 = vld [vmem:[#allocation5 + $0x7d8] sm:$0xff] }
 0x153   :  { %1906 = vmatmul.mubr.bf16.vlgmr.msra.gmra.mrb[4].mxu0 %v8683_v18  ;;  %1988 = vmatmul.mubr.bf16.vlgmr.msra.gmra.mrb[4].mxu1 %v8683_v18  ;;  %v7370_v18 = vcombine.low %v306_v42, %v310_v43  ;;  %v373_v42 = vld [vmem:[#allocation5 + $0x6b0] sm:$0xff]  ;;  %v370_v43 = vld [vmem:[#allocation5 + $0x698] sm:$0xff] }
 0x154   :  { %1915 = vmatpush1.bf16.msra.mxu0 %v7352_v37  ;;  %1997 = vmatpush1.bf16.msra.mxu1 %v7354_v38  ;;  %v366_v37 = vld [vmem:[#allocation5 + $0x678] sm:$0xff]  ;;  %v7416_v38 = vcombine.low %v353_v25, %v357_v26  ;;  %v7472_v26 = vcombine.low %v409_v16, %v413_v17 }
 0x155   :  { %1916 = vmatprep.subr.bf16.mxu0 %v7361_v39  ;;  %1998 = vmatprep.subr.bf16.mxu1 %v7363_v21  ;;  %v7418_v39 = vcombine.low %v354_v27, %v358_v28  ;;  %v7425_v21 = vcombine.high %v361_v34, %v365_v35  ;;  %v7427_v40 = vcombine.high %v362_v36, %v366_v37 }
 0x156   :  { %1946 = vmatprep.mubr.bf16.mxu0 %v8689_v54  ;;  %2028 = vmatprep.mubr.bf16.mxu1 %v8689_v54  ;;  %v7387_v54 = vcombine.high %v322_v62, %v326_v58  ;;  %v389_v62 = vld [vmem:[#allocation5 + $0x730] sm:$0xff]  ;;  %v386_v58 = vld [vmem:[#allocation5 + $0x718] sm:$0xff] }
 0x158   :  { %1917 = vmatpush1.bf16.msra.mxu0 %v7360_v44  ;;  %1999 = vmatpush1.bf16.msra.mxu1 %v7362_v45  ;;  %v374_v44 = vld [vmem:[#allocation5 + $0x6b8] sm:$0xff]  ;;  %v7424_v45 = vcombine.low %v361_v34, %v365_v35 }
 0x159   :  { %1918 = vmatprep.subr.bf16.mxu0 %v7369_v46  ;;  %2000 = vmatprep.subr.bf16.mxu1 %v7371_v47  ;;  %v7426_v46 = vcombine.low %v362_v36, %v366_v37  ;;  %v7433_v47 = vcombine.high %v369_v41, %v373_v42  ;;  %v7435_v48 = vcombine.high %v370_v43, %v374_v44 }
 0x15c   :  { %1919 = vmatpush1.bf16.msra.mxu0 %v7368_v52  ;;  %2001 = vmatpush1.bf16.msra.mxu1 %v7370_v18  ;;  %v382_v52 = vld [vmem:[#allocation5 + $0x6f8] sm:$0xff]  ;;  %v7432_v18 = vcombine.low %v369_v41, %v373_v42 }
 0x15d   :  { %1920 = vmatprep.subr.bf16.mxu0 %v7377_v53  ;;  %2002 = vmatprep.subr.bf16.mxu1 %v7379_v55  ;;  %v7434_v53 = vcombine.low %v370_v43, %v374_v44  ;;  %v7441_v55 = vcombine.high %v377_v49, %v381_v50  ;;  %v7443_v56 = vcombine.high %v378_v51, %v382_v52 }
 0x160   :  { %1921 = vmatpush1.bf16.msra.mxu0 %v7376_v59  ;;  %2003 = vmatpush1.bf16.msra.mxu1 %v7378_v60  ;;  %v390_v59 = vld [vmem:[#allocation5 + $0x738] sm:$0xff]  ;;  %v7440_v60 = vcombine.low %v377_v49, %v381_v50  ;;  %v2417_v49 = vld [vmem:[#allocation10] sm:$0xff] }
 0x161   :  { %1922 = vmatprep.subr.bf16.mxu0 %v7385_v61  ;;  %2004 = vmatprep.subr.bf16.mxu1 %v7387_v54  ;;  %v7442_v61 = vcombine.low %v378_v51, %v382_v52  ;;  %v7449_v54 = vcombine.high %v385_v57, %v389_v62  ;;  %v7451_v63 = vcombine.high %v386_v58, %v390_v59  ;;  %v2421_v50 = vld [vmem:[#allocation10 + $0x20] sm:$0xff]  ;;  %v2418_v51 = vld [vmem:[#allocation10 + $0x8] sm:$0xff] }
 0x164   :  { %1923 = vmatpush1.bf16.msra.mxu0 %v7384_v3  ;;  %2005 = vmatpush1.bf16.msra.mxu1 %v7386_v4  ;;  %v398_v3 = vld [vmem:[#allocation5 + $0x778] sm:$0xff]  ;;  %v7448_v4 = vcombine.low %v385_v57, %v389_v62  ;;  %v7476_v62 = vcombine.low %v2417_v49, %v2421_v50 }
 0x165   :  { %1924 = vmatprep.subr.bf16.mxu0 %v7393_v5  ;;  %2006 = vmatprep.subr.bf16.mxu1 %v7395_v6  ;;  %v7450_v5 = vcombine.low %v386_v58, %v390_v59  ;;  %v7457_v6 = vcombine.high %v393_v0, %v397_v1  ;;  %v7459_v7 = vcombine.high %v394_v2, %v398_v3 }
 0x168   :  { %1925 = vmatpush1.bf16.msra.mxu0 %v7392_v11  ;;  %2007 = vmatpush1.bf16.msra.mxu1 %v7394_v12  ;;  %v406_v11 = vld [vmem:[#allocation5 + $0x7b8] sm:$0xff]  ;;  %v7456_v12 = vcombine.low %v393_v0, %v397_v1 }
 0x169   :  { %1926 = vmatprep.subr.bf16.mxu0 %v7401_v13  ;;  %2008 = vmatprep.subr.bf16.mxu1 %v7403_v14  ;;  %v7458_v13 = vcombine.low %v394_v2, %v398_v3  ;;  %v7465_v14 = vcombine.high %v401_v8, %v405_v9  ;;  %v7467_v15 = vcombine.high %v402_v10, %v406_v11  ;;  %v2425_v2 = vld [vmem:[#allocation10 + $0x40] sm:$0xff] }
 0x16a   :  { %v2429_v3 = vld [vmem:[#allocation10 + $0x60] sm:$0xff] }
 0x16c   :  { %1927 = vmatpush1.bf16.msra.mxu0 %v7400_v20  ;;  %2009 = vmatpush1.bf16.msra.mxu1 %v7402_v22  ;;  %v414_v20 = vld [vmem:[#allocation5 + $0x7f8] sm:$0xff]  ;;  %v7464_v22 = vcombine.low %v401_v8, %v405_v9 }
 0x16d   :  { %1928 = vmatprep.subr.bf16.mxu0 %v7409_v23  ;;  %2010 = vmatprep.subr.bf16.mxu1 %v7411_v24  ;;  %v7466_v23 = vcombine.low %v402_v10, %v406_v11  ;;  %v7473_v24 = vcombine.high %v409_v16, %v413_v17  ;;  %v7475_v25 = vcombine.high %v410_v19, %v414_v20  ;;  %v2430_v8 = vld [vmem:[#allocation10 + $0x68] sm:$0xff] }
 0x16e   :  { %v7474_v27 = vcombine.low %v410_v19, %v414_v20  ;;  %v7484_v11 = vcombine.low %v2425_v2, %v2429_v3  ;;  %v2433_v20 = vld [vmem:[#allocation10 + $0x80] sm:$0xff] }
 0x170   :  { %1929 = vmatpush1.bf16.msra.mxu0 %v7408_v29  ;;  %2011 = vmatpush1.bf16.msra.mxu1 %v7410_v31 }
 0x171   :  { %1930 = vmatprep.subr.bf16.mxu0 %v7417_v32  ;;  %2012 = vmatprep.subr.bf16.mxu1 %v7419_v33 }
 0x174   :  { %1931 = vmatpush1.bf16.msra.mxu0 %v7416_v38  ;;  %2013 = vmatpush1.bf16.msra.mxu1 %v7418_v39 }
 0x175   :  { %1932 = vmatprep.subr.bf16.mxu0 %v7425_v21  ;;  %2014 = vmatprep.subr.bf16.mxu1 %v7427_v40 }
 0x178   :  { %1933 = vmatpush1.bf16.msra.mxu0 %v7424_v45  ;;  %2015 = vmatpush1.bf16.msra.mxu1 %v7426_v46  ;;  %v8516_v46 = vmov 1966171168  }
 0x179   :  { %1934 = vmatprep.subr.bf16.mxu0 %v7433_v47  ;;  %2016 = vmatprep.subr.bf16.mxu1 %v7435_v48  ;;  %v2197_v47 = vunpack.c.l.s4 %v8516_v46  ;;  %v2199_v48 = vlaneseq }
 0x17b   :  { %v2198_v0 = vunpack.c.0.s8 %v2197_v47  ;;  %v8725_v1 = vshrl.u32 %v2199_v48, 7 }
 0x17c   :  { %1935 = vmatpush1.bf16.msra.mxu0 %v7432_v18  ;;  %2017 = vmatpush1.bf16.msra.mxu1 %v7434_v53  ;;  %v7477_v53 = vcombine.high %v2417_v49, %v2421_v50  ;;  %v2446_v50 = vld [vmem:[#allocation10 + $0xe8] sm:$0xff] }
 0x17d   :  { %1936 = vmatprep.subr.bf16.mxu0 %v7441_v55  ;;  %2018 = vmatprep.subr.bf16.mxu1 %v7443_v56  ;;  %v2422_v55 = vld [vmem:[#allocation10 + $0x28] sm:$0xff]  ;;  %v8728_v19 = vsub.s32 %v2198_v0, %v8725_v1 }
 0x17e   :  { %v7478_v58 = vcombine.low %v2418_v51, %v2422_v55 }
 0x180   :  { %1937 = vmatpush1.bf16.msra.mxu0 %v7440_v60  ;;  %2019 = vmatpush1.bf16.msra.mxu1 %v7442_v61  ;;  %v7479_v61 = vcombine.high %v2418_v51, %v2422_v55 }
 0x181   :  { %1938 = vmatprep.subr.bf16.mxu0 %v7449_v54  ;;  %2020 = vmatprep.subr.bf16.mxu1 %v7451_v63 }
 0x184   :  { %1939 = vmatpush1.bf16.msra.mxu0 %v7448_v4  ;;  %2021 = vmatpush1.bf16.msra.mxu1 %v7450_v5  ;;  %v2426_v4 = vld [vmem:[#allocation10 + $0x48] sm:$0xff] }
 0x185   :  { %1940 = vmatprep.subr.bf16.mxu0 %v7457_v6  ;;  %2022 = vmatprep.subr.bf16.mxu1 %v7459_v7  ;;  %v7485_v7 = vcombine.high %v2425_v2, %v2429_v3  ;;  %v2454_v3 = vld [vmem:[#allocation10 + $0x128] sm:$0xff] }
 0x188   :  { %1941 = vmatpush1.bf16.msra.mxu0 %v7456_v12  ;;  %2023 = vmatpush1.bf16.msra.mxu1 %v7458_v13  ;;  %v7486_v12 = vcombine.low %v2426_v4, %v2430_v8 }
 0x189   :  { %1942 = vmatprep.subr.bf16.mxu0 %v7465_v14  ;;  %2024 = vmatprep.subr.bf16.mxu1 %v7467_v15  ;;  %v7487_v15 = vcombine.high %v2426_v4, %v2430_v8 }
 0x18c   :  { %1943 = vmatpush1.bf16.msra.mxu0 %v7464_v22  ;;  %2025 = vmatpush1.bf16.msra.mxu1 %v7466_v23  ;;  %v2437_v22 = vld [vmem:[#allocation10 + $0xa0] sm:$0xff]  ;;  %v2434_v23 = vld [vmem:[#allocation10 + $0x88] sm:$0xff] }
 0x18d   :  { %1944 = vmatprep.subr.bf16.mxu0 %v7473_v24  ;;  %2026 = vmatprep.subr.bf16.mxu1 %v7475_v25 }
 0x190   :  { %1945 = vmatpush1.bf16.msra.mxu0 %v7472_v26  ;;  %2027 = vmatpush1.bf16.msra.mxu1 %v7474_v27  ;;  %v7493_v26 = vcombine.high %v2433_v20, %v2437_v22  ;;  %v2438_v27 = vld [vmem:[#allocation10 + $0xa8] sm:$0xff] }
 0x191   :  { %5489 = vmatprep.subr.bf16.mxu0 %v7477_v53  ;;  %5653 = vmatprep.subr.bf16.mxu1 %v7479_v61  ;;  %v2453_v61 = vld [vmem:[#allocation10 + $0x120] sm:$0xff] }
 0x193   :  { %1947 = vmatmul.mubr.bf16.vlgmr.msra.gmra.mrb[4].mxu0 %v8697_v30  ;;  %2029 = vmatmul.mubr.bf16.vlgmr.msra.gmra.mrb[4].mxu1 %v8697_v30 }
 0x194   :  { %5490 = vmatpush1.bf16.msra.mxu0 %v7476_v62  ;;  %5654 = vmatpush1.bf16.msra.mxu1 %v7478_v58 }
 0x195   :  { %5491 = vmatprep.subr.bf16.mxu0 %v7485_v7  ;;  %5655 = vmatprep.subr.bf16.mxu1 %v7487_v15  ;;  %v2458_v15 = vld [vmem:[#allocation10 + $0x148] sm:$0xff] }
 0x198   :  { %5492 = vmatpush1.bf16.msra.mxu0 %v7484_v11  ;;  %5656 = vmatpush1.bf16.msra.mxu1 %v7486_v12 }
 0x199   :  { %5493 = vmatprep.subr.bf16.mxu0 %v7493_v26 }
 0x1e6   :  { %v8709_v28 = vpop.f32.mrb[0].mxu0  ;;  %v8712_v31 = vpop.f32.mrb[0].mxu1 }
 0x1e7   :  { %v2039_v29 = vrot.slane %v8709_v28, 4  ;;  %v8714_v32 = vpop.f32.mrb[1].mxu0  ;;  %v2051_v33 = vrot.slane %v8712_v31, 4  ;;  %v8718_v35 = vpop.f32.mrb[1].mxu1 }
 0x1e8   :  { %v2045_v34 = vrot.slane %v8714_v32, 4  ;;  %v1788_v36 = vpop.f32.mrb[2].mxu0  ;;  %v2057_v38 = vrot.slane %v8718_v35, 4  ;;  %v1870_v30 = vpop.f32.mrb[2].mxu1 }
 0x1e9   :  { %v2040_v37 = vadd.f32 %v2039_v29, %v8709_v28  ;;  %v1789_v39 = vpop.f32.mrb[3].mxu0  ;;  %v2052_v21 = vadd.f32 %v2051_v33, %v8712_v31  ;;  %v1871_v41 = vpop.f32.mrb[3].mxu1  ;;  %v7492_v36 = vcombine.low %v2433_v20, %v2437_v22  ;;  %v2462_v22 = vld [vmem:[#allocation10 + $0x168] sm:$0xff] }
 0x1ea   :  { %v2046_v40 = vadd.f32 %v2045_v34, %v8714_v32  ;;  %v2058_v43 = vadd.f32 %v2057_v38, %v8718_v35  ;;  %v7494_v39 = vcombine.low %v2434_v23, %v2438_v27 }
 0x1eb   :  { %v2041_v42 = vrot.slane %v2040_v37, 2  ;;  %v2053_v44 = vrot.slane %v2052_v21, 2  ;;  %5494 = vmatpush1.bf16.msra.mxu0 %v7492_v36 }
 0x1ec   :  { %v2047_v45 = vrot.slane %v2046_v40, 2  ;;  %v2059_v18 = vrot.slane %v2058_v43, 2 }
 0x1ed   :  { %v2042_v52 = vadd.f32 %v2041_v42, %v2040_v37  ;;  %v2054_v56 = vadd.f32 %v2053_v44, %v2052_v21  ;;  %v7495_v42 = vcombine.high %v2434_v23, %v2438_v27  ;;  %v2445_v44 = vld [vmem:[#allocation10 + $0xe0] sm:$0xff] }
 0x1ee   :  { %v2048_v57 = vadd.f32 %v2047_v45, %v2046_v40  ;;  %v2060_v60 = vadd.f32 %v2059_v18, %v2058_v43  ;;  %v2441_v43 = vld [vmem:[#allocation10 + $0xc0] sm:$0xff]  ;;  %v2442_v45 = vld [vmem:[#allocation10 + $0xc8] sm:$0xff] }
 0x1ef   :  { %v2043_v59 = vrot.slane %v2042_v52, 1  ;;  %v2055_v54 = vrot.slane %v2054_v56, 1  ;;  %v7501_v49 = vcombine.high %v2441_v43, %v2445_v44  ;;  %5657 = vmatprep.subr.bf16.mxu1 %v7495_v42  ;;  %v7500_v18 = vcombine.low %v2441_v43, %v2445_v44  ;;  %v2470_v42 = vld [vmem:[#allocation10 + $0x1a8] sm:$0xff] }
 0x1f0   :  { %v2049_v63 = vrot.slane %v2048_v57, 1  ;;  %v2061_v6 = vrot.slane %v2060_v60, 1  ;;  %v7502_v53 = vcombine.low %v2442_v45, %v2446_v50  ;;  %5658 = vmatpush1.bf16.msra.mxu1 %v7494_v39  ;;  %v7503_v62 = vcombine.high %v2442_v45, %v2446_v50 }
 0x1f1   :  { %v2044_v5 = vadd.f32 %v2043_v59, %v2042_v52  ;;  %v2056_v9 = vadd.f32 %v2055_v54, %v2054_v56  ;;  %5495 = vmatprep.subr.bf16.mxu0 %v7501_v49  ;;  %v2450_v54 = vld [vmem:[#allocation10 + $0x108] sm:$0xff] }
 0x1f2   :  { %v2050_v10 = vadd.f32 %v2049_v63, %v2048_v57  ;;  %v2062_v14 = vadd.f32 %v2061_v6, %v2060_v60  ;;  %5496 = vmatpush1.bf16.msra.mxu0 %v7500_v18  ;;  %v2449_v60 = vld [vmem:[#allocation10 + $0x100] sm:$0xff]  ;;  %5659 = vmatprep.subr.bf16.mxu1 %v7503_v62  ;;  %v2474_v62 = vld [vmem:[#allocation10 + $0x1c8] sm:$0xff] }
 0x1f3   :  { %v2088_v13 = vmul.f32 0.125, %v2044_v5  ;;  %v2090_v16 = vmul.f32 0.125, %v2056_v9  ;;  %v7509_v2 = vcombine.high %v2449_v60, %v2453_v61  ;;  %v7508_v6 = vcombine.low %v2449_v60, %v2453_v61  ;;  %v2473_v18 = vld [vmem:[#allocation10 + $0x1c0] sm:$0xff] }
 0x1f4   :  { %v2089_v17 = vmul.f32 0.125, %v2050_v10  ;;  %v2091_v25 = vmul.f32 0.125, %v2062_v14  ;;  %5660 = vmatpush1.bf16.msra.mxu1 %v7502_v53  ;;  %v7510_v9 = vcombine.low %v2450_v54, %v2454_v3  ;;  %v7511_v10 = vcombine.high %v2450_v54, %v2454_v3  ;;  %v2461_v14 = vld [vmem:[#allocation10 + $0x160] sm:$0xff]  ;;  %v2486_v3 = vld [vmem:[#allocation10 + $0x228] sm:$0xff] }
 0x1f5   :  { %v2096_v24 = vsub.f32 %v8709_v28, %v2088_v13  ;;  %v2098_v29 = vsub.f32 %v8712_v31, %v2090_v16  ;;  %5497 = vmatprep.subr.bf16.mxu0 %v7509_v2  ;;  %v2477_v53 = vld [vmem:[#allocation10 + $0x1e0] sm:$0xff] }
 0x1f6   :  { %v2097_v33 = vsub.f32 %v8714_v32, %v2089_v17  ;;  %v2251_v34 = vcombine.low %v2088_v13, %v2089_v17  ;;  %v2099_v38 = vsub.f32 %v8718_v35, %v2091_v25  ;;  %v2252_v30 = vcombine.low %v2090_v16, %v2091_v25  ;;  %5498 = vmatpush1.bf16.msra.mxu0 %v7508_v6  ;;  %v2457_v13 = vld [vmem:[#allocation10 + $0x140] sm:$0xff] }
 0x1f7   :  { %v2104_v37 = vmul.f32 %v2096_v24, %v2096_v24  ;;  %v2106_v21 = vmul.f32 %v2098_v29, %v2098_v29  ;;  %5661 = vmatprep.subr.bf16.mxu1 %v7511_v10  ;;  %v7517_v20 = vcombine.high %v2457_v13, %v2461_v14  ;;  %v7516_v25 = vcombine.low %v2457_v13, %v2461_v14  ;;  %v2481_v54 = vld [vmem:[#allocation10 + $0x200] sm:$0xff] }
 0x1f8   :  { %v2105_v40 = vmul.f32 %v2097_v33, %v2097_v33  ;;  %v8735_v41 = vrot.slane %v2251_v34, %v8728_v19  ;;  %v2107_v47 = vmul.f32 %v2099_v38, %v2099_v38  ;;  %v8738_v48 = vrot.slane %v2252_v30, %v8728_v19  ;;  %5662 = vmatpush1.bf16.msra.mxu1 %v7510_v9  ;;  %v2469_v38 = vld [vmem:[#allocation10 + $0x1a0] sm:$0xff]  ;;  %v2466_v30 = vld [vmem:[#allocation10 + $0x188] sm:$0xff] }
 0x1f9   :  { %v2112_v46 = vrot.slane %v2104_v37, 4  ;;  %v2124_v51 = vrot.slane %v2106_v21, 4  ;;  %5499 = vmatprep.subr.bf16.mxu0 %v7517_v20  ;;  %v7518_v29 = vcombine.low %v2458_v15, %v2462_v22  ;;  %v7519_v33 = vcombine.high %v2458_v15, %v2462_v22  ;;  %v2490_v9 = vld [vmem:[#allocation10 + $0x248] sm:$0xff]  ;;  %v2501_v20 = vld [vmem:[#allocation10 + $0x2a0] sm:$0xff] }
 0x1fa   :  { %v2118_v52 = vrot.slane %v2105_v40, 4  ;;  %v2130_v56 = vrot.slane %v2107_v47, 4  ;;  %v2283_v57 = vcombine.low %v8735_v41, %v8738_v48  ;;  %5500 = vmatpush1.bf16.msra.mxu0 %v7516_v25  ;;  %v7526_v49 = vcombine.low %v2466_v30, %v2470_v42  ;;  %v2498_v22 = vld [vmem:[#allocation10 + $0x288] sm:$0xff] }
 0x1fb   :  { %v2113_v55 = vadd.f32 %v2112_v46, %v2104_v37  ;;  %v2125_v58 = vadd.f32 %v2124_v51, %v2106_v21  ;;  %v2465_v37 = vld [vmem:[#allocation10 + $0x180] sm:$0xff]  ;;  %5663 = vmatprep.subr.bf16.mxu1 %v7519_v33  ;;  %v7527_v50 = vcombine.high %v2466_v30, %v2470_v42  ;;  %v2502_v25 = vld [vmem:[#allocation10 + $0x2a8] sm:$0xff] }
 0x1fc   :  { %v2119_v59 = vadd.f32 %v2118_v52, %v2105_v40  ;;  %v2131_v0 = vadd.f32 %v2130_v56, %v2107_v47  ;;  %v7525_v40 = vcombine.high %v2465_v37, %v2469_v38  ;;  %v7524_v45 = vcombine.low %v2465_v37, %v2469_v38  ;;  %5664 = vmatpush1.bf16.msra.mxu1 %v7518_v29  ;;  %v2505_v38 = vld [vmem:[#allocation10 + $0x2c0] sm:$0xff] }
 0x1fd   :  { %v2114_v63 = vrot.slane %v2113_v55, 2  ;;  %v2126_v4 = vrot.slane %v2125_v58, 2  ;;  %5665 = vmatprep.subr.bf16.mxu1 %v7527_v50  ;;  %v7533_v56 = vcombine.high %v2473_v18, %v2477_v53  ;;  %v7559_v33 = vcombine.high %v2498_v22, %v2502_v25  ;;  %v2514_v50 = vld [vmem:[#allocation10 + $0x308] sm:$0xff] }
 0x1fe   :  { %v2120_v5 = vrot.slane %v2119_v59, 2  ;;  %v2132_v8 = vrot.slane %v2131_v0, 2  ;;  %5501 = vmatprep.subr.bf16.mxu0 %v7525_v40  ;;  %v2510_v40 = vld [vmem:[#allocation10 + $0x2e8] sm:$0xff] }
 0x1ff   :  { %v2115_v7 = vadd.f32 %v2114_v63, %v2113_v55  ;;  %v2127_v11 = vadd.f32 %v2126_v4, %v2125_v58  ;;  %5502 = vmatpush1.bf16.msra.mxu0 %v7524_v45  ;;  %v2478_v58 = vld [vmem:[#allocation10 + $0x1e8] sm:$0xff]  ;;  %v2485_v63 = vld [vmem:[#allocation10 + $0x220] sm:$0xff] }
 0x200   :  { %v2121_v12 = vadd.f32 %v2120_v5, %v2119_v59  ;;  %v2133_v17 = vadd.f32 %v2132_v8, %v2131_v0  ;;  %v7532_v59 = vcombine.low %v2473_v18, %v2477_v53  ;;  %v7535_v60 = vcombine.high %v2474_v62, %v2478_v58  ;;  %5666 = vmatpush1.bf16.msra.mxu1 %v7526_v49  ;;  %v2482_v0 = vld [vmem:[#allocation10 + $0x208] sm:$0xff]  ;;  %v2493_v8 = vld [vmem:[#allocation10 + $0x260] sm:$0xff] }
 0x201   :  { %v2116_v16 = vrot.slane %v2115_v7, 1  ;;  %v2128_v23 = vrot.slane %v2127_v11, 1  ;;  %5503 = vmatprep.subr.bf16.mxu0 %v7533_v56  ;;  %v7534_v61 = vcombine.low %v2474_v62, %v2478_v58  ;;  %v7541_v2 = vcombine.high %v2481_v54, %v2485_v63  ;;  %v2517_v49 = vld [vmem:[#allocation10 + $0x320] sm:$0xff]  ;;  %v2522_v58 = vld [vmem:[#allocation10 + $0x348] sm:$0xff] }
 0x202   :  { %v2122_v24 = vrot.slane %v2121_v12, 1  ;;  %v2134_v27 = vrot.slane %v2133_v17, 1  ;;  %5667 = vmatprep.subr.bf16.mxu1 %v7535_v60  ;;  %v7540_v4 = vcombine.low %v2481_v54, %v2485_v63  ;;  %v7543_v5 = vcombine.high %v2482_v0, %v2486_v3  ;;  %v2521_v56 = vld [vmem:[#allocation10 + $0x340] sm:$0xff]  ;;  %v2526_v60 = vld [vmem:[#allocation10 + $0x368] sm:$0xff] }
 0x203   :  { %v2117_v26 = vadd.f32 %v2116_v16, %v2115_v7  ;;  %v2129_v34 = vadd.f32 %v2128_v23, %v2127_v11  ;;  %5504 = vmatpush1.bf16.msra.mxu0 %v7532_v59  ;;  %v7542_v6 = vcombine.low %v2482_v0, %v2486_v3  ;;  %v2489_v7 = vld [vmem:[#allocation10 + $0x240] sm:$0xff]  ;;  %v2494_v11 = vld [vmem:[#allocation10 + $0x268] sm:$0xff]  ;;  %v7583_v54 = vcombine.high %v2522_v58, %v2526_v60 }
 0x204   :  { %v2123_v36 = vadd.f32 %v2122_v24, %v2121_v12  ;;  %v2135_v21 = vadd.f32 %v2134_v27, %v2133_v17  ;;  %5668 = vmatpush1.bf16.msra.mxu1 %v7534_v61  ;;  %5505 = vmatprep.subr.bf16.mxu0 %v7541_v2  ;;  %v7549_v10 = vcombine.high %v2489_v7, %v2493_v8  ;;  %v2497_v17 = vld [vmem:[#allocation10 + $0x280] sm:$0xff]  ;;  %v2530_v3 = vld [vmem:[#allocation10 + $0x388] sm:$0xff] }
 0x205   :  { %v2160_v39 = vmul.f32 0.125, %v2117_v26  ;;  %v2162_v43 = vmul.f32 0.125, %v2129_v34  ;;  %5669 = vmatprep.subr.bf16.mxu1 %v7543_v5  ;;  %v7548_v12 = vcombine.low %v2489_v7, %v2493_v8  ;;  %v7551_v13 = vcombine.high %v2490_v9, %v2494_v11  ;;  %v2525_v62 = vld [vmem:[#allocation10 + $0x360] sm:$0xff]  ;;  %v2534_v5 = vld [vmem:[#allocation10 + $0x3a8] sm:$0xff] }
 0x206   :  { %v2161_v44 = vmul.f32 0.125, %v2123_v36  ;;  %v2163_v47 = vmul.f32 0.125, %v2135_v21  ;;  %v7550_v15 = vcombine.low %v2490_v9, %v2494_v11  ;;  %v7557_v24 = vcombine.high %v2497_v17, %v2501_v20  ;;  %v2506_v21 = vld [vmem:[#allocation10 + $0x2c8] sm:$0xff]  ;;  %v2529_v0 = vld [vmem:[#allocation10 + $0x380] sm:$0xff] }
 0x207   :  { %v2168_v46 = vadd.f32 1e-05, %v2160_v39  ;;  %v2170_v51 = vadd.f32 1e-05, %v2162_v43  ;;  %5506 = vmatpush1.bf16.msra.mxu0 %v7540_v4  ;;  %v7556_v29 = vcombine.low %v2497_v17, %v2501_v20  ;;  %v7558_v36 = vcombine.low %v2498_v22, %v2502_v25  ;;  %v2509_v39 = vld [vmem:[#allocation10 + $0x2e0] sm:$0xff]  ;;  %v2538_v11 = vld [vmem:[#allocation10 + $0x3c8] sm:$0xff] }
 0x208   :  { %v2169_v52 = vadd.f32 1e-05, %v2161_v44  ;;  %v2171_v55 = vadd.f32 1e-05, %v2163_v47  ;;  %5670 = vmatpush1.bf16.msra.mxu1 %v7542_v6  ;;  %5507 = vmatprep.subr.bf16.mxu0 %v7549_v10  ;;  %v7564_v42 = vcombine.low %v2505_v38, %v2509_v39  ;;  %v7565_v43 = vcombine.high %v2505_v38, %v2509_v39  ;;  %v2513_v47 = vld [vmem:[#allocation10 + $0x300] sm:$0xff]  ;;  %v8754_v22 = vld [vmem:[#allocation10 + $0x408] sm:$0xff] }
 0x209   :  { %8285 = vrsqrt.f32 %v2168_v46  ;;  %5671 = vmatprep.subr.bf16.mxu1 %v7551_v13  ;;  %v7567_v44 = vcombine.high %v2506_v21, %v2510_v40  ;;  %v7566_v46 = vcombine.low %v2506_v21, %v2510_v40  ;;  %v7572_v18 = vcombine.low %v2513_v47, %v2517_v49  ;;  %v2533_v2 = vld [vmem:[#allocation10 + $0x3a0] sm:$0xff] }
 0x20a   :  { %8287 = vrsqrt.f32 %v2170_v51  ;;  %v7573_v51 = vcombine.high %v2513_v47, %v2517_v49  ;;  %v7581_v59 = vcombine.high %v2521_v56, %v2525_v62  ;;  %v7580_v61 = vcombine.low %v2521_v56, %v2525_v62  ;;  %v2537_v9 = vld [vmem:[#allocation10 + $0x3c0] sm:$0xff] }
 0x20b   :  { %8289 = vrsqrt.f32 %v2169_v52  ;;  %5508 = vmatpush1.bf16.msra.mxu0 %v7548_v12  ;;  %v2518_v52 = vld [vmem:[#allocation10 + $0x328] sm:$0xff]  ;;  %v7582_v63 = vcombine.low %v2522_v58, %v2526_v60  ;;  %v7589_v4 = vcombine.high %v2529_v0, %v2533_v2  ;;  %v7588_v6 = vcombine.low %v2529_v0, %v2533_v2  ;;  %v2541_v10 = vld [vmem:[#allocation10 + $0x3e0] sm:$0xff] }
 0x20c   :  { %8291 = vrsqrt.f32 %v2171_v55  ;;  %5672 = vmatpush1.bf16.msra.mxu1 %v7550_v15  ;;  %5509 = vmatprep.subr.bf16.mxu0 %v7557_v24  ;;  %v7575_v53 = vcombine.high %v2514_v50, %v2518_v52  ;;  %v7574_v55 = vcombine.low %v2514_v50, %v2518_v52  ;;  %v7591_v7 = vcombine.high %v2530_v3, %v2534_v5  ;;  %v8750_v17 = vld [vmem:[#allocation10 + $0x400] sm:$0xff]  ;;  %v8758_v24 = vld [vmem:[#allocation10 + $0x428] sm:$0xff] }
 0x20d   :  { %5673 = vmatprep.subr.bf16.mxu1 %v7559_v33  ;;  %v7590_v8 = vcombine.low %v2530_v3, %v2534_v5  ;;  %v7596_v12 = vcombine.low %v2537_v9, %v2541_v10  ;;  %v7597_v13 = vcombine.high %v2537_v9, %v2541_v10  ;;  %v8752_v20 = vld [vmem:[#allocation10 + $0x420] sm:$0xff] }
 0x20e   :  { %v7604_v25 = vcombine.low %v8750_v17, %v8752_v20 }
 0x20f   :  { %5510 = vmatpush1.bf16.msra.mxu0 %v7556_v29 }
 0x210   :  { %5674 = vmatpush1.bf16.msra.mxu1 %v7558_v36  ;;  %5511 = vmatprep.subr.bf16.mxu0 %v7565_v43 }
 0x211   :  { %5675 = vmatprep.subr.bf16.mxu1 %v7567_v44 }
 0x213   :  { %v8286_v14 = vpop.eup %8285  ;;  %5512 = vmatpush1.bf16.msra.mxu0 %v7564_v42 }
 0x214   :  { %v8288_v16 = vpop.eup %8287  ;;  %5676 = vmatpush1.bf16.msra.mxu1 %v7566_v46  ;;  %5513 = vmatprep.subr.bf16.mxu0 %v7573_v51 }
 0x215   :  { %v8290_v23 = vpop.eup %8289  ;;  %5677 = vmatprep.subr.bf16.mxu1 %v7575_v53 }
 0x216   :  { %v8292_v26 = vpop.eup %8291  ;;  %v2192_v27 = vcombine.low %v8286_v14, %v8290_v23  ;;  %v2542_v14 = vld [vmem:[#allocation10 + $0x3e8] sm:$0xff]  ;;  %v7605_v23 = vcombine.high %v8750_v17, %v8752_v20  ;;  %v2573_v17 = vld [vmem:[#allocation10 + $0x4e0] sm:$0xff] }
 0x217   :  { %v2193_v34 = vcombine.low %v8288_v16, %v8292_v26  ;;  %5514 = vmatpush1.bf16.msra.mxu0 %v7572_v18  ;;  %v7599_v15 = vcombine.high %v2538_v11, %v2542_v14  ;;  %v7598_v16 = vcombine.low %v2538_v11, %v2542_v14  ;;  %v7606_v26 = vcombine.low %v8754_v22, %v8758_v24  ;;  %v2570_v20 = vld [vmem:[#allocation10 + $0x4c8] sm:$0xff] }
 0x218   :  { %v8743_v37 = vrot.slane %v2192_v27, %v8728_v19  ;;  %5678 = vmatpush1.bf16.msra.mxu1 %v7574_v55  ;;  %5515 = vmatprep.subr.bf16.mxu0 %v7581_v59  ;;  %v7607_v27 = vcombine.high %v8754_v22, %v8758_v24 }
 0x219   :  { %v8746_v30 = vrot.slane %v2193_v34, %v8728_v19  ;;  %5679 = vmatprep.subr.bf16.mxu1 %v7583_v54 }
 0x21b   :  { %v2224_v45 = vcombine.low %v8743_v37, %v8746_v30  ;;  %5516 = vmatpush1.bf16.msra.mxu0 %v7580_v61  ;;  %v8816_v37 = vsub.s32 5, %v8725_v1 }
 0x21c   :  { %5680 = vmatpush1.bf16.msra.mxu1 %v7582_v63  ;;  %5517 = vmatprep.subr.bf16.mxu0 %v7589_v4 }
 0x21d   :  { %5681 = vmatprep.subr.bf16.mxu1 %v7591_v7 }
 0x21f   :  { %5518 = vmatpush1.bf16.msra.mxu0 %v7588_v6 }
 0x220   :  { %5682 = vmatpush1.bf16.msra.mxu1 %v7590_v8  ;;  %5519 = vmatprep.subr.bf16.mxu0 %v7597_v13 }
 0x221   :  { %5683 = vmatprep.subr.bf16.mxu1 %v7599_v15 }
 0x223   :  { %5520 = vmatpush1.bf16.msra.mxu0 %v7596_v12 }
 0x224   :  { %5684 = vmatpush1.bf16.msra.mxu1 %v7598_v16  ;;  %5530 = vmatprep.subr.bf16.mxu0 %v7605_v23 }
 0x225   :  { %5694 = vmatprep.subr.bf16.mxu1 %v7607_v27 }
 0x266   :  { %v8766_v29 = vpop.f32.mrb[4].mxu0  ;;  %v8769_v34 = vpop.f32.mrb[4].mxu1 }
 0x267   :  { %v2063_v33 = vrot.slane %v8766_v29, 4  ;;  %v8771_v36 = vpop.f32.mrb[5].mxu0  ;;  %v2075_v38 = vrot.slane %v8769_v34, 4  ;;  %v8775_v21 = vpop.f32.mrb[5].mxu1 }
 0x268   :  { %v2069_v39 = vrot.slane %v8771_v36, 4  ;;  %v1952_v40 = vpop.f32.mrb[6].mxu0  ;;  %v2081_v43 = vrot.slane %v8775_v21, 4  ;;  %v2034_v44 = vpop.f32.mrb[6].mxu1 }
 0x269   :  { %v2064_v42 = vadd.f32 %v2063_v33, %v8766_v29  ;;  %v1953_v46 = vpop.f32.mrb[7].mxu0  ;;  %v2076_v47 = vadd.f32 %v2075_v38, %v8769_v34  ;;  %v2035_v50 = vpop.f32.mrb[7].mxu1 }
 0x26a   :  { %v2070_v49 = vadd.f32 %v2069_v39, %v8771_v36  ;;  %v2082_v52 = vadd.f32 %v2081_v43, %v8775_v21  ;;  %v2291_v50 = vrot.slane %v2283_v57, %v8728_v19 }
 0x26b   :  { %v2065_v51 = vrot.slane %v2064_v42, 2  ;;  %v2077_v18 = vrot.slane %v2076_v47, 2 }
 0x26c   :  { %v2071_v53 = vrot.slane %v2070_v49, 2  ;;  %v2083_v56 = vrot.slane %v2082_v52, 2 }
 0x26d   :  { %v2066_v55 = vadd.f32 %v2065_v51, %v2064_v42  ;;  %v2078_v62 = vadd.f32 %v2077_v18, %v2076_v47 }
 0x26e   :  { %v2072_v58 = vadd.f32 %v2071_v53, %v2070_v49  ;;  %v2084_v60 = vadd.f32 %v2083_v56, %v2082_v52 }
 0x26f   :  { %v2067_v59 = vrot.slane %v2066_v55, 1  ;;  %v2079_v61 = vrot.slane %v2078_v62, 1 }
 0x270   :  { %v2073_v54 = vrot.slane %v2072_v58, 1  ;;  %v2085_v0 = vrot.slane %v2084_v60, 1 }
 0x271   :  { %v2068_v63 = vadd.f32 %v2067_v59, %v2066_v55  ;;  %v2080_v2 = vadd.f32 %v2079_v61, %v2078_v62 }
 0x272   :  { %v2074_v3 = vadd.f32 %v2073_v54, %v2072_v58  ;;  %v2086_v5 = vadd.f32 %v2085_v0, %v2084_v60 }
 0x273   :  { %v2092_v4 = vmul.f32 0.125, %v2068_v63  ;;  %v2094_v6 = vmul.f32 0.125, %v2080_v2 }
 0x274   :  { %v2093_v7 = vmul.f32 0.125, %v2074_v3  ;;  %v2095_v9 = vmul.f32 0.125, %v2086_v5 }
 0x275   :  { %v2100_v8 = vsub.f32 %v8766_v29, %v2092_v4  ;;  %v2102_v10 = vsub.f32 %v8769_v34, %v2094_v6 }
 0x276   :  { %v2101_v11 = vsub.f32 %v8771_v36, %v2093_v7  ;;  %v2253_v12 = vcombine.low %v2092_v4, %v2093_v7  ;;  %v2103_v14 = vsub.f32 %v8775_v21, %v2095_v9  ;;  %v2254_v15 = vcombine.low %v2094_v6, %v2095_v9 }
 0x277   :  { %v2108_v13 = vmul.f32 %v2100_v8, %v2100_v8  ;;  %v2110_v16 = vmul.f32 %v2102_v10, %v2102_v10 }
 0x278   :  { %v2109_v23 = vmul.f32 %v2101_v11, %v2101_v11  ;;  %v2275_v27 = vrot.slane %v2253_v12, %v8728_v19  ;;  %v2111_v38 = vmul.f32 %v2103_v14, %v2103_v14  ;;  %v2282_v39 = vrot.slane %v2254_v15, %v8728_v19 }
 0x279   :  { %v2136_v33 = vrot.slane %v2108_v13, 4  ;;  %v2148_v40 = vrot.slane %v2110_v16, 4 }
 0x27a   :  { %v2142_v42 = vrot.slane %v2109_v23, 4  ;;  %v2154_v44 = vrot.slane %v2111_v38, 4  ;;  %v2284_v46 = vcombine.low %v2275_v27, %v2282_v39  ;;  %v2232_v39 = vrot.slane %v2224_v45, %v8728_v19  ;;  %v2038_v45 = vld [vmem:[#allocation8] sm:$0xff] }
 0x27b   :  { %v2137_v43 = vadd.f32 %v2136_v33, %v2108_v13  ;;  %v2149_v47 = vadd.f32 %v2148_v40, %v2110_v16 }
 0x27c   :  { %v2143_v49 = vadd.f32 %v2142_v42, %v2109_v23  ;;  %v2155_v52 = vadd.f32 %v2154_v44, %v2111_v38  ;;  %v2298_v18 = vrot.slane %v2284_v46, %v8728_v19  ;;  %v2037_v42 = vld [vmem:[#allocation7] sm:$0xff]  ;;  %v8801_v44 = vsub.s32 7, %v8725_v1 }
 0x27d   :  { %v2138_v51 = vrot.slane %v2137_v43, 2  ;;  %v2150_v53 = vrot.slane %v2149_v47, 2  ;;  %v8804_v46 = vsub.s32 1, %v8725_v1 }
 0x27e   :  { %v2144_v55 = vrot.slane %v2143_v49, 2  ;;  %v2156_v62 = vrot.slane %v2155_v52, 2  ;;  %v2299_v58 = vcombine.low %v2291_v50, %v2298_v18  ;;  %v8813_v50 = vsub.s32 2, %v8725_v1 }
 0x27f   :  { %v2139_v56 = vadd.f32 %v2138_v51, %v2137_v43  ;;  %v2151_v59 = vadd.f32 %v2150_v53, %v2149_v47  ;;  %v8807_v47 = vsub.s32 0, %v8725_v1 }
 0x280   :  { %v2145_v60 = vadd.f32 %v2144_v55, %v2143_v49  ;;  %v2157_v54 = vadd.f32 %v2156_v62, %v2155_v52  ;;  %v8810_v49 = vsub.s32 3, %v8725_v1 }
 0x281   :  { %v2140_v61 = vrot.slane %v2139_v56, 1  ;;  %v2152_v63 = vrot.slane %v2151_v59, 1 }
 0x282   :  { %v2146_v0 = vrot.slane %v2145_v60, 1  ;;  %v2158_v3 = vrot.slane %v2157_v54, 1 }
 0x283   :  { %v2141_v2 = vadd.f32 %v2140_v61, %v2139_v56  ;;  %v2153_v4 = vadd.f32 %v2152_v63, %v2151_v59 }
 0x284   :  { %v2147_v41 = vadd.f32 %v2146_v0, %v2145_v60  ;;  %v2159_v57 = vadd.f32 %v2158_v3, %v2157_v54 }
 0x285   :  { %v2164_v48 = vmul.f32 0.125, %v2141_v2  ;;  %v2166_v5 = vmul.f32 0.125, %v2153_v4 }
 0x286   :  { %v2165_v6 = vmul.f32 0.125, %v2147_v41  ;;  %v2167_v8 = vmul.f32 0.125, %v2159_v57 }
 0x287   :  { %v2172_v7 = vadd.f32 1e-05, %v2164_v48  ;;  %v2174_v9 = vadd.f32 1e-05, %v2166_v5  ;;  %v2553_v48 = vld [vmem:[#allocation10 + $0x440] sm:$0xff] }
 0x288   :  { %v2173_v10 = vadd.f32 1e-05, %v2165_v6  ;;  %v2175_v11 = vadd.f32 1e-05, %v2167_v8  ;;  %v8860_v6 = vsub.s32 4, %v8725_v1 }
 0x289   :  { %8293 = vrsqrt.f32 %v2172_v7 }
 0x28a   :  { %8295 = vrsqrt.f32 %v2174_v9  ;;  %v2557_v9 = vld [vmem:[#allocation10 + $0x460] sm:$0xff] }
 0x28b   :  { %8297 = vrsqrt.f32 %v2173_v10  ;;  %v2554_v10 = vld [vmem:[#allocation10 + $0x448] sm:$0xff] }
 0x28c   :  { %8299 = vrsqrt.f32 %v2175_v11  ;;  %v2558_v11 = vld [vmem:[#allocation10 + $0x468] sm:$0xff] }
 0x293   :  { %v8294_v12 = vpop.eup %8293 }
 0x294   :  { %v8296_v13 = vpop.eup %8295 }
 0x295   :  { %v8298_v14 = vpop.eup %8297 }
 0x296   :  { %v8300_v15 = vpop.eup %8299  ;;  %v2194_v16 = vcombine.low %v8294_v12, %v8298_v14  ;;  %v8863_v12 = vsub.s32 6, %v8725_v1 }
 0x297   :  { %v2195_v23 = vcombine.low %v8296_v13, %v8300_v15 }
 0x298   :  { %v2216_v27 = vrot.slane %v2194_v16, %v8728_v19  ;;  %v7613_v16 = vcombine.high %v2553_v48, %v2557_v9 }
 0x299   :  { %v2223_v33 = vrot.slane %v2195_v23, %v8728_v19  ;;  %v7615_v23 = vcombine.high %v2554_v10, %v2558_v11 }
 0x29b   :  { %v2225_v38 = vcombine.low %v2216_v27, %v2223_v33  ;;  %v2561_v27 = vld [vmem:[#allocation10 + $0x480] sm:$0xff] }
 0x29c   :  { %v2565_v33 = vld [vmem:[#allocation10 + $0x4a0] sm:$0xff] }
 0x29d   :  { %v2239_v40 = vrot.slane %v2225_v38, %v8728_v19  ;;  %v2562_v38 = vld [vmem:[#allocation10 + $0x488] sm:$0xff] }
 0x29f   :  { %v2240_v43 = vcombine.low %v2232_v39, %v2239_v40  ;;  %v2566_v39 = vld [vmem:[#allocation10 + $0x4a8] sm:$0xff] }
 0x2a1   :  { %v8818_v30 = vmul.f32 %v2240_v43, %v2037_v42 }
 0x2a3   :  { %v2301_v51 = vmul.f32 %v2299_v58, %v8818_v30  ;;  %v2335_v52 = vrot.slane %v8818_v30, %v8801_v44  ;;  %v2311_v18 = vrot.slane %v8818_v30, %v8804_v46  ;;  %v2307_v53 = vrot.slane %v8818_v30, %v8807_v47 }
 0x2a4   :  { %v2319_v55 = vrot.slane %v8818_v30, %v8810_v49  ;;  %v2315_v56 = vrot.slane %v8818_v30, %v8813_v50  ;;  %v2327_v62 = vrot.slane %v8818_v30, %v8816_v37  ;;  %v2323_v40 = vrot.slane %v8818_v30, %v8860_v6 }
 0x2a5   :  { %v8833_v59 = vsub.f32 %v2038_v45, %v2301_v51  ;;  %v2351_v58 = vmul.f32 %v2335_v52, %v8775_v21  ;;  %v2345_v60 = vmul.f32 %v2311_v18, %v8714_v32  ;;  %v2344_v61 = vmul.f32 %v2307_v53, %v8709_v28 }
 0x2a6   :  { %v2347_v54 = vmul.f32 %v2319_v55, %v8718_v35  ;;  %v2346_v63 = vmul.f32 %v2315_v56, %v8712_v31  ;;  %v2349_v0 = vmul.f32 %v2327_v62, %v8771_v36  ;;  %v2331_v42 = vrot.slane %v8818_v30, %v8863_v12  ;;  %v2569_v55 = vld [vmem:[#allocation10 + $0x4c0] sm:$0xff] }
 0x2a7   :  { %v2384_v2 = vrot.slane %v8833_v59, %v8801_v44  ;;  %v2360_v3 = vrot.slane %v8833_v59, %v8804_v46  ;;  %v2356_v4 = vrot.slane %v8833_v59, %v8807_v47  ;;  %v2368_v32 = vrot.slane %v8833_v59, %v8810_v49 }
 0x2a8   :  { %v2364_v28 = vrot.slane %v8833_v59, %v8813_v50  ;;  %v2376_v31 = vrot.slane %v8833_v59, %v8816_v37  ;;  %v2372_v1 = vrot.slane %v8833_v59, %v8860_v6  ;;  %v7612_v45 = vcombine.low %v2553_v48, %v2557_v9  ;;  %v2593_v48 = vld [vmem:[#allocation10 + $0x580] sm:$0xff]  ;;  %v2598_v9 = vld [vmem:[#allocation10 + $0x5a8] sm:$0xff] }
 0x2a9   :  { %v8853_v35 = vadd.f32 %v2384_v2, %v2351_v58  ;;  %v2394_v36 = vadd.f32 %v2360_v3, %v2345_v60  ;;  %v2393_v21 = vadd.f32 %v2356_v4, %v2344_v61  ;;  %v2396_v41 = vadd.f32 %v2368_v32, %v2347_v54  ;;  %v2577_v58 = vld [vmem:[#allocation10 + $0x500] sm:$0xff]  ;;  %v2578_v61 = vld [vmem:[#allocation10 + $0x508] sm:$0xff] }
 0x2aa   :  { %v8855_v57 = vadd.f32 %v2364_v28, %v2346_v63  ;;  %v8857_v5 = vadd.f32 %v2376_v31, %v2349_v0  ;;  %v7614_v51 = vcombine.low %v2554_v10, %v2558_v11  ;;  %v2348_v52 = vmul.f32 %v2323_v40, %v8766_v29  ;;  %v2581_v60 = vld [vmem:[#allocation10 + $0x520] sm:$0xff]  ;;  %v2582_v54 = vld [vmem:[#allocation10 + $0x528] sm:$0xff] }
 0x2ab   :  { %v2402_v7 = vmax.f32 %v2394_v36, 0.0  ;;  %v2401_v8 = vmax.f32 %v2393_v21, 0.0  ;;  %v2404_v13 = vmax.f32 %v2396_v41, 0.0  ;;  %v2380_v30 = vrot.slane %v8833_v59, %v8863_v12  ;;  %v2585_v3 = vld [vmem:[#allocation10 + $0x540] sm:$0xff]  ;;  %v2586_v32 = vld [vmem:[#allocation10 + $0x548] sm:$0xff] }
 0x2ac   :  { %v7621_v18 = vcombine.high %v2561_v27, %v2565_v33  ;;  %v7623_v53 = vcombine.high %v2562_v38, %v2566_v39  ;;  %v8892_v22 = vadd.f32 %v2372_v1, %v2348_v52  ;;  %v2350_v24 = vmul.f32 %v2331_v42, %v8769_v34  ;;  %v2589_v4 = vld [vmem:[#allocation10 + $0x560] sm:$0xff]  ;;  %v2590_v28 = vld [vmem:[#allocation10 + $0x568] sm:$0xff] }
 0x2ad   :  { %v8865_v14 = vpack.c.bf16 %v2402_v7, %v2402_v7  ;;  %v8867_v15 = vpack.c.bf16 %v2401_v8, %v2401_v8  ;;  %v8879_v43 = vpack.c.bf16 %v2404_v13, %v2404_v13  ;;  %v7622_v29 = vcombine.low %v2562_v38, %v2566_v39  ;;  %v2597_v7 = vld [vmem:[#allocation10 + $0x5a0] sm:$0xff]  ;;  %v2594_v8 = vld [vmem:[#allocation10 + $0x588] sm:$0xff] }
 0x2ae   :  { %v8895_v56 = vadd.f32 %v2380_v30, %v2350_v24  ;;  %v7629_v62 = vcombine.high %v2569_v55, %v2573_v17  ;;  %v7628_v63 = vcombine.low %v2569_v55, %v2573_v17  ;;  %v7637_v34 = vcombine.high %v2577_v58, %v2581_v60  ;;  %v2606_v38 = vld [vmem:[#allocation10 + $0x5e8] sm:$0xff] }
 0x2af   :  { %5521 = vmatprep.mubr.bf16.mxu0 %v8865_v14  ;;  %5685 = vmatprep.mubr.bf16.mxu1 %v8865_v14  ;;  %v7639_v2 = vcombine.high %v2578_v61, %v2582_v54  ;;  %v7636_v31 = vcombine.low %v2577_v58, %v2581_v60  ;;  %v7638_v36 = vcombine.low %v2578_v61, %v2582_v54  ;;  %v2610_v52 = vld [vmem:[#allocation10 + $0x608] sm:$0xff]  ;;  %v2625_v60 = vld [vmem:[#allocation10 + $0x680] sm:$0xff] }
 0x2b0   :  { %5522 = vmatmul.mubr.bf16.vlgmr.msra.gmra.mrb[8].mxu0 %v8867_v15  ;;  %5686 = vmatmul.mubr.bf16.vlgmr.msra.gmra.mrb[8].mxu1 %v8867_v15  ;;  %v7645_v21 = vcombine.high %v2585_v3, %v2589_v4  ;;  %v7647_v41 = vcombine.high %v2586_v32, %v2590_v28  ;;  %v7644_v10 = vcombine.low %v2585_v3, %v2589_v4  ;;  %v2614_v30 = vld [vmem:[#allocation10 + $0x628] sm:$0xff]  ;;  %v2629_v61 = vld [vmem:[#allocation10 + $0x6a0] sm:$0xff] }
 0x2b1   :  { %5531 = vmatpush1.bf16.msra.mxu0 %v7604_v25  ;;  %5695 = vmatpush1.bf16.msra.mxu1 %v7606_v26  ;;  %v2574_v25 = vld [vmem:[#allocation10 + $0x4e8] sm:$0xff]  ;;  %v7620_v26 = vcombine.low %v2561_v27, %v2565_v33  ;;  %v7646_v11 = vcombine.low %v2586_v32, %v2590_v28  ;;  %v7653_v13 = vcombine.high %v2593_v48, %v2597_v7  ;;  %v2605_v27 = vld [vmem:[#allocation10 + $0x5e0] sm:$0xff] }
 0x2b2   :  { %5562 = vmatprep.mubr.bf16.mxu0 %v8879_v43  ;;  %5726 = vmatprep.mubr.bf16.mxu1 %v8879_v43  ;;  %v7631_v59 = vcombine.high %v2570_v20, %v2574_v25  ;;  %v7630_v0 = vcombine.low %v2570_v20, %v2574_v25  ;;  %v2602_v33 = vld [vmem:[#allocation10 + $0x5c8] sm:$0xff]  ;;  %v7652_v39 = vcombine.low %v2593_v48, %v2597_v7  ;;  %v2617_v20 = vld [vmem:[#allocation10 + $0x640] sm:$0xff] }
 0x2b3   :  { %5532 = vmatprep.subr.bf16.mxu0 %v7613_v16  ;;  %5696 = vmatprep.subr.bf16.mxu1 %v7615_v23  ;;  %v7655_v16 = vcombine.high %v2594_v8, %v2598_v9  ;;  %v2601_v23 = vld [vmem:[#allocation10 + $0x5c0] sm:$0xff]  ;;  %v7654_v40 = vcombine.low %v2594_v8, %v2598_v9  ;;  %v7663_v42 = vcombine.high %v2602_v33, %v2606_v38  ;;  %v2618_v24 = vld [vmem:[#allocation10 + $0x648] sm:$0xff] }
 0x2b4   :  { %v7661_v1 = vcombine.high %v2601_v23, %v2605_v27  ;;  %v7671_v17 = vcombine.high %v2610_v52, %v2614_v30  ;;  %v2621_v25 = vld [vmem:[#allocation10 + $0x660] sm:$0xff]  ;;  %v2626_v54 = vld [vmem:[#allocation10 + $0x688] sm:$0xff] }
 0x2b5   :  { %5533 = vmatpush1.bf16.msra.mxu0 %v7612_v45  ;;  %5697 = vmatpush1.bf16.msra.mxu1 %v7614_v51  ;;  %v2609_v45 = vld [vmem:[#allocation10 + $0x600] sm:$0xff]  ;;  %v2634_v28 = vld [vmem:[#allocation10 + $0x6c8] sm:$0xff] }
 0x2b6   :  { %5534 = vmatprep.subr.bf16.mxu0 %v7621_v18  ;;  %5698 = vmatprep.subr.bf16.mxu1 %v7623_v53  ;;  %v2613_v51 = vld [vmem:[#allocation10 + $0x620] sm:$0xff]  ;;  %v7660_v18 = vcombine.low %v2601_v23, %v2605_v27  ;;  %v7662_v53 = vcombine.low %v2602_v33, %v2606_v38  ;;  %v2642_v9 = vld [vmem:[#allocation10 + $0x708] sm:$0xff] }
 0x2b7   :  { %v7669_v55 = vcombine.high %v2609_v45, %v2613_v51  ;;  %v2633_v4 = vld [vmem:[#allocation10 + $0x6c0] sm:$0xff]  ;;  %v2650_v38 = vld [vmem:[#allocation10 + $0x748] sm:$0xff] }
 0x2b8   :  { %v2637_v32 = vld [vmem:[#allocation10 + $0x6e0] sm:$0xff] }
 0x2b9   :  { %5535 = vmatpush1.bf16.msra.mxu0 %v7620_v26  ;;  %5699 = vmatpush1.bf16.msra.mxu1 %v7622_v29  ;;  %v2622_v26 = vld [vmem:[#allocation10 + $0x668] sm:$0xff]  ;;  %v7668_v29 = vcombine.low %v2609_v45, %v2613_v51  ;;  %v2641_v7 = vld [vmem:[#allocation10 + $0x700] sm:$0xff] }
 0x2ba   :  { %5536 = vmatprep.subr.bf16.mxu0 %v7629_v62  ;;  %5700 = vmatprep.subr.bf16.mxu1 %v7631_v59  ;;  %v7670_v62 = vcombine.low %v2610_v52, %v2614_v30  ;;  %v7677_v59 = vcombine.high %v2617_v20, %v2621_v25  ;;  %v7679_v58 = vcombine.high %v2618_v24, %v2622_v26  ;;  %v2645_v8 = vld [vmem:[#allocation10 + $0x720] sm:$0xff]  ;;  %v2658_v30 = vld [vmem:[#allocation10 + $0x788] sm:$0xff] }
 0x2bb   :  { %v2649_v27 = vld [vmem:[#allocation10 + $0x740] sm:$0xff] }
 0x2bc   :  { %v2653_v33 = vld [vmem:[#allocation10 + $0x760] sm:$0xff] }
 0x2bd   :  { %5537 = vmatpush1.bf16.msra.mxu0 %v7628_v63  ;;  %5701 = vmatpush1.bf16.msra.mxu1 %v7630_v0  ;;  %v2630_v63 = vld [vmem:[#allocation10 + $0x6a8] sm:$0xff]  ;;  %v7676_v0 = vcombine.low %v2617_v20, %v2621_v25  ;;  %v2657_v51 = vld [vmem:[#allocation10 + $0x780] sm:$0xff] }
 0x2be   :  { %5538 = vmatprep.subr.bf16.mxu0 %v7637_v34  ;;  %5702 = vmatprep.subr.bf16.mxu1 %v7639_v2  ;;  %v7678_v34 = vcombine.low %v2618_v24, %v2622_v26  ;;  %v7685_v2 = vcombine.high %v2625_v60, %v2629_v61  ;;  %v7687_v3 = vcombine.high %v2626_v54, %v2630_v63  ;;  %v2661_v52 = vld [vmem:[#allocation10 + $0x7a0] sm:$0xff]  ;;  %v2666_v26 = vld [vmem:[#allocation10 + $0x7c8] sm:$0xff] }
 0x2bf   :  { %v2665_v25 = vld [vmem:[#allocation10 + $0x7c0] sm:$0xff] }
 0x2c0   :  { %v2669_v24 = vld [vmem:[#allocation10 + $0x7e0] sm:$0xff] }
 0x2c1   :  { %5539 = vmatpush1.bf16.msra.mxu0 %v7636_v31  ;;  %5703 = vmatpush1.bf16.msra.mxu1 %v7638_v36  ;;  %v2638_v31 = vld [vmem:[#allocation10 + $0x6e8] sm:$0xff]  ;;  %v7684_v36 = vcombine.low %v2625_v60, %v2629_v61  ;;  %v2673_v61 = vld [vmem:[#allocation10 + $0x800] sm:$0xff] }
 0x2c2   :  { %5540 = vmatprep.subr.bf16.mxu0 %v7645_v21  ;;  %5704 = vmatprep.subr.bf16.mxu1 %v7647_v41  ;;  %v7686_v21 = vcombine.low %v2626_v54, %v2630_v63  ;;  %v7693_v41 = vcombine.high %v2633_v4, %v2637_v32  ;;  %v7695_v48 = vcombine.high %v2634_v28, %v2638_v31  ;;  %v2677_v54 = vld [vmem:[#allocation10 + $0x820] sm:$0xff]  ;;  %v2674_v63 = vld [vmem:[#allocation10 + $0x808] sm:$0xff] }
 0x2c5   :  { %5541 = vmatpush1.bf16.msra.mxu0 %v7644_v10  ;;  %5705 = vmatpush1.bf16.msra.mxu1 %v7646_v11  ;;  %v2646_v10 = vld [vmem:[#allocation10 + $0x728] sm:$0xff]  ;;  %v7692_v11 = vcombine.low %v2633_v4, %v2637_v32  ;;  %v7733_v4 = vcombine.high %v2673_v61, %v2677_v54 }
 0x2c6   :  { %5542 = vmatprep.subr.bf16.mxu0 %v7653_v13  ;;  %5706 = vmatprep.subr.bf16.mxu1 %v7655_v16  ;;  %v7694_v13 = vcombine.low %v2634_v28, %v2638_v31  ;;  %v7701_v16 = vcombine.high %v2641_v7, %v2645_v8  ;;  %v7703_v23 = vcombine.high %v2642_v9, %v2646_v10  ;;  %v2406_v28 = vmax.f32 %v8857_v5, 0.0  ;;  %v2681_v31 = vld [vmem:[#allocation10 + $0x840] sm:$0xff]  ;;  %v2690_v5 = vld [vmem:[#allocation10 + $0x888] sm:$0xff] }
 0x2c9   :  { %5543 = vmatpush1.bf16.msra.mxu0 %v7652_v39  ;;  %5707 = vmatpush1.bf16.msra.mxu1 %v7654_v40  ;;  %v2654_v39 = vld [vmem:[#allocation10 + $0x768] sm:$0xff]  ;;  %v7700_v40 = vcombine.low %v2641_v7, %v2645_v8 }
 0x2ca   :  { %5544 = vmatprep.subr.bf16.mxu0 %v7661_v1  ;;  %5708 = vmatprep.subr.bf16.mxu1 %v7663_v42  ;;  %v7702_v1 = vcombine.low %v2642_v9, %v2646_v10  ;;  %v7709_v42 = vcombine.high %v2649_v27, %v2653_v33  ;;  %v7711_v45 = vcombine.high %v2650_v38, %v2654_v39 }
 0x2cb   :  { %v8901_v9 = vpack.c.bf16 %v2406_v28, %v2406_v28 }
 0x2cd   :  { %5545 = vmatpush1.bf16.msra.mxu0 %v7660_v18  ;;  %5709 = vmatpush1.bf16.msra.mxu1 %v7662_v53  ;;  %v2662_v18 = vld [vmem:[#allocation10 + $0x7a8] sm:$0xff]  ;;  %v7708_v53 = vcombine.low %v2649_v27, %v2653_v33 }
 0x2ce   :  { %5546 = vmatprep.subr.bf16.mxu0 %v7669_v55  ;;  %5710 = vmatprep.subr.bf16.mxu1 %v7671_v17  ;;  %v7710_v55 = vcombine.low %v2650_v38, %v2654_v39  ;;  %v7717_v17 = vcombine.high %v2657_v51, %v2661_v52  ;;  %v7719_v20 = vcombine.high %v2658_v30, %v2662_v18  ;;  %v2697_v39 = vld [vmem:[#allocation10 + $0x8c0] sm:$0xff] }
 0x2d1   :  { %5547 = vmatpush1.bf16.msra.mxu0 %v7668_v29  ;;  %5711 = vmatpush1.bf16.msra.mxu1 %v7670_v62  ;;  %v2670_v29 = vld [vmem:[#allocation10 + $0x7e8] sm:$0xff]  ;;  %v7716_v62 = vcombine.low %v2657_v51, %v2661_v52 }
 0x2d2   :  { %5548 = vmatprep.subr.bf16.mxu0 %v7677_v59  ;;  %5712 = vmatprep.subr.bf16.mxu1 %v7679_v58  ;;  %v7718_v59 = vcombine.low %v2658_v30, %v2662_v18  ;;  %v7725_v58 = vcombine.high %v2665_v25, %v2669_v24  ;;  %v7727_v60 = vcombine.high %v2666_v26, %v2670_v29  ;;  %v2705_v18 = vld [vmem:[#allocation10 + $0x900] sm:$0xff] }
 0x2d5   :  { %5549 = vmatpush1.bf16.msra.mxu0 %v7676_v0  ;;  %5713 = vmatpush1.bf16.msra.mxu1 %v7678_v34  ;;  %v2678_v0 = vld [vmem:[#allocation10 + $0x828] sm:$0xff]  ;;  %v7724_v34 = vcombine.low %v2665_v25, %v2669_v24 }
 0x2d6   :  { %5550 = vmatprep.subr.bf16.mxu0 %v7685_v2  ;;  %5714 = vmatprep.subr.bf16.mxu1 %v7687_v3  ;;  %v7726_v2 = vcombine.low %v2666_v26, %v2670_v29  ;;  %v2403_v3 = vmax.f32 %v8855_v57, 0.0  ;;  %v7735_v32 = vcombine.high %v2674_v63, %v2678_v0  ;;  %v7734_v8 = vcombine.low %v2674_v63, %v2678_v0  ;;  %v2713_v29 = vld [vmem:[#allocation10 + $0x940] sm:$0xff] }
 0x2d7   :  { %v2721_v0 = vld [vmem:[#allocation10 + $0x980] sm:$0xff] }
 0x2d8   :  { %v8899_v7 = vpack.c.bf16 %v2403_v3, %v2403_v3  ;;  %v2726_v3 = vld [vmem:[#allocation10 + $0x9a8] sm:$0xff] }
 0x2d9   :  { %5551 = vmatpush1.bf16.msra.mxu0 %v7684_v36  ;;  %5715 = vmatpush1.bf16.msra.mxu1 %v7686_v21  ;;  %v2685_v36 = vld [vmem:[#allocation10 + $0x860] sm:$0xff]  ;;  %v2682_v21 = vld [vmem:[#allocation10 + $0x848] sm:$0xff] }
 0x2da   :  { %5552 = vmatprep.subr.bf16.mxu0 %v7693_v41  ;;  %5716 = vmatprep.subr.bf16.mxu1 %v7695_v48  ;;  %v2686_v41 = vld [vmem:[#allocation10 + $0x868] sm:$0xff]  ;;  %v7732_v48 = vcombine.low %v2673_v61, %v2677_v54  ;;  %v7741_v10 = vcombine.high %v2681_v31, %v2685_v36 }
 0x2db   :  { %v7743_v57 = vcombine.high %v2682_v21, %v2686_v41  ;;  %v7742_v27 = vcombine.low %v2682_v21, %v2686_v41  ;;  %v2733_v21 = vld [vmem:[#allocation10 + $0x9e0] sm:$0xff]  ;;  %v2730_v41 = vld [vmem:[#allocation10 + $0x9c8] sm:$0xff] }
 0x2dd   :  { %5553 = vmatpush1.bf16.msra.mxu0 %v7692_v11  ;;  %5717 = vmatpush1.bf16.msra.mxu1 %v7694_v13  ;;  %v2689_v11 = vld [vmem:[#allocation10 + $0x880] sm:$0xff] }
 0x2de   :  { %5554 = vmatprep.subr.bf16.mxu0 %v7701_v16  ;;  %5718 = vmatprep.subr.bf16.mxu1 %v7703_v23  ;;  %v2693_v13 = vld [vmem:[#allocation10 + $0x8a0] sm:$0xff]  ;;  %v2694_v16 = vld [vmem:[#allocation10 + $0x8a8] sm:$0xff]  ;;  %v7740_v23 = vcombine.low %v2681_v31, %v2685_v36 }
 0x2df   :  { %v7749_v33 = vcombine.high %v2689_v11, %v2693_v13  ;;  %v7751_v38 = vcombine.high %v2690_v5, %v2694_v16  ;;  %v7750_v51 = vcombine.low %v2690_v5, %v2694_v16  ;;  %v2729_v36 = vld [vmem:[#allocation10 + $0x9c0] sm:$0xff]  ;;  %v2738_v16 = vld [vmem:[#allocation10 + $0xa08] sm:$0xff] }
 0x2e0   :  { %v2741_v5 = vld [vmem:[#allocation10 + $0xa20] sm:$0xff] }
 0x2e1   :  { %5555 = vmatpush1.bf16.msra.mxu0 %v7700_v40  ;;  %5719 = vmatpush1.bf16.msra.mxu1 %v7702_v1  ;;  %v2701_v40 = vld [vmem:[#allocation10 + $0x8e0] sm:$0xff]  ;;  %v2698_v1 = vld [vmem:[#allocation10 + $0x8c8] sm:$0xff] }
 0x2e2   :  { %5556 = vmatprep.subr.bf16.mxu0 %v7709_v42  ;;  %5720 = vmatprep.subr.bf16.mxu1 %v7711_v45  ;;  %v2702_v42 = vld [vmem:[#allocation10 + $0x8e8] sm:$0xff]  ;;  %v7748_v45 = vcombine.low %v2689_v11, %v2693_v13  ;;  %v7757_v52 = vcombine.high %v2697_v39, %v2701_v40  ;;  %v2737_v13 = vld [vmem:[#allocation10 + $0xa00] sm:$0xff] }
 0x2e3   :  { %v7759_v30 = vcombine.high %v2698_v1, %v2702_v42  ;;  %v7758_v25 = vcombine.low %v2698_v1, %v2702_v42  ;;  %v2749_v1 = vld [vmem:[#allocation10 + $0xa60] sm:$0xff]  ;;  %v2746_v42 = vld [vmem:[#allocation10 + $0xa48] sm:$0xff] }
 0x2e5   :  { %5557 = vmatpush1.bf16.msra.mxu0 %v7708_v53  ;;  %5721 = vmatpush1.bf16.msra.mxu1 %v7710_v55  ;;  %v2709_v53 = vld [vmem:[#allocation10 + $0x920] sm:$0xff]  ;;  %v2706_v55 = vld [vmem:[#allocation10 + $0x908] sm:$0xff] }
 0x2e6   :  { %5558 = vmatprep.subr.bf16.mxu0 %v7717_v17  ;;  %5722 = vmatprep.subr.bf16.mxu1 %v7719_v20  ;;  %v2710_v17 = vld [vmem:[#allocation10 + $0x928] sm:$0xff]  ;;  %v7756_v20 = vcombine.low %v2697_v39, %v2701_v40  ;;  %v7765_v24 = vcombine.high %v2705_v18, %v2709_v53  ;;  %v2745_v40 = vld [vmem:[#allocation10 + $0xa40] sm:$0xff] }
 0x2e7   :  { %v7767_v26 = vcombine.high %v2706_v55, %v2710_v17  ;;  %v7766_v61 = vcombine.low %v2706_v55, %v2710_v17  ;;  %v2757_v55 = vld [vmem:[#allocation10 + $0xaa0] sm:$0xff]  ;;  %v2754_v17 = vld [vmem:[#allocation10 + $0xa88] sm:$0xff] }
 0x2e9   :  { %5559 = vmatpush1.bf16.msra.mxu0 %v7716_v62  ;;  %5723 = vmatpush1.bf16.msra.mxu1 %v7718_v59  ;;  %v2717_v62 = vld [vmem:[#allocation10 + $0x960] sm:$0xff]  ;;  %v2714_v59 = vld [vmem:[#allocation10 + $0x948] sm:$0xff] }
 0x2ea   :  { %5560 = vmatprep.subr.bf16.mxu0 %v7725_v58  ;;  %5724 = vmatprep.subr.bf16.mxu1 %v7727_v60  ;;  %v2718_v58 = vld [vmem:[#allocation10 + $0x968] sm:$0xff]  ;;  %v7764_v60 = vcombine.low %v2705_v18, %v2709_v53  ;;  %v7773_v54 = vcombine.high %v2713_v29, %v2717_v62  ;;  %v2753_v53 = vld [vmem:[#allocation10 + $0xa80] sm:$0xff] }
 0x2eb   :  { %v7775_v63 = vcombine.high %v2714_v59, %v2718_v58 }
 0x2ed   :  { %5561 = vmatpush1.bf16.msra.mxu0 %v7724_v34  ;;  %5725 = vmatpush1.bf16.msra.mxu1 %v7726_v2  ;;  %v2725_v34 = vld [vmem:[#allocation10 + $0x9a0] sm:$0xff]  ;;  %v2722_v2 = vld [vmem:[#allocation10 + $0x988] sm:$0xff] }
 0x2ee   :  { %5571 = vmatprep.subr.bf16.mxu0 %v7733_v4  ;;  %5735 = vmatprep.subr.bf16.mxu1 %v7735_v32  ;;  %v7772_v4 = vcombine.low %v2713_v29, %v2717_v62  ;;  %v7774_v32 = vcombine.low %v2714_v59, %v2718_v58  ;;  %v7781_v28 = vcombine.high %v2721_v0, %v2725_v34  ;;  %v2761_v62 = vld [vmem:[#allocation10 + $0xac0] sm:$0xff]  ;;  %v2762_v58 = vld [vmem:[#allocation10 + $0xac8] sm:$0xff] }
 0x2ef   :  { %v7783_v31 = vcombine.high %v2722_v2, %v2726_v3  ;;  %v2765_v59 = vld [vmem:[#allocation10 + $0xae0] sm:$0xff] }
 0x2f0   :  { %5563 = vmatmul.mubr.bf16.vlgmr.msra.gmra.mrb[8].mxu0 %v8899_v7  ;;  %5727 = vmatmul.mubr.bf16.vlgmr.msra.gmra.mrb[8].mxu1 %v8899_v7 }
 0x2f1   :  { %5572 = vmatpush1.bf16.msra.mxu0 %v7732_v48  ;;  %5603 = vmatprep.mubr.bf16.mxu0 %v8901_v9  ;;  %v2734_v48 = vld [vmem:[#allocation10 + $0x9e8] sm:$0xff] }
 0x2f2   :  { %5736 = vmatpush1.bf16.msra.mxu1 %v7734_v8  ;;  %5767 = vmatprep.mubr.bf16.mxu1 %v8901_v9  ;;  %v7780_v8 = vcombine.low %v2721_v0, %v2725_v34  ;;  %v7791_v11 = vcombine.high %v2730_v41, %v2734_v48  ;;  %v2769_v34 = vld [vmem:[#allocation10 + $0xb00] sm:$0xff] }
 0x2f3   :  { %5573 = vmatprep.subr.bf16.mxu0 %v7741_v10  ;;  %5737 = vmatprep.subr.bf16.mxu1 %v7743_v57  ;;  %v7782_v10 = vcombine.low %v2722_v2, %v2726_v3  ;;  %v7789_v57 = vcombine.high %v2729_v36, %v2733_v21  ;;  %v2773_v2 = vld [vmem:[#allocation10 + $0xb20] sm:$0xff]  ;;  %v2770_v3 = vld [vmem:[#allocation10 + $0xb08] sm:$0xff] }
 0x2f5   :  { %5574 = vmatpush1.bf16.msra.mxu0 %v7740_v23  ;;  %v2742_v23 = vld [vmem:[#allocation10 + $0xa28] sm:$0xff] }
 0x2f6   :  { %5738 = vmatpush1.bf16.msra.mxu1 %v7742_v27  ;;  %5575 = vmatprep.subr.bf16.mxu0 %v7749_v33  ;;  %v7788_v27 = vcombine.low %v2729_v36, %v2733_v21  ;;  %v7790_v33 = vcombine.low %v2730_v41, %v2734_v48  ;;  %v7799_v39 = vcombine.high %v2738_v16, %v2742_v23  ;;  %v2777_v21 = vld [vmem:[#allocation10 + $0xb40] sm:$0xff]  ;;  %v2778_v48 = vld [vmem:[#allocation10 + $0xb48] sm:$0xff] }
 0x2f7   :  { %5739 = vmatprep.subr.bf16.mxu1 %v7751_v38  ;;  %v7797_v38 = vcombine.high %v2737_v13, %v2741_v5  ;;  %v2781_v41 = vld [vmem:[#allocation10 + $0xb60] sm:$0xff] }
 0x2f9   :  { %5576 = vmatpush1.bf16.msra.mxu0 %v7748_v45  ;;  %v2750_v45 = vld [vmem:[#allocation10 + $0xa68] sm:$0xff] }
 0x2fa   :  { %5740 = vmatpush1.bf16.msra.mxu1 %v7750_v51  ;;  %5577 = vmatprep.subr.bf16.mxu0 %v7757_v52  ;;  %v7796_v51 = vcombine.low %v2737_v13, %v2741_v5  ;;  %v7798_v52 = vcombine.low %v2738_v16, %v2742_v23  ;;  %v7807_v18 = vcombine.high %v2746_v42, %v2750_v45  ;;  %v2785_v5 = vld [vmem:[#allocation10 + $0xb80] sm:$0xff]  ;;  %v2786_v23 = vld [vmem:[#allocation10 + $0xb88] sm:$0xff] }
 0x2fb   :  { %5741 = vmatprep.subr.bf16.mxu1 %v7759_v30  ;;  %v7805_v30 = vcombine.high %v2745_v40, %v2749_v1  ;;  %v2789_v16 = vld [vmem:[#allocation10 + $0xba0] sm:$0xff] }
 0x2fd   :  { %5578 = vmatpush1.bf16.msra.mxu0 %v7756_v20  ;;  %v2758_v20 = vld [vmem:[#allocation10 + $0xaa8] sm:$0xff] }
 0x2fe   :  { %5742 = vmatpush1.bf16.msra.mxu1 %v7758_v25  ;;  %5579 = vmatprep.subr.bf16.mxu0 %v7765_v24  ;;  %v7804_v25 = vcombine.low %v2745_v40, %v2749_v1  ;;  %v7806_v24 = vcombine.low %v2746_v42, %v2750_v45  ;;  %v7815_v29 = vcombine.high %v2754_v17, %v2758_v20  ;;  %v2793_v1 = vld [vmem:[#allocation10 + $0xbc0] sm:$0xff]  ;;  %v2794_v45 = vld [vmem:[#allocation10 + $0xbc8] sm:$0xff] }
 0x2ff   :  { %5743 = vmatprep.subr.bf16.mxu1 %v7767_v26  ;;  %v7813_v26 = vcombine.high %v2753_v53, %v2757_v55  ;;  %v2797_v42 = vld [vmem:[#allocation10 + $0xbe0] sm:$0xff] }
 0x301   :  { %5580 = vmatpush1.bf16.msra.mxu0 %v7764_v60  ;;  %v2766_v60 = vld [vmem:[#allocation10 + $0xae8] sm:$0xff] }
 0x302   :  { %5744 = vmatpush1.bf16.msra.mxu1 %v7766_v61  ;;  %5581 = vmatprep.subr.bf16.mxu0 %v7773_v54  ;;  %v7812_v61 = vcombine.low %v2753_v53, %v2757_v55  ;;  %v7814_v54 = vcombine.low %v2754_v17, %v2758_v20  ;;  %v7823_v0 = vcombine.high %v2762_v58, %v2766_v60  ;;  %v2801_v55 = vld [vmem:[#allocation10 + $0xc00] sm:$0xff]  ;;  %v2802_v20 = vld [vmem:[#allocation10 + $0xc08] sm:$0xff] }
 0x303   :  { %5745 = vmatprep.subr.bf16.mxu1 %v7775_v63  ;;  %v7821_v63 = vcombine.high %v2761_v62, %v2765_v59  ;;  %v2805_v17 = vld [vmem:[#allocation10 + $0xc20] sm:$0xff] }
 0x305   :  { %5582 = vmatpush1.bf16.msra.mxu0 %v7772_v4  ;;  %v2774_v4 = vld [vmem:[#allocation10 + $0xb28] sm:$0xff] }
 0x306   :  { %5746 = vmatpush1.bf16.msra.mxu1 %v7774_v32  ;;  %5583 = vmatprep.subr.bf16.mxu0 %v7781_v28  ;;  %v7820_v32 = vcombine.low %v2761_v62, %v2765_v59  ;;  %v7822_v28 = vcombine.low %v2762_v58, %v2766_v60  ;;  %v7831_v36 = vcombine.high %v2770_v3, %v2774_v4  ;;  %v2408_v58 = vmax.f32 %v8853_v35, 0.0  ;;  %v2809_v60 = vld [vmem:[#allocation10 + $0xc40] sm:$0xff] }
 0x307   :  { %5747 = vmatprep.subr.bf16.mxu1 %v7783_v31  ;;  %v7829_v31 = vcombine.high %v2769_v34, %v2773_v2  ;;  %v7861_v62 = vcombine.high %v2801_v55, %v2805_v17 }
 0x309   :  { %5584 = vmatpush1.bf16.msra.mxu0 %v7780_v8  ;;  %v2782_v8 = vld [vmem:[#allocation10 + $0xb68] sm:$0xff] }
 0x30a   :  { %5748 = vmatpush1.bf16.msra.mxu1 %v7782_v10  ;;  %5585 = vmatprep.subr.bf16.mxu0 %v7789_v57  ;;  %v7828_v10 = vcombine.low %v2769_v34, %v2773_v2  ;;  %v7830_v57 = vcombine.low %v2770_v3, %v2774_v4  ;;  %v7839_v13 = vcombine.high %v2778_v48, %v2782_v8  ;;  %v2817_v4 = vld [vmem:[#allocation10 + $0xc80] sm:$0xff] }
 0x30b   :  { %5749 = vmatprep.subr.bf16.mxu1 %v7791_v11  ;;  %v7837_v11 = vcombine.high %v2777_v21, %v2781_v41 }
 0x30d   :  { %5586 = vmatpush1.bf16.msra.mxu0 %v7788_v27  ;;  %v2790_v27 = vld [vmem:[#allocation10 + $0xba8] sm:$0xff] }
 0x30e   :  { %5750 = vmatpush1.bf16.msra.mxu1 %v7790_v33  ;;  %5587 = vmatprep.subr.bf16.mxu0 %v7797_v38  ;;  %v7836_v33 = vcombine.low %v2777_v21, %v2781_v41  ;;  %v7838_v38 = vcombine.low %v2778_v48, %v2782_v8  ;;  %v7847_v40 = vcombine.high %v2786_v23, %v2790_v27  ;;  %v2825_v8 = vld [vmem:[#allocation10 + $0xcc0] sm:$0xff] }
 0x30f   :  { %5751 = vmatprep.subr.bf16.mxu1 %v7799_v39  ;;  %v7845_v39 = vcombine.high %v2785_v5, %v2789_v16 }
 0x311   :  { %5588 = vmatpush1.bf16.msra.mxu0 %v7796_v51  ;;  %v2798_v51 = vld [vmem:[#allocation10 + $0xbe8] sm:$0xff] }
 0x312   :  { %5752 = vmatpush1.bf16.msra.mxu1 %v7798_v52  ;;  %5589 = vmatprep.subr.bf16.mxu0 %v7805_v30  ;;  %v7844_v52 = vcombine.low %v2785_v5, %v2789_v16  ;;  %v7846_v30 = vcombine.low %v2786_v23, %v2790_v27  ;;  %v7855_v53 = vcombine.high %v2794_v45, %v2798_v51  ;;  %v2833_v27 = vld [vmem:[#allocation10 + $0xd00] sm:$0xff] }
 0x313   :  { %5753 = vmatprep.subr.bf16.mxu1 %v7807_v18  ;;  %v7853_v18 = vcombine.high %v2793_v1, %v2797_v42 }
 0x315   :  { %5590 = vmatpush1.bf16.msra.mxu0 %v7804_v25  ;;  %v2806_v25 = vld [vmem:[#allocation10 + $0xc28] sm:$0xff] }
 0x316   :  { %5754 = vmatpush1.bf16.msra.mxu1 %v7806_v24  ;;  %5591 = vmatprep.subr.bf16.mxu0 %v7813_v26  ;;  %v7852_v24 = vcombine.low %v2793_v1, %v2797_v42  ;;  %v7854_v26 = vcombine.low %v2794_v45, %v2798_v51  ;;  %v7863_v59 = vcombine.high %v2802_v20, %v2806_v25  ;;  %v2841_v51 = vld [vmem:[#allocation10 + $0xd40] sm:$0xff] }
 0x317   :  { %5755 = vmatprep.subr.bf16.mxu1 %v7815_v29  ;;  %v2405_v29 = vmax.f32 %v8892_v22, 0.0  ;;  %v7862_v2 = vcombine.low %v2802_v20, %v2806_v25  ;;  %v2821_v22 = vld [vmem:[#allocation10 + $0xca0] sm:$0xff] }
 0x318   :  { %v7877_v41 = vcombine.high %v2817_v4, %v2821_v22  ;;  %v2849_v25 = vld [vmem:[#allocation10 + $0xd80] sm:$0xff] }
 0x319   :  { %5592 = vmatpush1.bf16.msra.mxu0 %v7812_v61  ;;  %v2813_v61 = vld [vmem:[#allocation10 + $0xc60] sm:$0xff]  ;;  %v8909_v34 = vpack.c.bf16 %v2405_v29, %v2405_v29  ;;  %v2854_v29 = vld [vmem:[#allocation10 + $0xda8] sm:$0xff] }
 0x31a   :  { %5756 = vmatpush1.bf16.msra.mxu1 %v7814_v54  ;;  %5593 = vmatprep.subr.bf16.mxu0 %v7821_v63  ;;  %v7860_v54 = vcombine.low %v2801_v55, %v2805_v17  ;;  %v2810_v63 = vld [vmem:[#allocation10 + $0xc48] sm:$0xff]  ;;  %v7869_v3 = vcombine.high %v2809_v60, %v2813_v61 }
 0x31b   :  { %5757 = vmatprep.subr.bf16.mxu1 %v7823_v0  ;;  %v2814_v0 = vld [vmem:[#allocation10 + $0xc68] sm:$0xff] }
 0x31c   :  { %v7871_v35 = vcombine.high %v2810_v63, %v2814_v0  ;;  %v7870_v21 = vcombine.low %v2810_v63, %v2814_v0  ;;  %v2858_v63 = vld [vmem:[#allocation10 + $0xdc8] sm:$0xff] }
 0x31d   :  { %5594 = vmatpush1.bf16.msra.mxu0 %v7820_v32  ;;  %v8912_v32 = vpack.c.bf16 %v2408_v58, %v2408_v58  ;;  %v2862_v0 = vld [vmem:[#allocation10 + $0xde8] sm:$0xff] }
 0x31e   :  { %5758 = vmatpush1.bf16.msra.mxu1 %v7822_v28  ;;  %5595 = vmatprep.subr.bf16.mxu0 %v7829_v31  ;;  %v2818_v28 = vld [vmem:[#allocation10 + $0xc88] sm:$0xff] }
 0x31f   :  { %5759 = vmatprep.subr.bf16.mxu1 %v7831_v36  ;;  %v2822_v31 = vld [vmem:[#allocation10 + $0xca8] sm:$0xff]  ;;  %v7868_v36 = vcombine.low %v2809_v60, %v2813_v61  ;;  %v2857_v61 = vld [vmem:[#allocation10 + $0xdc0] sm:$0xff] }
 0x320   :  { %v7879_v48 = vcombine.high %v2818_v28, %v2822_v31  ;;  %v7878_v5 = vcombine.low %v2818_v28, %v2822_v31  ;;  %v2869_v28 = vld [vmem:[#allocation10 + $0xe20] sm:$0xff]  ;;  %v2866_v31 = vld [vmem:[#allocation10 + $0xe08] sm:$0xff] }
 0x321   :  { %5596 = vmatpush1.bf16.msra.mxu0 %v7828_v10  ;;  %v2829_v10 = vld [vmem:[#allocation10 + $0xce0] sm:$0xff] }
 0x322   :  { %5760 = vmatpush1.bf16.msra.mxu1 %v7830_v57  ;;  %5597 = vmatprep.subr.bf16.mxu0 %v7837_v11  ;;  %v2826_v57 = vld [vmem:[#allocation10 + $0xcc8] sm:$0xff]  ;;  %v7885_v16 = vcombine.high %v2825_v8, %v2829_v10 }
 0x323   :  { %5761 = vmatprep.subr.bf16.mxu1 %v7839_v13  ;;  %v2830_v11 = vld [vmem:[#allocation10 + $0xce8] sm:$0xff]  ;;  %v7876_v13 = vcombine.low %v2817_v4, %v2821_v22  ;;  %v7919_v22 = vcombine.high %v2858_v63, %v2862_v0 }
 0x324   :  { %v7887_v23 = vcombine.high %v2826_v57, %v2830_v11  ;;  %v7886_v1 = vcombine.low %v2826_v57, %v2830_v11  ;;  %v2877_v57 = vld [vmem:[#allocation10 + $0xe60] sm:$0xff]  ;;  %v2874_v11 = vld [vmem:[#allocation10 + $0xe48] sm:$0xff] }
 0x325   :  { %5598 = vmatpush1.bf16.msra.mxu0 %v7836_v33  ;;  %v2837_v33 = vld [vmem:[#allocation10 + $0xd20] sm:$0xff] }
 0x326   :  { %5762 = vmatpush1.bf16.msra.mxu1 %v7838_v38  ;;  %5599 = vmatprep.subr.bf16.mxu0 %v7845_v39  ;;  %v2834_v38 = vld [vmem:[#allocation10 + $0xd08] sm:$0xff]  ;;  %v7893_v42 = vcombine.high %v2833_v27, %v2837_v33 }
 0x327   :  { %5763 = vmatprep.subr.bf16.mxu1 %v7847_v40  ;;  %v2838_v39 = vld [vmem:[#allocation10 + $0xd28] sm:$0xff]  ;;  %v7884_v40 = vcombine.low %v2825_v8, %v2829_v10  ;;  %v2873_v10 = vld [vmem:[#allocation10 + $0xe40] sm:$0xff] }
 0x328   :  { %v7895_v45 = vcombine.high %v2834_v38, %v2838_v39  ;;  %v7894_v55 = vcombine.low %v2834_v38, %v2838_v39  ;;  %v2885_v38 = vld [vmem:[#allocation10 + $0xea0] sm:$0xff]  ;;  %v2882_v39 = vld [vmem:[#allocation10 + $0xe88] sm:$0xff] }
 0x329   :  { %5600 = vmatpush1.bf16.msra.mxu0 %v7844_v52  ;;  %v2845_v52 = vld [vmem:[#allocation10 + $0xd60] sm:$0xff] }
 0x32a   :  { %5764 = vmatpush1.bf16.msra.mxu1 %v7846_v30  ;;  %5601 = vmatprep.subr.bf16.mxu0 %v7853_v18  ;;  %v2842_v30 = vld [vmem:[#allocation10 + $0xd48] sm:$0xff]  ;;  %v7901_v17 = vcombine.high %v2841_v51, %v2845_v52 }
 0x32b   :  { %5765 = vmatprep.subr.bf16.mxu1 %v7855_v53  ;;  %v2846_v18 = vld [vmem:[#allocation10 + $0xd68] sm:$0xff]  ;;  %v7892_v53 = vcombine.low %v2833_v27, %v2837_v33  ;;  %v2881_v33 = vld [vmem:[#allocation10 + $0xe80] sm:$0xff] }
 0x32c   :  { %v7903_v20 = vcombine.high %v2842_v30, %v2846_v18 }
 0x32d   :  { %5602 = vmatpush1.bf16.msra.mxu0 %v7852_v24  ;;  %v2853_v24 = vld [vmem:[#allocation10 + $0xda0] sm:$0xff] }
 0x32e   :  { %5766 = vmatpush1.bf16.msra.mxu1 %v7854_v26  ;;  %5612 = vmatprep.subr.bf16.mxu0 %v7861_v62  ;;  %v2850_v26 = vld [vmem:[#allocation10 + $0xd88] sm:$0xff]  ;;  %v7900_v62 = vcombine.low %v2841_v51, %v2845_v52  ;;  %v7909_v58 = vcombine.high %v2849_v25, %v2853_v24  ;;  %v2889_v52 = vld [vmem:[#allocation10 + $0xec0] sm:$0xff] }
 0x32f   :  { %5776 = vmatprep.subr.bf16.mxu1 %v7863_v59  ;;  %v7902_v59 = vcombine.low %v2842_v30, %v2846_v18  ;;  %v7911_v60 = vcombine.high %v2850_v26, %v2854_v29  ;;  %v2893_v30 = vld [vmem:[#allocation10 + $0xee0] sm:$0xff]  ;;  %v2890_v18 = vld [vmem:[#allocation10 + $0xec8] sm:$0xff] }
 0x330   :  { %5604 = vmatmul.mubr.bf16.vlgmr.msra.gmra.mrb[8].mxu0 %v8909_v34 }
 0x331   :  { %5768 = vmatmul.mubr.bf16.vlgmr.msra.gmra.mrb[8].mxu1 %v8909_v34  ;;  %5613 = vmatpush1.bf16.msra.mxu0 %v7860_v54  ;;  %v2861_v54 = vld [vmem:[#allocation10 + $0xde0] sm:$0xff] }
 0x332   :  { %5644 = vmatprep.mubr.bf16.mxu0 %v8912_v32  ;;  %5777 = vmatpush1.bf16.msra.mxu1 %v7862_v2  ;;  %v7908_v2 = vcombine.low %v2849_v25, %v2853_v24  ;;  %v7917_v4 = vcombine.high %v2857_v61, %v2861_v54  ;;  %v2897_v24 = vld [vmem:[#allocation10 + $0xf00] sm:$0xff] }
 0x333   :  { %5808 = vmatprep.mubr.bf16.mxu1 %v8912_v32  ;;  %5614 = vmatprep.subr.bf16.mxu0 %v7869_v3  ;;  %v7910_v3 = vcombine.low %v2850_v26, %v2854_v29  ;;  %v2901_v26 = vld [vmem:[#allocation10 + $0xf20] sm:$0xff]  ;;  %v2898_v29 = vld [vmem:[#allocation10 + $0xf08] sm:$0xff] }
 0x334   :  { %5778 = vmatprep.subr.bf16.mxu1 %v7871_v35  ;;  %v2865_v35 = vld [vmem:[#allocation10 + $0xe00] sm:$0xff] }
 0x335   :  { %5615 = vmatpush1.bf16.msra.mxu0 %v7868_v36  ;;  %v2870_v36 = vld [vmem:[#allocation10 + $0xe28] sm:$0xff] }
 0x336   :  { %5779 = vmatpush1.bf16.msra.mxu1 %v7870_v21  ;;  %5616 = vmatprep.subr.bf16.mxu0 %v7877_v41  ;;  %v7916_v21 = vcombine.low %v2857_v61, %v2861_v54  ;;  %v7918_v41 = vcombine.low %v2858_v63, %v2862_v0  ;;  %v7927_v8 = vcombine.high %v2866_v31, %v2870_v36  ;;  %v2905_v54 = vld [vmem:[#allocation10 + $0xf40] sm:$0xff]  ;;  %v2906_v0 = vld [vmem:[#allocation10 + $0xf48] sm:$0xff] }
 0x337   :  { %5780 = vmatprep.subr.bf16.mxu1 %v7879_v48  ;;  %v7925_v48 = vcombine.high %v2865_v35, %v2869_v28  ;;  %v2909_v63 = vld [vmem:[#allocation10 + $0xf60] sm:$0xff] }
 0x339   :  { %5617 = vmatpush1.bf16.msra.mxu0 %v7876_v13  ;;  %v2878_v13 = vld [vmem:[#allocation10 + $0xe68] sm:$0xff] }
 0x33a   :  { %5781 = vmatpush1.bf16.msra.mxu1 %v7878_v5  ;;  %5618 = vmatprep.subr.bf16.mxu0 %v7885_v16  ;;  %v7924_v5 = vcombine.low %v2865_v35, %v2869_v28  ;;  %v7926_v16 = vcombine.low %v2866_v31, %v2870_v36  ;;  %v7935_v27 = vcombine.high %v2874_v11, %v2878_v13  ;;  %v2913_v28 = vld [vmem:[#allocation10 + $0xf80] sm:$0xff]  ;;  %v2914_v36 = vld [vmem:[#allocation10 + $0xf88] sm:$0xff] }
 0x33b   :  { %5782 = vmatprep.subr.bf16.mxu1 %v7887_v23  ;;  %v7933_v23 = vcombine.high %v2873_v10, %v2877_v57  ;;  %v2917_v31 = vld [vmem:[#allocation10 + $0xfa0] sm:$0xff] }
 0x33d   :  { %5619 = vmatpush1.bf16.msra.mxu0 %v7884_v40  ;;  %v2886_v40 = vld [vmem:[#allocation10 + $0xea8] sm:$0xff] }
 0x33e   :  { %5783 = vmatpush1.bf16.msra.mxu1 %v7886_v1  ;;  %5620 = vmatprep.subr.bf16.mxu0 %v7893_v42  ;;  %v7932_v1 = vcombine.low %v2873_v10, %v2877_v57  ;;  %v7934_v42 = vcombine.low %v2874_v11, %v2878_v13  ;;  %v7943_v51 = vcombine.high %v2882_v39, %v2886_v40  ;;  %v2921_v57 = vld [vmem:[#allocation10 + $0xfc0] sm:$0xff]  ;;  %v2922_v13 = vld [vmem:[#allocation10 + $0xfc8] sm:$0xff] }
 0x33f   :  { %5784 = vmatprep.subr.bf16.mxu1 %v7895_v45  ;;  %v7941_v45 = vcombine.high %v2881_v33, %v2885_v38  ;;  %v2925_v11 = vld [vmem:[#allocation10 + $0xfe0] sm:$0xff] }
 0x341   :  { %5621 = vmatpush1.bf16.msra.mxu0 %v7892_v53  ;;  %v2894_v53 = vld [vmem:[#allocation10 + $0xee8] sm:$0xff] }
 0x342   :  { %5785 = vmatpush1.bf16.msra.mxu1 %v7894_v55  ;;  %5622 = vmatprep.subr.bf16.mxu0 %v7901_v17  ;;  %v7940_v55 = vcombine.low %v2881_v33, %v2885_v38  ;;  %v7942_v17 = vcombine.low %v2882_v39, %v2886_v40  ;;  %v7951_v25 = vcombine.high %v2890_v18, %v2894_v53  ;;  %v2419_v38 = vld [vmem:[#allocation10 + $0x10] sm:$0xff]  ;;  %v2420_v40 = vld [vmem:[#allocation10 + $0x18] sm:$0xff] }
 0x343   :  { %5786 = vmatprep.subr.bf16.mxu1 %v7903_v20  ;;  %v7949_v20 = vcombine.high %v2889_v52, %v2893_v30  ;;  %v2423_v39 = vld [vmem:[#allocation10 + $0x30] sm:$0xff] }
 0x345   :  { %5623 = vmatpush1.bf16.msra.mxu0 %v7900_v62  ;;  %v2902_v62 = vld [vmem:[#allocation10 + $0xf28] sm:$0xff] }
 0x346   :  { %5787 = vmatpush1.bf16.msra.mxu1 %v7902_v59  ;;  %5624 = vmatprep.subr.bf16.mxu0 %v7909_v58  ;;  %v7948_v59 = vcombine.low %v2889_v52, %v2893_v30  ;;  %v7950_v58 = vcombine.low %v2890_v18, %v2894_v53  ;;  %v7959_v61 = vcombine.high %v2898_v29, %v2902_v62  ;;  %v2427_v18 = vld [vmem:[#allocation10 + $0x50] sm:$0xff] }
 0x347   :  { %5788 = vmatprep.subr.bf16.mxu1 %v7911_v60  ;;  %v7957_v60 = vcombine.high %v2897_v24, %v2901_v26  ;;  %v7481_v52 = vcombine.high %v2419_v38, %v2423_v39  ;;  %v2431_v53 = vld [vmem:[#allocation10 + $0x70] sm:$0xff] }
 0x349   :  { %5625 = vmatpush1.bf16.msra.mxu0 %v7908_v2  ;;  %v2910_v2 = vld [vmem:[#allocation10 + $0xf68] sm:$0xff] }
 0x34a   :  { %5789 = vmatpush1.bf16.msra.mxu1 %v7910_v3  ;;  %5626 = vmatprep.subr.bf16.mxu0 %v7917_v4  ;;  %v7956_v3 = vcombine.low %v2897_v24, %v2901_v26  ;;  %v7958_v4 = vcombine.low %v2898_v29, %v2902_v62  ;;  %v7967_v35 = vcombine.high %v2906_v0, %v2910_v2  ;;  %v2435_v29 = vld [vmem:[#allocation10 + $0x90] sm:$0xff] }
 0x34b   :  { %5790 = vmatprep.subr.bf16.mxu1 %v7919_v22  ;;  %v7965_v22 = vcombine.high %v2905_v54, %v2909_v63  ;;  %v7489_v26 = vcombine.high %v2427_v18, %v2431_v53  ;;  %v2439_v62 = vld [vmem:[#allocation10 + $0xb0] sm:$0xff] }
 0x34d   :  { %5627 = vmatpush1.bf16.msra.mxu0 %v7916_v21  ;;  %v2918_v21 = vld [vmem:[#allocation10 + $0xfa8] sm:$0xff] }
 0x34e   :  { %5791 = vmatpush1.bf16.msra.mxu1 %v7918_v41  ;;  %5628 = vmatprep.subr.bf16.mxu0 %v7925_v48  ;;  %v7964_v41 = vcombine.low %v2905_v54, %v2909_v63  ;;  %v7966_v48 = vcombine.low %v2906_v0, %v2910_v2  ;;  %v7975_v10 = vcombine.high %v2914_v36, %v2918_v21  ;;  %v2443_v0 = vld [vmem:[#allocation10 + $0xd0] sm:$0xff] }
 0x34f   :  { %5792 = vmatprep.subr.bf16.mxu1 %v7927_v8  ;;  %v7973_v8 = vcombine.high %v2913_v28, %v2917_v31  ;;  %v7497_v54 = vcombine.high %v2435_v29, %v2439_v62  ;;  %v2447_v2 = vld [vmem:[#allocation10 + $0xf0] sm:$0xff] }
 0x351   :  { %5629 = vmatpush1.bf16.msra.mxu0 %v7924_v5  ;;  %v2926_v5 = vld [vmem:[#allocation10 + $0xfe8] sm:$0xff] }
 0x352   :  { %5793 = vmatpush1.bf16.msra.mxu1 %v7926_v16  ;;  %5630 = vmatprep.subr.bf16.mxu0 %v7933_v23  ;;  %v7972_v16 = vcombine.low %v2913_v28, %v2917_v31  ;;  %v7974_v23 = vcombine.low %v2914_v36, %v2918_v21  ;;  %v7983_v33 = vcombine.high %v2922_v13, %v2926_v5  ;;  %v2451_v36 = vld [vmem:[#allocation10 + $0x110] sm:$0xff] }
 0x353   :  { %5794 = vmatprep.subr.bf16.mxu1 %v7935_v27  ;;  %v7981_v27 = vcombine.high %v2921_v57, %v2925_v11  ;;  %v7505_v28 = vcombine.high %v2443_v0, %v2447_v2  ;;  %v2455_v21 = vld [vmem:[#allocation10 + $0x130] sm:$0xff] }
 0x355   :  { %5631 = vmatpush1.bf16.msra.mxu0 %v7932_v1  ;;  %v2424_v1 = vld [vmem:[#allocation10 + $0x38] sm:$0xff] }
 0x356   :  { %5795 = vmatpush1.bf16.msra.mxu1 %v7934_v42  ;;  %5632 = vmatprep.subr.bf16.mxu0 %v7941_v45  ;;  %v7980_v42 = vcombine.low %v2921_v57, %v2925_v11  ;;  %v7982_v45 = vcombine.low %v2922_v13, %v2926_v5  ;;  %v7483_v30 = vcombine.high %v2420_v40, %v2424_v1  ;;  %v2459_v11 = vld [vmem:[#allocation10 + $0x150] sm:$0xff]  ;;  %v2460_v5 = vld [vmem:[#allocation10 + $0x158] sm:$0xff] }
 0x357   :  { %5796 = vmatprep.subr.bf16.mxu1 %v7943_v51  ;;  %v2407_v51 = vmax.f32 %v8895_v56, 0.0  ;;  %v7482_v24 = vcombine.low %v2420_v40, %v2424_v1  ;;  %v2463_v13 = vld [vmem:[#allocation10 + $0x170] sm:$0xff]  ;;  %v2468_v1 = vld [vmem:[#allocation10 + $0x198] sm:$0xff] }
 0x358   :  { %v2471_v40 = vld [vmem:[#allocation10 + $0x1b0] sm:$0xff] }
 0x359   :  { %5633 = vmatpush1.bf16.msra.mxu0 %v7940_v55  ;;  %v7480_v55 = vcombine.low %v2419_v38, %v2423_v39  ;;  %v2467_v39 = vld [vmem:[#allocation10 + $0x190] sm:$0xff] }
 0x35a   :  { %5797 = vmatpush1.bf16.msra.mxu1 %v7942_v17  ;;  %5634 = vmatprep.subr.bf16.mxu0 %v7949_v20  ;;  %v2428_v17 = vld [vmem:[#allocation10 + $0x58] sm:$0xff] }
 0x35b   :  { %5798 = vmatprep.subr.bf16.mxu1 %v7951_v25  ;;  %v2432_v20 = vld [vmem:[#allocation10 + $0x78] sm:$0xff]  ;;  %v8918_v25 = vpack.c.bf16 %v2407_v51, %v2407_v51 }
 0x35c   :  { %v7491_v56 = vcombine.high %v2428_v17, %v2432_v20 }
 0x35d   :  { %5635 = vmatpush1.bf16.msra.mxu0 %v7948_v59  ;;  %v2436_v59 = vld [vmem:[#allocation10 + $0x98] sm:$0xff] }
 0x35e   :  { %5799 = vmatpush1.bf16.msra.mxu1 %v7950_v58  ;;  %5636 = vmatprep.subr.bf16.mxu0 %v7957_v60  ;;  %v2440_v58 = vld [vmem:[#allocation10 + $0xb8] sm:$0xff]  ;;  %v7488_v60 = vcombine.low %v2427_v18, %v2431_v53  ;;  %v2475_v18 = vld [vmem:[#allocation10 + $0x1d0] sm:$0xff] }
 0x35f   :  { %5800 = vmatprep.subr.bf16.mxu1 %v7959_v61  ;;  %v7490_v61 = vcombine.low %v2428_v17, %v2432_v20  ;;  %v7499_v63 = vcombine.high %v2436_v59, %v2440_v58  ;;  %v2479_v53 = vld [vmem:[#allocation10 + $0x1f0] sm:$0xff]  ;;  %v2480_v17 = vld [vmem:[#allocation10 + $0x1f8] sm:$0xff]  ;;  %v7528_v20 = vcombine.low %v2467_v39, %v2471_v40 }
 0x361   :  { %5637 = vmatpush1.bf16.msra.mxu0 %v7956_v3  ;;  %v2444_v3 = vld [vmem:[#allocation10 + $0xd8] sm:$0xff] }
 0x362   :  { %5801 = vmatpush1.bf16.msra.mxu1 %v7958_v4  ;;  %5638 = vmatprep.subr.bf16.mxu0 %v7965_v22  ;;  %v2448_v4 = vld [vmem:[#allocation10 + $0xf8] sm:$0xff]  ;;  %v7496_v22 = vcombine.low %v2435_v29, %v2439_v62  ;;  %v2483_v62 = vld [vmem:[#allocation10 + $0x210] sm:$0xff] }
 0x363   :  { %5802 = vmatprep.subr.bf16.mxu1 %v7967_v35  ;;  %v7498_v35 = vcombine.low %v2436_v59, %v2440_v58  ;;  %v7507_v31 = vcombine.high %v2444_v3, %v2448_v4  ;;  %v2484_v59 = vld [vmem:[#allocation10 + $0x218] sm:$0xff] }
 0x364   :  { %v2488_v58 = vld [vmem:[#allocation10 + $0x238] sm:$0xff] }
 0x365   :  { %5639 = vmatpush1.bf16.msra.mxu0 %v7964_v41  ;;  %v2452_v41 = vld [vmem:[#allocation10 + $0x118] sm:$0xff] }
 0x366   :  { %5803 = vmatpush1.bf16.msra.mxu1 %v7966_v48  ;;  %5640 = vmatprep.subr.bf16.mxu0 %v7973_v8  ;;  %v2456_v48 = vld [vmem:[#allocation10 + $0x138] sm:$0xff]  ;;  %v7506_v8 = vcombine.low %v2444_v3, %v2448_v4 }
 0x367   :  { %5804 = vmatprep.subr.bf16.mxu1 %v7975_v10  ;;  %v7513_v10 = vcombine.high %v2451_v36, %v2455_v21  ;;  %v7515_v57 = vcombine.high %v2452_v41, %v2456_v48  ;;  %v2492_v3 = vld [vmem:[#allocation10 + $0x258] sm:$0xff] }
 0x368   :  { %v2496_v4 = vld [vmem:[#allocation10 + $0x278] sm:$0xff] }
 0x369   :  { %5641 = vmatpush1.bf16.msra.mxu0 %v7972_v16  ;;  %v2464_v16 = vld [vmem:[#allocation10 + $0x178] sm:$0xff] }
 0x36a   :  { %5805 = vmatpush1.bf16.msra.mxu1 %v7974_v23  ;;  %5642 = vmatprep.subr.bf16.mxu0 %v7981_v27  ;;  %v7512_v23 = vcombine.low %v2451_v36, %v2455_v21  ;;  %v7514_v27 = vcombine.low %v2452_v41, %v2456_v48  ;;  %v7523_v38 = vcombine.high %v2460_v5, %v2464_v16  ;;  %v2499_v36 = vld [vmem:[#allocation10 + $0x290] sm:$0xff]  ;;  %v2500_v41 = vld [vmem:[#allocation10 + $0x298] sm:$0xff] }
 0x36b   :  { %5806 = vmatprep.subr.bf16.mxu1 %v7983_v33  ;;  %v7521_v33 = vcombine.high %v2459_v11, %v2463_v13  ;;  %v7522_v51 = vcombine.low %v2460_v5, %v2464_v16  ;;  %v2503_v21 = vld [vmem:[#allocation10 + $0x2b0] sm:$0xff]  ;;  %v2504_v48 = vld [vmem:[#allocation10 + $0x2b8] sm:$0xff] }
 0x36c   :  { %v2508_v5 = vld [vmem:[#allocation10 + $0x2d8] sm:$0xff] }
 0x36d   :  { %5643 = vmatpush1.bf16.msra.mxu0 %v7980_v42  ;;  %v2472_v42 = vld [vmem:[#allocation10 + $0x1b8] sm:$0xff] }
 0x36e   :  { %5807 = vmatpush1.bf16.msra.mxu1 %v7982_v45  ;;  %5817 = vmatprep.subr.bf16.mxu0 %v7481_v52  ;;  %v7520_v45 = vcombine.low %v2459_v11, %v2463_v13  ;;  %v7529_v52 = vcombine.high %v2467_v39, %v2471_v40  ;;  %v2507_v11 = vld [vmem:[#allocation10 + $0x2d0] sm:$0xff]  ;;  %v2512_v16 = vld [vmem:[#allocation10 + $0x2f8] sm:$0xff] }
 0x36f   :  { %5981 = vmatprep.subr.bf16.mxu1 %v7483_v30  ;;  %v7531_v30 = vcombine.high %v2468_v1, %v2472_v42  ;;  %v2511_v13 = vld [vmem:[#allocation10 + $0x2f0] sm:$0xff] }
 0x370   :  { %5645 = vmatmul.mubr.bf16.vlgmr.msra.gmra.mrb[8].mxu0 %v8918_v25  ;;  %v2515_v39 = vld [vmem:[#allocation10 + $0x310] sm:$0xff] }
 0x371   :  { %5809 = vmatmul.mubr.bf16.vlgmr.msra.gmra.mrb[8].mxu1 %v8918_v25  ;;  %5818 = vmatpush1.bf16.msra.mxu0 %v7480_v55  ;;  %v2476_v55 = vld [vmem:[#allocation10 + $0x1d8] sm:$0xff]  ;;  %v2519_v40 = vld [vmem:[#allocation10 + $0x330] sm:$0xff] }
 0x372   :  { %5849 = vmatprep.mubr.bf16.mxu0 %v8865_v14  ;;  %5982 = vmatpush1.bf16.msra.mxu1 %v7482_v24  ;;  %v7530_v24 = vcombine.low %v2468_v1, %v2472_v42  ;;  %v7539_v29 = vcombine.high %v2476_v55, %v2480_v17  ;;  %v2516_v1 = vld [vmem:[#allocation10 + $0x318] sm:$0xff] }
 0x373   :  { %6013 = vmatprep.mubr.bf16.mxu1 %v8865_v14  ;;  %5819 = vmatprep.subr.bf16.mxu0 %v7489_v26  ;;  %v7504_v14 = vcombine.low %v2443_v0, %v2447_v2  ;;  %v7537_v26 = vcombine.high %v2475_v18, %v2479_v53  ;;  %v2491_v0 = vld [vmem:[#allocation10 + $0x250] sm:$0xff]  ;;  %v2520_v42 = vld [vmem:[#allocation10 + $0x338] sm:$0xff] }
 0x374   :  { %5983 = vmatprep.subr.bf16.mxu1 %v7491_v56  ;;  %v2487_v56 = vld [vmem:[#allocation10 + $0x230] sm:$0xff] }
 0x375   :  { %5820 = vmatpush1.bf16.msra.mxu0 %v7488_v60  ;;  %v7536_v60 = vcombine.low %v2475_v18, %v2479_v53  ;;  %v2495_v2 = vld [vmem:[#allocation10 + $0x270] sm:$0xff] }
 0x376   :  { %5984 = vmatpush1.bf16.msra.mxu1 %v7490_v61  ;;  %5821 = vmatprep.subr.bf16.mxu0 %v7497_v54  ;;  %v7538_v61 = vcombine.low %v2476_v55, %v2480_v17  ;;  %v7545_v54 = vcombine.high %v2483_v62, %v2487_v56  ;;  %v2523_v18 = vld [vmem:[#allocation10 + $0x350] sm:$0xff]  ;;  %v2524_v55 = vld [vmem:[#allocation10 + $0x358] sm:$0xff] }
 0x377   :  { %5985 = vmatprep.subr.bf16.mxu1 %v7499_v63  ;;  %v7547_v63 = vcombine.high %v2484_v59, %v2488_v58  ;;  %v2527_v53 = vld [vmem:[#allocation10 + $0x370] sm:$0xff]  ;;  %v2528_v17 = vld [vmem:[#allocation10 + $0x378] sm:$0xff] }
 0x379   :  { %5822 = vmatpush1.bf16.msra.mxu0 %v7496_v22  ;;  %v7544_v22 = vcombine.low %v2483_v62, %v2487_v56  ;;  %v2531_v62 = vld [vmem:[#allocation10 + $0x390] sm:$0xff] }
 0x37a   :  { %5986 = vmatpush1.bf16.msra.mxu1 %v7498_v35  ;;  %5823 = vmatprep.subr.bf16.mxu0 %v7505_v28  ;;  %v7546_v35 = vcombine.low %v2484_v59, %v2488_v58  ;;  %v7553_v28 = vcombine.high %v2491_v0, %v2495_v2  ;;  %v2535_v56 = vld [vmem:[#allocation10 + $0x3b0] sm:$0xff]  ;;  %v2532_v59 = vld [vmem:[#allocation10 + $0x398] sm:$0xff] }
 0x37b   :  { %5987 = vmatprep.subr.bf16.mxu1 %v7507_v31  ;;  %v7555_v31 = vcombine.high %v2492_v3, %v2496_v4  ;;  %v2536_v58 = vld [vmem:[#allocation10 + $0x3b8] sm:$0xff] }
 0x37d   :  { %5824 = vmatpush1.bf16.msra.mxu0 %v7504_v14  ;;  %v7552_v14 = vcombine.low %v2491_v0, %v2495_v2  ;;  %v2539_v0 = vld [vmem:[#allocation10 + $0x3d0] sm:$0xff] }
 0x37e   :  { %5988 = vmatpush1.bf16.msra.mxu1 %v7506_v8  ;;  %5825 = vmatprep.subr.bf16.mxu0 %v7513_v10  ;;  %v7554_v8 = vcombine.low %v2492_v3, %v2496_v4  ;;  %v7561_v10 = vcombine.high %v2499_v36, %v2503_v21  ;;  %v2543_v2 = vld [vmem:[#allocation10 + $0x3f0] sm:$0xff]  ;;  %v2540_v3 = vld [vmem:[#allocation10 + $0x3d8] sm:$0xff] }
 0x37f   :  { %5989 = vmatprep.subr.bf16.mxu1 %v7515_v57  ;;  %v7563_v57 = vcombine.high %v2500_v41, %v2504_v48  ;;  %v2544_v4 = vld [vmem:[#allocation10 + $0x3f8] sm:$0xff] }
 0x381   :  { %5826 = vmatpush1.bf16.msra.mxu0 %v7512_v23  ;;  %v7560_v23 = vcombine.low %v2499_v36, %v2503_v21  ;;  %v2547_v36 = vld [vmem:[#allocation10 + $0x410] sm:$0xff] }
 0x382   :  { %5990 = vmatpush1.bf16.msra.mxu1 %v7514_v27  ;;  %5827 = vmatprep.subr.bf16.mxu0 %v7521_v33  ;;  %v7562_v27 = vcombine.low %v2500_v41, %v2504_v48  ;;  %v7569_v33 = vcombine.high %v2507_v11, %v2511_v13  ;;  %v2551_v21 = vld [vmem:[#allocation10 + $0x430] sm:$0xff]  ;;  %v2548_v41 = vld [vmem:[#allocation10 + $0x418] sm:$0xff] }
 0x383   :  { %5991 = vmatprep.subr.bf16.mxu1 %v7523_v38  ;;  %v7571_v38 = vcombine.high %v2508_v5, %v2512_v16  ;;  %v2552_v48 = vld [vmem:[#allocation10 + $0x438] sm:$0xff] }
 0x385   :  { %5828 = vmatpush1.bf16.msra.mxu0 %v7520_v45  ;;  %v7568_v45 = vcombine.low %v2507_v11, %v2511_v13  ;;  %v2555_v11 = vld [vmem:[#allocation10 + $0x450] sm:$0xff] }
 0x386   :  { %5992 = vmatpush1.bf16.msra.mxu1 %v7522_v51  ;;  %5829 = vmatprep.subr.bf16.mxu0 %v7529_v52  ;;  %v7570_v51 = vcombine.low %v2508_v5, %v2512_v16  ;;  %v7577_v52 = vcombine.high %v2515_v39, %v2519_v40  ;;  %v2559_v13 = vld [vmem:[#allocation10 + $0x470] sm:$0xff]  ;;  %v7608_v5 = vcombine.low %v2547_v36, %v2551_v21  ;;  %v2556_v16 = vld [vmem:[#allocation10 + $0x458] sm:$0xff] }
 0x387   :  { %5993 = vmatprep.subr.bf16.mxu1 %v7531_v30  ;;  %v7579_v30 = vcombine.high %v2516_v1, %v2520_v42 }
 0x389   :  { %5830 = vmatpush1.bf16.msra.mxu0 %v7528_v20  ;;  %v7576_v20 = vcombine.low %v2515_v39, %v2519_v40  ;;  %v2567_v39 = vld [vmem:[#allocation10 + $0x4b0] sm:$0xff] }
 0x38a   :  { %5994 = vmatpush1.bf16.msra.mxu1 %v7530_v24  ;;  %5831 = vmatprep.subr.bf16.mxu0 %v7537_v26  ;;  %v7578_v24 = vcombine.low %v2516_v1, %v2520_v42  ;;  %v7585_v26 = vcombine.high %v2523_v18, %v2527_v53  ;;  %v2564_v1 = vld [vmem:[#allocation10 + $0x498] sm:$0xff] }
 0x38b   :  { %5995 = vmatprep.subr.bf16.mxu1 %v7539_v29  ;;  %v7587_v29 = vcombine.high %v2524_v55, %v2528_v17  ;;  %v2568_v42 = vld [vmem:[#allocation10 + $0x4b8] sm:$0xff] }
 0x38d   :  { %5832 = vmatpush1.bf16.msra.mxu0 %v7536_v60  ;;  %v7584_v60 = vcombine.low %v2523_v18, %v2527_v53  ;;  %v2571_v18 = vld [vmem:[#allocation10 + $0x4d0] sm:$0xff] }
 0x38e   :  { %5996 = vmatpush1.bf16.msra.mxu1 %v7538_v61  ;;  %5833 = vmatprep.subr.bf16.mxu0 %v7545_v54  ;;  %v7586_v61 = vcombine.low %v2524_v55, %v2528_v17  ;;  %v7593_v54 = vcombine.high %v2531_v62, %v2535_v56  ;;  %v2575_v53 = vld [vmem:[#allocation10 + $0x4f0] sm:$0xff]  ;;  %v2572_v55 = vld [vmem:[#allocation10 + $0x4d8] sm:$0xff] }
 0x38f   :  { %5997 = vmatprep.subr.bf16.mxu1 %v7547_v63  ;;  %v7595_v63 = vcombine.high %v2532_v59, %v2536_v58  ;;  %v2576_v17 = vld [vmem:[#allocation10 + $0x4f8] sm:$0xff] }
 0x391   :  { %5834 = vmatpush1.bf16.msra.mxu0 %v7544_v22  ;;  %v7592_v22 = vcombine.low %v2531_v62, %v2535_v56  ;;  %v2583_v62 = vld [vmem:[#allocation10 + $0x530] sm:$0xff]  ;;  %v2580_v56 = vld [vmem:[#allocation10 + $0x518] sm:$0xff] }
 0x392   :  { %5998 = vmatpush1.bf16.msra.mxu1 %v7546_v35  ;;  %5835 = vmatprep.subr.bf16.mxu0 %v7553_v28  ;;  %v7594_v35 = vcombine.low %v2532_v59, %v2536_v58  ;;  %v7601_v28 = vcombine.high %v2539_v0, %v2543_v2  ;;  %v2584_v59 = vld [vmem:[#allocation10 + $0x538] sm:$0xff]  ;;  %v7634_v58 = vcombine.low %v2572_v55, %v2576_v17 }
 0x393   :  { %5999 = vmatprep.subr.bf16.mxu1 %v7555_v31  ;;  %v7603_v31 = vcombine.high %v2540_v3, %v2544_v4 }
 0x395   :  { %5836 = vmatpush1.bf16.msra.mxu0 %v7552_v14  ;;  %v7600_v14 = vcombine.low %v2539_v0, %v2543_v2  ;;  %v2588_v0 = vld [vmem:[#allocation10 + $0x558] sm:$0xff] }
 0x396   :  { %6000 = vmatpush1.bf16.msra.mxu1 %v7554_v8  ;;  %5837 = vmatprep.subr.bf16.mxu0 %v7561_v10  ;;  %v7602_v8 = vcombine.low %v2540_v3, %v2544_v4  ;;  %v7609_v10 = vcombine.high %v2547_v36, %v2551_v21  ;;  %v2592_v2 = vld [vmem:[#allocation10 + $0x578] sm:$0xff]  ;;  %v7642_v4 = vcombine.low %v2580_v56, %v2584_v59 }
 0x397   :  { %6001 = vmatprep.subr.bf16.mxu1 %v7563_v57  ;;  %v7611_v57 = vcombine.high %v2548_v41, %v2552_v48  ;;  %v2596_v36 = vld [vmem:[#allocation10 + $0x598] sm:$0xff] }
 0x398   :  { %v2600_v21 = vld [vmem:[#allocation10 + $0x5b8] sm:$0xff] }
 0x399   :  { %5838 = vmatpush1.bf16.msra.mxu0 %v7560_v23  ;;  %v2560_v23 = vld [vmem:[#allocation10 + $0x478] sm:$0xff] }
 0x39a   :  { %6002 = vmatpush1.bf16.msra.mxu1 %v7562_v27  ;;  %5839 = vmatprep.subr.bf16.mxu0 %v7569_v33  ;;  %v7610_v27 = vcombine.low %v2548_v41, %v2552_v48  ;;  %v7617_v33 = vcombine.high %v2555_v11, %v2559_v13  ;;  %v7619_v40 = vcombine.high %v2556_v16, %v2560_v23 }
 0x39b   :  { %6003 = vmatprep.subr.bf16.mxu1 %v7571_v38  ;;  %v2563_v38 = vld [vmem:[#allocation10 + $0x490] sm:$0xff]  ;;  %v7650_v48 = vcombine.low %v2588_v0, %v2592_v2 }
 0x39d   :  { %5840 = vmatpush1.bf16.msra.mxu0 %v7568_v45  ;;  %v7616_v45 = vcombine.low %v2555_v11, %v2559_v13  ;;  %v2604_v11 = vld [vmem:[#allocation10 + $0x5d8] sm:$0xff] }
 0x39e   :  { %6004 = vmatpush1.bf16.msra.mxu1 %v7570_v51  ;;  %5841 = vmatprep.subr.bf16.mxu0 %v7577_v52  ;;  %v7618_v51 = vcombine.low %v2556_v16, %v2560_v23  ;;  %v7625_v52 = vcombine.high %v2563_v38, %v2567_v39  ;;  %v2608_v13 = vld [vmem:[#allocation10 + $0x5f8] sm:$0xff]  ;;  %v7658_v16 = vcombine.low %v2596_v36, %v2600_v21 }
 0x39f   :  { %6005 = vmatprep.subr.bf16.mxu1 %v7579_v30  ;;  %v7627_v30 = vcombine.high %v2564_v1, %v2568_v42 }
 0x3a1   :  { %5842 = vmatpush1.bf16.msra.mxu0 %v7576_v20  ;;  %v7624_v20 = vcombine.low %v2563_v38, %v2567_v39  ;;  %v2615_v38 = vld [vmem:[#allocation10 + $0x630] sm:$0xff]  ;;  %v2612_v39 = vld [vmem:[#allocation10 + $0x618] sm:$0xff] }
 0x3a2   :  { %6006 = vmatpush1.bf16.msra.mxu1 %v7578_v24  ;;  %5843 = vmatprep.subr.bf16.mxu0 %v7585_v26  ;;  %v7633_v24 = vcombine.high %v2571_v18, %v2575_v53  ;;  %v7635_v26 = vcombine.high %v2572_v55, %v2576_v17 }
 0x3a3   :  { %6007 = vmatprep.subr.bf16.mxu1 %v7587_v29  ;;  %v2579_v29 = vld [vmem:[#allocation10 + $0x510] sm:$0xff] }
 0x3a4   :  { %v7640_v3 = vcombine.low %v2579_v29, %v2583_v62 }
 0x3a5   :  { %5844 = vmatpush1.bf16.msra.mxu0 %v7584_v60  ;;  %v7641_v60 = vcombine.high %v2579_v29, %v2583_v62  ;;  %v2628_v29 = vld [vmem:[#allocation10 + $0x698] sm:$0xff] }
 0x3a6   :  { %6008 = vmatpush1.bf16.msra.mxu1 %v7586_v61  ;;  %5845 = vmatprep.subr.bf16.mxu0 %v7593_v54  ;;  %v7643_v61 = vcombine.high %v2580_v56, %v2584_v59  ;;  %v2587_v54 = vld [vmem:[#allocation10 + $0x550] sm:$0xff]  ;;  %v2632_v62 = vld [vmem:[#allocation10 + $0x6b8] sm:$0xff] }
 0x3a7   :  { %6009 = vmatprep.subr.bf16.mxu1 %v7595_v63  ;;  %v2591_v63 = vld [vmem:[#allocation10 + $0x570] sm:$0xff] }
 0x3a8   :  { %v7648_v41 = vcombine.low %v2587_v54, %v2591_v63 }
 0x3a9   :  { %5846 = vmatpush1.bf16.msra.mxu0 %v7592_v22  ;;  %v7649_v22 = vcombine.high %v2587_v54, %v2591_v63  ;;  %v2636_v54 = vld [vmem:[#allocation10 + $0x6d8] sm:$0xff] }
 0x3aa   :  { %6010 = vmatpush1.bf16.msra.mxu1 %v7594_v35  ;;  %5847 = vmatprep.subr.bf16.mxu0 %v7601_v28  ;;  %v7651_v35 = vcombine.high %v2588_v0, %v2592_v2  ;;  %v2595_v28 = vld [vmem:[#allocation10 + $0x590] sm:$0xff]  ;;  %v2640_v63 = vld [vmem:[#allocation10 + $0x6f8] sm:$0xff]  ;;  %v7690_v2 = vcombine.low %v2628_v29, %v2632_v62 }
 0x3ab   :  { %6011 = vmatprep.subr.bf16.mxu1 %v7603_v31  ;;  %v2599_v31 = vld [vmem:[#allocation10 + $0x5b0] sm:$0xff] }
 0x3ad   :  { %5848 = vmatpush1.bf16.msra.mxu0 %v7600_v14  ;;  %v7657_v14 = vcombine.high %v2595_v28, %v2599_v31 }
 0x3ae   :  { %6012 = vmatpush1.bf16.msra.mxu1 %v7602_v8  ;;  %5858 = vmatprep.subr.bf16.mxu0 %v7609_v10  ;;  %v7659_v8 = vcombine.high %v2596_v36, %v2600_v21  ;;  %v2603_v10 = vld [vmem:[#allocation10 + $0x5d0] sm:$0xff]  ;;  %v7698_v21 = vcombine.low %v2636_v54, %v2640_v63 }
 0x3af   :  { %6022 = vmatprep.subr.bf16.mxu1 %v7611_v57  ;;  %v2607_v57 = vld [vmem:[#allocation10 + $0x5f0] sm:$0xff] }
 0x3b0   :  { %5850 = vmatmul.mubr.bf16.vlgmr.msra.gmra.mrb[12].mxu0 %v8867_v15  ;;  %v7665_v23 = vcombine.high %v2603_v10, %v2607_v57 }
 0x3b1   :  { %6014 = vmatmul.mubr.bf16.vlgmr.msra.gmra.mrb[12].mxu1 %v8867_v15  ;;  %5859 = vmatpush1.bf16.msra.mxu0 %v7608_v5  ;;  %v7626_v15 = vcombine.low %v2564_v1, %v2568_v42  ;;  %v7656_v5 = vcombine.low %v2595_v28, %v2599_v31  ;;  %v7664_v1 = vcombine.low %v2603_v10, %v2607_v57  ;;  %v2644_v28 = vld [vmem:[#allocation10 + $0x718] sm:$0xff] }
 0x3b2   :  { %5890 = vmatprep.mubr.bf16.mxu0 %v8879_v43  ;;  %6023 = vmatpush1.bf16.msra.mxu1 %v7610_v27  ;;  %v7667_v27 = vcombine.high %v2604_v11, %v2608_v13  ;;  %v7666_v42 = vcombine.low %v2604_v11, %v2608_v13  ;;  %v2648_v31 = vld [vmem:[#allocation10 + $0x738] sm:$0xff] }
 0x3b3   :  { %6054 = vmatprep.mubr.bf16.mxu1 %v8879_v43  ;;  %5860 = vmatprep.subr.bf16.mxu0 %v7617_v33  ;;  %v7632_v43 = vcombine.low %v2571_v18, %v2575_v53  ;;  %v2611_v33 = vld [vmem:[#allocation10 + $0x610] sm:$0xff]  ;;  %v2620_v18 = vld [vmem:[#allocation10 + $0x658] sm:$0xff]  ;;  %v7706_v13 = vcombine.low %v2644_v28, %v2648_v31 }
 0x3b4   :  { %6024 = vmatprep.subr.bf16.mxu1 %v7619_v40  ;;  %v2616_v40 = vld [vmem:[#allocation10 + $0x638] sm:$0xff]  ;;  %v7672_v55 = vcombine.low %v2611_v33, %v2615_v38 }
 0x3b5   :  { %5861 = vmatpush1.bf16.msra.mxu0 %v7616_v45  ;;  %v7673_v45 = vcombine.high %v2611_v33, %v2615_v38  ;;  %v2624_v53 = vld [vmem:[#allocation10 + $0x678] sm:$0xff]  ;;  %v7674_v17 = vcombine.low %v2612_v39, %v2616_v40 }
 0x3b6   :  { %6025 = vmatpush1.bf16.msra.mxu1 %v7618_v51  ;;  %5862 = vmatprep.subr.bf16.mxu0 %v7625_v52  ;;  %v7675_v51 = vcombine.high %v2612_v39, %v2616_v40  ;;  %v2619_v52 = vld [vmem:[#allocation10 + $0x650] sm:$0xff]  ;;  %v7682_v59 = vcombine.low %v2620_v18, %v2624_v53  ;;  %v2652_v10 = vld [vmem:[#allocation10 + $0x758] sm:$0xff] }
 0x3b7   :  { %6026 = vmatprep.subr.bf16.mxu1 %v7627_v30  ;;  %v2623_v30 = vld [vmem:[#allocation10 + $0x670] sm:$0xff]  ;;  %v2656_v57 = vld [vmem:[#allocation10 + $0x778] sm:$0xff] }
 0x3b8   :  { %v7680_v56 = vcombine.low %v2619_v52, %v2623_v30  ;;  %v2660_v33 = vld [vmem:[#allocation10 + $0x798] sm:$0xff]  ;;  %v7714_v40 = vcombine.low %v2652_v10, %v2656_v57 }
 0x3b9   :  { %5863 = vmatpush1.bf16.msra.mxu0 %v7624_v20  ;;  %v7681_v20 = vcombine.high %v2619_v52, %v2623_v30  ;;  %v2664_v38 = vld [vmem:[#allocation10 + $0x7b8] sm:$0xff] }
 0x3ba   :  { %6027 = vmatpush1.bf16.msra.mxu1 %v7626_v15  ;;  %5864 = vmatprep.subr.bf16.mxu0 %v7633_v24  ;;  %v7683_v15 = vcombine.high %v2620_v18, %v2624_v53  ;;  %v2627_v24 = vld [vmem:[#allocation10 + $0x690] sm:$0xff]  ;;  %v2668_v52 = vld [vmem:[#allocation10 + $0x7d8] sm:$0xff]  ;;  %v7722_v53 = vcombine.low %v2660_v33, %v2664_v38 }
 0x3bb   :  { %6028 = vmatprep.subr.bf16.mxu1 %v7635_v26  ;;  %v2631_v26 = vld [vmem:[#allocation10 + $0x6b0] sm:$0xff]  ;;  %v2672_v30 = vld [vmem:[#allocation10 + $0x7f8] sm:$0xff] }
 0x3bc   :  { %v7688_v0 = vcombine.low %v2627_v24, %v2631_v26 }
 0x3bd   :  { %5865 = vmatpush1.bf16.msra.mxu0 %v7632_v43  ;;  %v7689_v43 = vcombine.high %v2627_v24, %v2631_v26  ;;  %v2676_v24 = vld [vmem:[#allocation10 + $0x818] sm:$0xff] }
 0x3be   :  { %6029 = vmatpush1.bf16.msra.mxu1 %v7634_v58  ;;  %5866 = vmatprep.subr.bf16.mxu0 %v7641_v60  ;;  %v7691_v58 = vcombine.high %v2628_v29, %v2632_v62  ;;  %v2635_v60 = vld [vmem:[#allocation10 + $0x6d0] sm:$0xff]  ;;  %v2680_v26 = vld [vmem:[#allocation10 + $0x838] sm:$0xff]  ;;  %v7730_v62 = vcombine.low %v2668_v52, %v2672_v30 }
 0x3bf   :  { %6030 = vmatprep.subr.bf16.mxu1 %v7643_v61  ;;  %v2639_v61 = vld [vmem:[#allocation10 + $0x6f0] sm:$0xff] }
 0x3c0   :  { %v7696_v36 = vcombine.low %v2635_v60, %v2639_v61 }
 0x3c1   :  { %5867 = vmatpush1.bf16.msra.mxu0 %v7640_v3  ;;  %v7697_v3 = vcombine.high %v2635_v60, %v2639_v61  ;;  %v2684_v61 = vld [vmem:[#allocation10 + $0x858] sm:$0xff] }
 0x3c2   :  { %6031 = vmatpush1.bf16.msra.mxu1 %v7642_v4  ;;  %5868 = vmatprep.subr.bf16.mxu0 %v7649_v22  ;;  %v7699_v4 = vcombine.high %v2636_v54, %v2640_v63  ;;  %v2643_v22 = vld [vmem:[#allocation10 + $0x710] sm:$0xff]  ;;  %v2688_v54 = vld [vmem:[#allocation10 + $0x878] sm:$0xff]  ;;  %v7738_v63 = vcombine.low %v2676_v24, %v2680_v26 }
 0x3c3   :  { %6032 = vmatprep.subr.bf16.mxu1 %v7651_v35  ;;  %v2647_v35 = vld [vmem:[#allocation10 + $0x730] sm:$0xff] }
 0x3c4   :  { %v7704_v11 = vcombine.low %v2643_v22, %v2647_v35 }
 0x3c5   :  { %5869 = vmatpush1.bf16.msra.mxu0 %v7648_v41  ;;  %v7705_v41 = vcombine.high %v2643_v22, %v2647_v35  ;;  %v2692_v22 = vld [vmem:[#allocation10 + $0x898] sm:$0xff] }
 0x3c6   :  { %6033 = vmatpush1.bf16.msra.mxu1 %v7650_v48  ;;  %5870 = vmatprep.subr.bf16.mxu0 %v7657_v14  ;;  %v7707_v48 = vcombine.high %v2644_v28, %v2648_v31  ;;  %v2651_v14 = vld [vmem:[#allocation10 + $0x750] sm:$0xff]  ;;  %v2696_v35 = vld [vmem:[#allocation10 + $0x8b8] sm:$0xff]  ;;  %v7746_v31 = vcombine.low %v2684_v61, %v2688_v54 }
 0x3c7   :  { %6034 = vmatprep.subr.bf16.mxu1 %v7659_v8  ;;  %v2655_v8 = vld [vmem:[#allocation10 + $0x770] sm:$0xff] }
 0x3c8   :  { %v7712_v39 = vcombine.low %v2651_v14, %v2655_v8 }
 0x3c9   :  { %5871 = vmatpush1.bf16.msra.mxu0 %v7656_v5  ;;  %v7713_v5 = vcombine.high %v2651_v14, %v2655_v8  ;;  %v2700_v14 = vld [vmem:[#allocation10 + $0x8d8] sm:$0xff] }
 0x3ca   :  { %6035 = vmatpush1.bf16.msra.mxu1 %v7658_v16  ;;  %5872 = vmatprep.subr.bf16.mxu0 %v7665_v23  ;;  %v7715_v16 = vcombine.high %v2652_v10, %v2656_v57  ;;  %v2659_v23 = vld [vmem:[#allocation10 + $0x790] sm:$0xff]  ;;  %v2704_v8 = vld [vmem:[#allocation10 + $0x8f8] sm:$0xff] }
 0x3cb   :  { %6036 = vmatprep.subr.bf16.mxu1 %v7667_v27  ;;  %v2663_v27 = vld [vmem:[#allocation10 + $0x7b0] sm:$0xff] }
 0x3cc   :  { %v7720_v18 = vcombine.low %v2659_v23, %v2663_v27 }
 0x3cd   :  { %5873 = vmatpush1.bf16.msra.mxu0 %v7664_v1  ;;  %v7721_v1 = vcombine.high %v2659_v23, %v2663_v27  ;;  %v2712_v23 = vld [vmem:[#allocation10 + $0x938] sm:$0xff]  ;;  %v7762_v27 = vcombine.low %v2700_v14, %v2704_v8 }
 0x3ce   :  { %6037 = vmatpush1.bf16.msra.mxu1 %v7666_v42  ;;  %5874 = vmatprep.subr.bf16.mxu0 %v7673_v45  ;;  %v7723_v42 = vcombine.high %v2660_v33, %v2664_v38  ;;  %v2667_v45 = vld [vmem:[#allocation10 + $0x7d0] sm:$0xff] }
 0x3cf   :  { %6038 = vmatprep.subr.bf16.mxu1 %v7675_v51  ;;  %v2671_v51 = vld [vmem:[#allocation10 + $0x7f0] sm:$0xff] }
 0x3d0   :  { %v7728_v29 = vcombine.low %v2667_v45, %v2671_v51 }
 0x3d1   :  { %5875 = vmatpush1.bf16.msra.mxu0 %v7672_v55  ;;  %v7729_v55 = vcombine.high %v2667_v45, %v2671_v51 }
 0x3d2   :  { %6039 = vmatpush1.bf16.msra.mxu1 %v7674_v17  ;;  %5876 = vmatprep.subr.bf16.mxu0 %v7681_v20  ;;  %v7731_v17 = vcombine.high %v2668_v52, %v2672_v30  ;;  %v2675_v20 = vld [vmem:[#allocation10 + $0x810] sm:$0xff] }
 0x3d3   :  { %6040 = vmatprep.subr.bf16.mxu1 %v7683_v15  ;;  %v2679_v15 = vld [vmem:[#allocation10 + $0x830] sm:$0xff] }
 0x3d4   :  { %v7736_v60 = vcombine.low %v2675_v20, %v2679_v15 }
 0x3d5   :  { %5877 = vmatpush1.bf16.msra.mxu0 %v7680_v56  ;;  %v7737_v56 = vcombine.high %v2675_v20, %v2679_v15 }
 0x3d6   :  { %6041 = vmatpush1.bf16.msra.mxu1 %v7682_v59  ;;  %5878 = vmatprep.subr.bf16.mxu0 %v7689_v43  ;;  %v7739_v59 = vcombine.high %v2676_v24, %v2680_v26  ;;  %v2683_v43 = vld [vmem:[#allocation10 + $0x850] sm:$0xff] }
 0x3d7   :  { %6042 = vmatprep.subr.bf16.mxu1 %v7691_v58  ;;  %v2687_v58 = vld [vmem:[#allocation10 + $0x870] sm:$0xff] }
 0x3d8   :  { %v7744_v28 = vcombine.low %v2683_v43, %v2687_v58 }
 0x3d9   :  { %5879 = vmatpush1.bf16.msra.mxu0 %v7688_v0  ;;  %v7745_v0 = vcombine.high %v2683_v43, %v2687_v58 }
 0x3da   :  { %6043 = vmatpush1.bf16.msra.mxu1 %v7690_v2  ;;  %5880 = vmatprep.subr.bf16.mxu0 %v7697_v3  ;;  %v2691_v2 = vld [vmem:[#allocation10 + $0x890] sm:$0xff] }
 0x3db   :  { %6044 = vmatprep.subr.bf16.mxu1 %v7699_v4  ;;  %v2695_v3 = vld [vmem:[#allocation10 + $0x8b0] sm:$0xff]  ;;  %v7747_v4 = vcombine.high %v2684_v61, %v2688_v54 }
 0x3dc   :  { %v7752_v10 = vcombine.low %v2691_v2, %v2695_v3  ;;  %v2739_v54 = vld [vmem:[#allocation10 + $0xa10] sm:$0xff] }
 0x3dd   :  { %5881 = vmatpush1.bf16.msra.mxu0 %v7696_v36  ;;  %v7753_v36 = vcombine.high %v2691_v2, %v2695_v3  ;;  %v2744_v2 = vld [vmem:[#allocation10 + $0xa38] sm:$0xff] }
 0x3de   :  { %6045 = vmatpush1.bf16.msra.mxu1 %v7698_v21  ;;  %5882 = vmatprep.subr.bf16.mxu0 %v7705_v41  ;;  %v7755_v21 = vcombine.high %v2692_v22, %v2696_v35  ;;  %v2699_v41 = vld [vmem:[#allocation10 + $0x8d0] sm:$0xff] }
 0x3df   :  { %6046 = vmatprep.subr.bf16.mxu1 %v7707_v48  ;;  %v2703_v48 = vld [vmem:[#allocation10 + $0x8f0] sm:$0xff] }
 0x3e0   :  { %v7761_v57 = vcombine.high %v2699_v41, %v2703_v48 }
 0x3e1   :  { %5883 = vmatpush1.bf16.msra.mxu0 %v7704_v11  ;;  %v7763_v11 = vcombine.high %v2700_v14, %v2704_v8 }
 0x3e2   :  { %6047 = vmatpush1.bf16.msra.mxu1 %v7706_v13  ;;  %5884 = vmatprep.subr.bf16.mxu0 %v7713_v5  ;;  %v2707_v13 = vld [vmem:[#allocation10 + $0x910] sm:$0xff] }
 0x3e3   :  { %6048 = vmatprep.subr.bf16.mxu1 %v7715_v16  ;;  %v2711_v5 = vld [vmem:[#allocation10 + $0x930] sm:$0xff]  ;;  %v2708_v16 = vld [vmem:[#allocation10 + $0x918] sm:$0xff] }
 0x3e4   :  { %v7769_v33 = vcombine.high %v2707_v13, %v2711_v5  ;;  %v7771_v38 = vcombine.high %v2708_v16, %v2712_v23  ;;  %v7768_v45 = vcombine.low %v2707_v13, %v2711_v5  ;;  %v7770_v51 = vcombine.low %v2708_v16, %v2712_v23 }
 0x3e5   :  { %5885 = vmatpush1.bf16.msra.mxu0 %v7712_v39  ;;  %v2715_v39 = vld [vmem:[#allocation10 + $0x950] sm:$0xff] }
 0x3e6   :  { %6049 = vmatpush1.bf16.msra.mxu1 %v7714_v40  ;;  %5886 = vmatprep.subr.bf16.mxu0 %v7721_v1  ;;  %v2719_v40 = vld [vmem:[#allocation10 + $0x970] sm:$0xff]  ;;  %v2716_v1 = vld [vmem:[#allocation10 + $0x958] sm:$0xff] }
 0x3e7   :  { %6050 = vmatprep.subr.bf16.mxu1 %v7723_v42  ;;  %v2720_v42 = vld [vmem:[#allocation10 + $0x978] sm:$0xff]  ;;  %v7777_v52 = vcombine.high %v2715_v39, %v2719_v40  ;;  %v7776_v20 = vcombine.low %v2715_v39, %v2719_v40 }
 0x3e8   :  { %v7779_v30 = vcombine.high %v2716_v1, %v2720_v42  ;;  %v7778_v15 = vcombine.low %v2716_v1, %v2720_v42 }
 0x3e9   :  { %5887 = vmatpush1.bf16.msra.mxu0 %v7720_v18  ;;  %v2723_v18 = vld [vmem:[#allocation10 + $0x990] sm:$0xff] }
 0x3ea   :  { %6051 = vmatpush1.bf16.msra.mxu1 %v7722_v53  ;;  %5888 = vmatprep.subr.bf16.mxu0 %v7729_v55  ;;  %v2727_v53 = vld [vmem:[#allocation10 + $0x9b0] sm:$0xff]  ;;  %v2724_v55 = vld [vmem:[#allocation10 + $0x998] sm:$0xff] }
 0x3eb   :  { %6052 = vmatprep.subr.bf16.mxu1 %v7731_v17  ;;  %v2728_v17 = vld [vmem:[#allocation10 + $0x9b8] sm:$0xff]  ;;  %v7785_v24 = vcombine.high %v2723_v18, %v2727_v53  ;;  %v7784_v43 = vcombine.low %v2723_v18, %v2727_v53 }
 0x3ec   :  { %v7787_v26 = vcombine.high %v2724_v55, %v2728_v17  ;;  %v7786_v58 = vcombine.low %v2724_v55, %v2728_v17 }
 0x3ed   :  { %5889 = vmatpush1.bf16.msra.mxu0 %v7728_v29  ;;  %v2731_v29 = vld [vmem:[#allocation10 + $0x9d0] sm:$0xff] }
 0x3ee   :  { %6053 = vmatpush1.bf16.msra.mxu1 %v7730_v62  ;;  %5899 = vmatprep.subr.bf16.mxu0 %v7737_v56  ;;  %v2735_v62 = vld [vmem:[#allocation10 + $0x9f0] sm:$0xff]  ;;  %v2732_v56 = vld [vmem:[#allocation10 + $0x9d8] sm:$0xff] }
 0x3ef   :  { %6063 = vmatprep.subr.bf16.mxu1 %v7739_v59  ;;  %v2736_v59 = vld [vmem:[#allocation10 + $0x9f8] sm:$0xff]  ;;  %v7792_v3 = vcombine.low %v2731_v29, %v2735_v62 }
 0x3f0   :  { %5891 = vmatmul.mubr.bf16.vlgmr.msra.gmra.mrb[12].mxu0 %v8899_v7  ;;  %v7795_v61 = vcombine.high %v2732_v56, %v2736_v59 }
 0x3f1   :  { %6055 = vmatmul.mubr.bf16.vlgmr.msra.gmra.mrb[12].mxu1 %v8899_v7  ;;  %5900 = vmatpush1.bf16.msra.mxu0 %v7736_v60  ;;  %v7754_v7 = vcombine.low %v2692_v22, %v2696_v35  ;;  %v7793_v60 = vcombine.high %v2731_v29, %v2735_v62 }
 0x3f2   :  { %5931 = vmatprep.mubr.bf16.mxu0 %v8901_v9  ;;  %6064 = vmatpush1.bf16.msra.mxu1 %v7738_v63  ;;  %v2743_v63 = vld [vmem:[#allocation10 + $0xa30] sm:$0xff] }
 0x3f3   :  { %6095 = vmatprep.mubr.bf16.mxu1 %v8901_v9  ;;  %5901 = vmatprep.subr.bf16.mxu0 %v7745_v0  ;;  %v7760_v9 = vcombine.low %v2699_v41, %v2703_v48  ;;  %v2740_v0 = vld [vmem:[#allocation10 + $0xa18] sm:$0xff]  ;;  %v7801_v22 = vcombine.high %v2739_v54, %v2743_v63  ;;  %v7800_v41 = vcombine.low %v2739_v54, %v2743_v63 }
 0x3f4   :  { %6065 = vmatprep.subr.bf16.mxu1 %v7747_v4  ;;  %v7794_v4 = vcombine.low %v2732_v56, %v2736_v59  ;;  %v7803_v35 = vcombine.high %v2740_v0, %v2744_v2  ;;  %v7802_v48 = vcombine.low %v2740_v0, %v2744_v2 }
 0x3f5   :  { %5902 = vmatpush1.bf16.msra.mxu0 %v7744_v28  ;;  %v2747_v28 = vld [vmem:[#allocation10 + $0xa50] sm:$0xff] }
 0x3f6   :  { %6066 = vmatpush1.bf16.msra.mxu1 %v7746_v31  ;;  %5903 = vmatprep.subr.bf16.mxu0 %v7753_v36  ;;  %v2751_v31 = vld [vmem:[#allocation10 + $0xa70] sm:$0xff]  ;;  %v2748_v36 = vld [vmem:[#allocation10 + $0xa58] sm:$0xff] }
 0x3f7   :  { %6067 = vmatprep.subr.bf16.mxu1 %v7755_v21  ;;  %v2752_v21 = vld [vmem:[#allocation10 + $0xa78] sm:$0xff]  ;;  %v7809_v14 = vcombine.high %v2747_v28, %v2751_v31  ;;  %v7808_v13 = vcombine.low %v2747_v28, %v2751_v31 }
 0x3f8   :  { %v7811_v8 = vcombine.high %v2748_v36, %v2752_v21  ;;  %v7810_v5 = vcombine.low %v2748_v36, %v2752_v21 }
 0x3f9   :  { %5904 = vmatpush1.bf16.msra.mxu0 %v7752_v10  ;;  %v2755_v10 = vld [vmem:[#allocation10 + $0xa90] sm:$0xff] }
 0x3fa   :  { %6068 = vmatpush1.bf16.msra.mxu1 %v7754_v7  ;;  %5905 = vmatprep.subr.bf16.mxu0 %v7761_v57  ;;  %v2759_v7 = vld [vmem:[#allocation10 + $0xab0] sm:$0xff]  ;;  %v2756_v57 = vld [vmem:[#allocation10 + $0xa98] sm:$0xff] }
 0x3fb   :  { %6069 = vmatprep.subr.bf16.mxu1 %v7763_v11  ;;  %v2760_v11 = vld [vmem:[#allocation10 + $0xab8] sm:$0xff]  ;;  %v7817_v16 = vcombine.high %v2755_v10, %v2759_v7  ;;  %v7816_v39 = vcombine.low %v2755_v10, %v2759_v7 }
 0x3fc   :  { %v7819_v23 = vcombine.high %v2756_v57, %v2760_v11  ;;  %v7818_v40 = vcombine.low %v2756_v57, %v2760_v11 }
 0x3fd   :  { %5906 = vmatpush1.bf16.msra.mxu0 %v7760_v9  ;;  %v2763_v9 = vld [vmem:[#allocation10 + $0xad0] sm:$0xff] }
 0x3fe   :  { %6070 = vmatpush1.bf16.msra.mxu1 %v7762_v27  ;;  %5907 = vmatprep.subr.bf16.mxu0 %v7769_v33  ;;  %v2767_v27 = vld [vmem:[#allocation10 + $0xaf0] sm:$0xff]  ;;  %v2764_v33 = vld [vmem:[#allocation10 + $0xad8] sm:$0xff] }
 0x3ff   :  { %6071 = vmatprep.subr.bf16.mxu1 %v7771_v38  ;;  %v2768_v38 = vld [vmem:[#allocation10 + $0xaf8] sm:$0xff]  ;;  %v7825_v1 = vcombine.high %v2763_v9, %v2767_v27  ;;  %v7824_v18 = vcombine.low %v2763_v9, %v2767_v27 }
 0x400   :  { %v7827_v42 = vcombine.high %v2764_v33, %v2768_v38  ;;  %v7826_v53 = vcombine.low %v2764_v33, %v2768_v38  ;;  %v2816_v9 = vld [vmem:[#allocation10 + $0xc78] sm:$0xff]  ;;  %v2819_v38 = vld [vmem:[#allocation10 + $0xc90] sm:$0xff] }
 0x401   :  { %5908 = vmatpush1.bf16.msra.mxu0 %v7768_v45  ;;  %v2771_v45 = vld [vmem:[#allocation10 + $0xb10] sm:$0xff] }
 0x402   :  { %6072 = vmatpush1.bf16.msra.mxu1 %v7770_v51  ;;  %5909 = vmatprep.subr.bf16.mxu0 %v7777_v52  ;;  %v2775_v51 = vld [vmem:[#allocation10 + $0xb30] sm:$0xff]  ;;  %v2772_v52 = vld [vmem:[#allocation10 + $0xb18] sm:$0xff] }
 0x403   :  { %6073 = vmatprep.subr.bf16.mxu1 %v7779_v30  ;;  %v2776_v30 = vld [vmem:[#allocation10 + $0xb38] sm:$0xff]  ;;  %v7833_v55 = vcombine.high %v2771_v45, %v2775_v51  ;;  %v7832_v29 = vcombine.low %v2771_v45, %v2775_v51 }
 0x404   :  { %v7835_v17 = vcombine.high %v2772_v52, %v2776_v30  ;;  %v7834_v62 = vcombine.low %v2772_v52, %v2776_v30 }
 0x405   :  { %5910 = vmatpush1.bf16.msra.mxu0 %v7776_v20  ;;  %v2779_v20 = vld [vmem:[#allocation10 + $0xb50] sm:$0xff] }
 0x406   :  { %6074 = vmatpush1.bf16.msra.mxu1 %v7778_v15  ;;  %5911 = vmatprep.subr.bf16.mxu0 %v7785_v24  ;;  %v2783_v15 = vld [vmem:[#allocation10 + $0xb70] sm:$0xff]  ;;  %v2780_v24 = vld [vmem:[#allocation10 + $0xb58] sm:$0xff] }
 0x407   :  { %6075 = vmatprep.subr.bf16.mxu1 %v7787_v26  ;;  %v2784_v26 = vld [vmem:[#allocation10 + $0xb78] sm:$0xff]  ;;  %v7841_v56 = vcombine.high %v2779_v20, %v2783_v15  ;;  %v7840_v54 = vcombine.low %v2779_v20, %v2783_v15 }
 0x408   :  { %v7843_v59 = vcombine.high %v2780_v24, %v2784_v26  ;;  %v7842_v63 = vcombine.low %v2780_v24, %v2784_v26  ;;  %v2835_v26 = vld [vmem:[#allocation10 + $0xd10] sm:$0xff] }
 0x409   :  { %5912 = vmatpush1.bf16.msra.mxu0 %v7784_v43  ;;  %v2787_v43 = vld [vmem:[#allocation10 + $0xb90] sm:$0xff] }
 0x40a   :  { %6076 = vmatpush1.bf16.msra.mxu1 %v7786_v58  ;;  %5913 = vmatprep.subr.bf16.mxu0 %v7793_v60  ;;  %v2791_v58 = vld [vmem:[#allocation10 + $0xbb0] sm:$0xff]  ;;  %v2788_v60 = vld [vmem:[#allocation10 + $0xb98] sm:$0xff] }
 0x40b   :  { %6077 = vmatprep.subr.bf16.mxu1 %v7795_v61  ;;  %v2792_v61 = vld [vmem:[#allocation10 + $0xbb8] sm:$0xff]  ;;  %v7849_v0 = vcombine.high %v2787_v43, %v2791_v58  ;;  %v7848_v28 = vcombine.low %v2787_v43, %v2791_v58 }
 0x40c   :  { %v7851_v2 = vcombine.high %v2788_v60, %v2792_v61  ;;  %v7850_v31 = vcombine.low %v2788_v60, %v2792_v61  ;;  %v2843_v60 = vld [vmem:[#allocation10 + $0xd50] sm:$0xff] }
 0x40d   :  { %5914 = vmatpush1.bf16.msra.mxu0 %v7792_v3  ;;  %v2795_v3 = vld [vmem:[#allocation10 + $0xbd0] sm:$0xff] }
 0x40e   :  { %6078 = vmatpush1.bf16.msra.mxu1 %v7794_v4  ;;  %5915 = vmatprep.subr.bf16.mxu0 %v7801_v22  ;;  %v2799_v4 = vld [vmem:[#allocation10 + $0xbf0] sm:$0xff]  ;;  %v2796_v22 = vld [vmem:[#allocation10 + $0xbd8] sm:$0xff] }
 0x40f   :  { %6079 = vmatprep.subr.bf16.mxu1 %v7803_v35  ;;  %v2800_v35 = vld [vmem:[#allocation10 + $0xbf8] sm:$0xff]  ;;  %v7857_v36 = vcombine.high %v2795_v3, %v2799_v4  ;;  %v7856_v10 = vcombine.low %v2795_v3, %v2799_v4  ;;  %v2847_v61 = vld [vmem:[#allocation10 + $0xd70] sm:$0xff] }
 0x410   :  { %v7859_v21 = vcombine.high %v2796_v22, %v2800_v35  ;;  %v7858_v7 = vcombine.low %v2796_v22, %v2800_v35  ;;  %v7905_v3 = vcombine.high %v2843_v60, %v2847_v61  ;;  %v2851_v22 = vld [vmem:[#allocation10 + $0xd90] sm:$0xff] }
 0x411   :  { %5916 = vmatpush1.bf16.msra.mxu0 %v7800_v41  ;;  %v2803_v41 = vld [vmem:[#allocation10 + $0xc10] sm:$0xff] }
 0x412   :  { %6080 = vmatpush1.bf16.msra.mxu1 %v7802_v48  ;;  %5917 = vmatprep.subr.bf16.mxu0 %v7809_v14  ;;  %v2807_v48 = vld [vmem:[#allocation10 + $0xc30] sm:$0xff]  ;;  %v2804_v14 = vld [vmem:[#allocation10 + $0xc18] sm:$0xff] }
 0x413   :  { %6081 = vmatprep.subr.bf16.mxu1 %v7811_v8  ;;  %v2808_v8 = vld [vmem:[#allocation10 + $0xc38] sm:$0xff]  ;;  %v7865_v57 = vcombine.high %v2803_v41, %v2807_v48  ;;  %v2855_v35 = vld [vmem:[#allocation10 + $0xdb0] sm:$0xff] }
 0x414   :  { %v7867_v11 = vcombine.high %v2804_v14, %v2808_v8  ;;  %v7866_v27 = vcombine.low %v2804_v14, %v2808_v8  ;;  %v2859_v8 = vld [vmem:[#allocation10 + $0xdd0] sm:$0xff] }
 0x415   :  { %5918 = vmatpush1.bf16.msra.mxu0 %v7808_v13  ;;  %v2811_v13 = vld [vmem:[#allocation10 + $0xc50] sm:$0xff] }
 0x416   :  { %6082 = vmatpush1.bf16.msra.mxu1 %v7810_v5  ;;  %5919 = vmatprep.subr.bf16.mxu0 %v7817_v16  ;;  %v2815_v5 = vld [vmem:[#allocation10 + $0xc70] sm:$0xff]  ;;  %v7864_v16 = vcombine.low %v2803_v41, %v2807_v48  ;;  %v7913_v41 = vcombine.high %v2851_v22, %v2855_v35 }
 0x417   :  { %6083 = vmatprep.subr.bf16.mxu1 %v7819_v23  ;;  %v2812_v23 = vld [vmem:[#allocation10 + $0xc58] sm:$0xff]  ;;  %v7873_v33 = vcombine.high %v2811_v13, %v2815_v5  ;;  %v7872_v45 = vcombine.low %v2811_v13, %v2815_v5 }
 0x418   :  { %v7874_v51 = vcombine.low %v2812_v23, %v2816_v9  ;;  %v2860_v13 = vld [vmem:[#allocation10 + $0xdd8] sm:$0xff] }
 0x419   :  { %5920 = vmatpush1.bf16.msra.mxu0 %v7816_v39  ;;  %v2823_v39 = vld [vmem:[#allocation10 + $0xcb0] sm:$0xff]  ;;  %v2864_v5 = vld [vmem:[#allocation10 + $0xdf8] sm:$0xff] }
 0x41a   :  { %6084 = vmatpush1.bf16.msra.mxu1 %v7818_v40  ;;  %5921 = vmatprep.subr.bf16.mxu0 %v7825_v1  ;;  %v7875_v40 = vcombine.high %v2812_v23, %v2816_v9  ;;  %v2820_v1 = vld [vmem:[#allocation10 + $0xc98] sm:$0xff]  ;;  %v7881_v52 = vcombine.high %v2819_v38, %v2823_v39  ;;  %v7880_v20 = vcombine.low %v2819_v38, %v2823_v39 }
 0x41b   :  { %6085 = vmatprep.subr.bf16.mxu1 %v7827_v42  ;;  %v2824_v42 = vld [vmem:[#allocation10 + $0xcb8] sm:$0xff] }
 0x41c   :  { %v7883_v30 = vcombine.high %v2820_v1, %v2824_v42 }
 0x41d   :  { %5922 = vmatpush1.bf16.msra.mxu0 %v7824_v18  ;;  %v2827_v18 = vld [vmem:[#allocation10 + $0xcd0] sm:$0xff] }
 0x41e   :  { %6086 = vmatpush1.bf16.msra.mxu1 %v7826_v53  ;;  %5923 = vmatprep.subr.bf16.mxu0 %v7833_v55  ;;  %v2831_v53 = vld [vmem:[#allocation10 + $0xcf0] sm:$0xff]  ;;  %v2828_v55 = vld [vmem:[#allocation10 + $0xcd8] sm:$0xff] }
 0x41f   :  { %6087 = vmatprep.subr.bf16.mxu1 %v7835_v17  ;;  %v2832_v17 = vld [vmem:[#allocation10 + $0xcf8] sm:$0xff]  ;;  %v7889_v15 = vcombine.high %v2827_v18, %v2831_v53 }
 0x420   :  { %v7891_v24 = vcombine.high %v2828_v55, %v2832_v17 }
 0x421   :  { %5924 = vmatpush1.bf16.msra.mxu0 %v7832_v29  ;;  %v2839_v29 = vld [vmem:[#allocation10 + $0xd30] sm:$0xff] }
 0x422   :  { %6088 = vmatpush1.bf16.msra.mxu1 %v7834_v62  ;;  %5925 = vmatprep.subr.bf16.mxu0 %v7841_v56  ;;  %v2836_v62 = vld [vmem:[#allocation10 + $0xd18] sm:$0xff]  ;;  %v7897_v43 = vcombine.high %v2835_v26, %v2839_v29 }
 0x423   :  { %6089 = vmatprep.subr.bf16.mxu1 %v7843_v59  ;;  %v2840_v56 = vld [vmem:[#allocation10 + $0xd38] sm:$0xff]  ;;  %v7890_v59 = vcombine.low %v2828_v55, %v2832_v17  ;;  %v2871_v55 = vld [vmem:[#allocation10 + $0xe30] sm:$0xff] }
 0x424   :  { %v7899_v58 = vcombine.high %v2836_v62, %v2840_v56 }
 0x425   :  { %5926 = vmatpush1.bf16.msra.mxu0 %v7840_v54  ;;  %v2844_v54 = vld [vmem:[#allocation10 + $0xd58] sm:$0xff] }
 0x426   :  { %6090 = vmatpush1.bf16.msra.mxu1 %v7842_v63  ;;  %5927 = vmatprep.subr.bf16.mxu0 %v7849_v0  ;;  %v2848_v63 = vld [vmem:[#allocation10 + $0xd78] sm:$0xff]  ;;  %v7896_v0 = vcombine.low %v2835_v26, %v2839_v29 }
 0x427   :  { %6091 = vmatprep.subr.bf16.mxu1 %v7851_v2  ;;  %v7898_v2 = vcombine.low %v2836_v62, %v2840_v56  ;;  %v7907_v4 = vcombine.high %v2844_v54, %v2848_v63 }
 0x429   :  { %5928 = vmatpush1.bf16.msra.mxu0 %v7848_v28  ;;  %v2852_v28 = vld [vmem:[#allocation10 + $0xd98] sm:$0xff] }
 0x42a   :  { %6092 = vmatpush1.bf16.msra.mxu1 %v7850_v31  ;;  %5929 = vmatprep.subr.bf16.mxu0 %v7857_v36  ;;  %v2856_v31 = vld [vmem:[#allocation10 + $0xdb8] sm:$0xff]  ;;  %v7904_v36 = vcombine.low %v2843_v60, %v2847_v61  ;;  %v2875_v61 = vld [vmem:[#allocation10 + $0xe50] sm:$0xff] }
 0x42b   :  { %6093 = vmatprep.subr.bf16.mxu1 %v7859_v21  ;;  %v7906_v21 = vcombine.low %v2844_v54, %v2848_v63  ;;  %v7915_v14 = vcombine.high %v2852_v28, %v2856_v31  ;;  %v2879_v54 = vld [vmem:[#allocation10 + $0xe70] sm:$0xff] }
 0x42d   :  { %5930 = vmatpush1.bf16.msra.mxu0 %v7856_v10  ;;  %v2863_v10 = vld [vmem:[#allocation10 + $0xdf0] sm:$0xff] }
 0x42e   :  { %6094 = vmatpush1.bf16.msra.mxu1 %v7858_v7  ;;  %5940 = vmatprep.subr.bf16.mxu0 %v7865_v57  ;;  %v7920_v29 = vcombine.low %v2859_v8, %v2863_v10 }
 0x42f   :  { %6104 = vmatprep.subr.bf16.mxu1 %v7867_v11 }
 0x430   :  { %5932 = vmatmul.mubr.bf16.vlgmr.msra.gmra.mrb[12].mxu0 %v8909_v34 }
 0x431   :  { %6096 = vmatmul.mubr.bf16.vlgmr.msra.gmra.mrb[12].mxu1 %v8909_v34  ;;  %5941 = vmatpush1.bf16.msra.mxu0 %v7864_v16  ;;  %v7882_v34 = vcombine.low %v2820_v1, %v2824_v42  ;;  %v7914_v42 = vcombine.low %v2852_v28, %v2856_v31 }
 0x432   :  { %5972 = vmatprep.mubr.bf16.mxu0 %v8912_v32  ;;  %6105 = vmatpush1.bf16.msra.mxu1 %v7866_v27 }
 0x433   :  { %6136 = vmatprep.mubr.bf16.mxu1 %v8912_v32  ;;  %5942 = vmatprep.subr.bf16.mxu0 %v7873_v33  ;;  %v7888_v32 = vcombine.low %v2827_v18, %v2831_v53  ;;  %v7912_v33 = vcombine.low %v2851_v22, %v2855_v35  ;;  %v7923_v18 = vcombine.high %v2860_v13, %v2864_v5  ;;  %v2867_v53 = vld [vmem:[#allocation10 + $0xe10] sm:$0xff] }
 0x434   :  { %6106 = vmatprep.subr.bf16.mxu1 %v7875_v40  ;;  %v7928_v35 = vcombine.low %v2867_v53, %v2871_v55 }
 0x435   :  { %5943 = vmatpush1.bf16.msra.mxu0 %v7872_v45  ;;  %v7921_v45 = vcombine.high %v2859_v8, %v2863_v10  ;;  %v2883_v10 = vld [vmem:[#allocation10 + $0xe90] sm:$0xff] }
 0x436   :  { %6107 = vmatpush1.bf16.msra.mxu1 %v7874_v51  ;;  %5944 = vmatprep.subr.bf16.mxu0 %v7881_v52 }
 0x437   :  { %6108 = vmatprep.subr.bf16.mxu1 %v7883_v30 }
 0x439   :  { %5945 = vmatpush1.bf16.msra.mxu0 %v7880_v20 }
 0x43a   :  { %6109 = vmatpush1.bf16.msra.mxu1 %v7882_v34  ;;  %5946 = vmatprep.subr.bf16.mxu0 %v7889_v15  ;;  %v2868_v34 = vld [vmem:[#allocation10 + $0xe18] sm:$0xff] }
 0x43b   :  { %6110 = vmatprep.subr.bf16.mxu1 %v7891_v24  ;;  %v2872_v15 = vld [vmem:[#allocation10 + $0xe38] sm:$0xff] }
 0x43c   :  { %v7931_v60 = vcombine.high %v2868_v34, %v2872_v15 }
 0x43d   :  { %5947 = vmatpush1.bf16.msra.mxu0 %v7888_v32  ;;  %v7922_v32 = vcombine.low %v2860_v13, %v2864_v5 }
 0x43e   :  { %6111 = vmatpush1.bf16.msra.mxu1 %v7890_v59  ;;  %5948 = vmatprep.subr.bf16.mxu0 %v7897_v43  ;;  %v7929_v59 = vcombine.high %v2867_v53, %v2871_v55  ;;  %v2895_v53 = vld [vmem:[#allocation10 + $0xef0] sm:$0xff] }
 0x43f   :  { %6112 = vmatprep.subr.bf16.mxu1 %v7899_v58 }
 0x441   :  { %5949 = vmatpush1.bf16.msra.mxu0 %v7896_v0 }
 0x442   :  { %6113 = vmatpush1.bf16.msra.mxu1 %v7898_v2  ;;  %5950 = vmatprep.subr.bf16.mxu0 %v7905_v3  ;;  %v2876_v2 = vld [vmem:[#allocation10 + $0xe58] sm:$0xff] }
 0x443   :  { %v8936_v48 = vpop.f32.mrb[8].mxu0  ;;  %6114 = vmatprep.subr.bf16.mxu1 %v7907_v4  ;;  %v2880_v3 = vld [vmem:[#allocation10 + $0xe78] sm:$0xff] }
 0x444   :  { %v6147_v7 = vrot.slane %v8936_v48, 4  ;;  %v8939_v57 = vpop.f32.mrb[8].mxu1  ;;  %v8941_v11 = vpop.f32.mrb[9].mxu0  ;;  %v7939_v8 = vcombine.high %v2876_v2, %v2880_v3 }
 0x445   :  { %v6159_v16 = vrot.slane %v8939_v57, 4  ;;  %v6153_v23 = vrot.slane %v8941_v11, 4  ;;  %v8945_v9 = vpop.f32.mrb[9].mxu1  ;;  %v5650_v27 = vpop.f32.mrb[10].mxu0  ;;  %5951 = vmatpush1.bf16.msra.mxu0 %v7904_v36  ;;  %v7930_v36 = vcombine.low %v2868_v34, %v2872_v15  ;;  %v2892_v15 = vld [vmem:[#allocation10 + $0xed8] sm:$0xff] }
 0x446   :  { %v6148_v38 = vadd.f32 %v6147_v7, %v8936_v48  ;;  %v6165_v39 = vrot.slane %v8945_v9, 4  ;;  %v5814_v40 = vpop.f32.mrb[10].mxu1  ;;  %6115 = vmatpush1.bf16.msra.mxu1 %v7906_v21  ;;  %v5651_v1 = vpop.f32.mrb[11].mxu0  ;;  %5952 = vmatprep.subr.bf16.mxu0 %v7913_v41  ;;  %v7937_v21 = vcombine.high %v2875_v61, %v2879_v54  ;;  %v2887_v7 = vld [vmem:[#allocation10 + $0xeb0] sm:$0xff] }
 0x447   :  { %v6160_v51 = vadd.f32 %v6159_v16, %v8939_v57  ;;  %v6154_v52 = vadd.f32 %v6153_v23, %v8941_v11  ;;  %v5815_v30 = vpop.f32.mrb[11].mxu1  ;;  %6116 = vmatprep.subr.bf16.mxu1 %v7915_v14  ;;  %v2884_v16 = vld [vmem:[#allocation10 + $0xe98] sm:$0xff]  ;;  %v7938_v1 = vcombine.low %v2876_v2, %v2880_v3  ;;  %v7944_v34 = vcombine.low %v2883_v10, %v2887_v7 }
 0x448   :  { %v6149_v17 = vrot.slane %v6148_v38, 2  ;;  %v6166_v20 = vadd.f32 %v6165_v39, %v8945_v9  ;;  %v2888_v23 = vld [vmem:[#allocation10 + $0xeb8] sm:$0xff] }
 0x449   :  { %v6161_v24 = vrot.slane %v6160_v51, 2  ;;  %v6155_v26 = vrot.slane %v6154_v52, 2  ;;  %5953 = vmatpush1.bf16.msra.mxu0 %v7912_v33  ;;  %v7947_v30 = vcombine.high %v2884_v16, %v2888_v23 }
 0x44a   :  { %v6150_v62 = vadd.f32 %v6149_v17, %v6148_v38  ;;  %v6167_v56 = vrot.slane %v6166_v20, 2  ;;  %6117 = vmatpush1.bf16.msra.mxu1 %v7914_v42  ;;  %5954 = vmatprep.subr.bf16.mxu0 %v7921_v45  ;;  %v7936_v38 = vcombine.low %v2875_v61, %v2879_v54  ;;  %v7945_v42 = vcombine.high %v2883_v10, %v2887_v7 }
 0x44b   :  { %v6162_v43 = vadd.f32 %v6161_v24, %v6160_v51  ;;  %v6156_v58 = vadd.f32 %v6155_v26, %v6154_v52  ;;  %6118 = vmatprep.subr.bf16.mxu1 %v7923_v18  ;;  %v2891_v18 = vld [vmem:[#allocation10 + $0xed0] sm:$0xff]  ;;  %v2896_v24 = vld [vmem:[#allocation10 + $0xef8] sm:$0xff] }
 0x44c   :  { %v6151_v63 = vrot.slane %v6150_v62, 1  ;;  %v6168_v0 = vadd.f32 %v6167_v56, %v6166_v20  ;;  %v7946_v56 = vcombine.low %v2884_v16, %v2888_v23  ;;  %v7955_v54 = vcombine.high %v2892_v15, %v2896_v24  ;;  %v2911_v16 = vld [vmem:[#allocation10 + $0xf70] sm:$0xff] }
 0x44d   :  { %v6163_v4 = vrot.slane %v6162_v43, 1  ;;  %v6157_v22 = vrot.slane %v6156_v58, 1  ;;  %5955 = vmatpush1.bf16.msra.mxu0 %v7920_v29 }
 0x44e   :  { %v6152_v28 = vadd.f32 %v6151_v63, %v6150_v62  ;;  %v6169_v31 = vrot.slane %v6168_v0, 1  ;;  %6119 = vmatpush1.bf16.msra.mxu1 %v7922_v32  ;;  %5956 = vmatprep.subr.bf16.mxu0 %v7929_v59  ;;  %v2899_v63 = vld [vmem:[#allocation10 + $0xf10] sm:$0xff] }
 0x44f   :  { %v6164_v41 = vadd.f32 %v6163_v4, %v6162_v43  ;;  %v6158_v14 = vadd.f32 %v6157_v22, %v6156_v58  ;;  %6120 = vmatprep.subr.bf16.mxu1 %v7931_v60  ;;  %v7953_v58 = vcombine.high %v2891_v18, %v2895_v53  ;;  %v2900_v22 = vld [vmem:[#allocation10 + $0xf18] sm:$0xff] }
 0x450   :  { %v6195_v13 = vmul.f32 0.125, %v6152_v28  ;;  %v6170_v5 = vadd.f32 %v6169_v31, %v6168_v0  ;;  %v2903_v0 = vld [vmem:[#allocation10 + $0xf30] sm:$0xff] }
 0x451   :  { %v6197_v27 = vmul.f32 0.125, %v6164_v41  ;;  %v6196_v33 = vmul.f32 0.125, %v6158_v14  ;;  %5957 = vmatpush1.bf16.msra.mxu0 %v7928_v35  ;;  %v2904_v35 = vld [vmem:[#allocation10 + $0xf38] sm:$0xff]  ;;  %v7954_v14 = vcombine.low %v2892_v15, %v2896_v24 }
 0x452   :  { %v6203_v39 = vsub.f32 %v8936_v48, %v6195_v13  ;;  %v6198_v40 = vmul.f32 0.125, %v6170_v5  ;;  %6121 = vmatpush1.bf16.msra.mxu1 %v7930_v36  ;;  %5958 = vmatprep.subr.bf16.mxu0 %v7937_v21  ;;  %v7952_v36 = vcombine.low %v2891_v18, %v2895_v53  ;;  %v2907_v5 = vld [vmem:[#allocation10 + $0xf50] sm:$0xff]  ;;  %v2916_v15 = vld [vmem:[#allocation10 + $0xf98] sm:$0xff] }
 0x453   :  { %v6205_v45 = vsub.f32 %v8939_v57, %v6197_v27  ;;  %v6204_v51 = vsub.f32 %v8941_v11, %v6196_v33  ;;  %v6358_v52 = vcombine.low %v6195_v13, %v6196_v33  ;;  %6122 = vmatprep.subr.bf16.mxu1 %v7939_v8  ;;  %v7961_v8 = vcombine.high %v2899_v63, %v2903_v0  ;;  %v2908_v33 = vld [vmem:[#allocation10 + $0xf58] sm:$0xff] }
 0x454   :  { %v6211_v55 = vmul.f32 %v6203_v39, %v6203_v39  ;;  %v6206_v17 = vsub.f32 %v8945_v9, %v6198_v40  ;;  %v6359_v20 = vcombine.low %v6197_v27, %v6198_v40  ;;  %v7963_v13 = vcombine.high %v2900_v22, %v2904_v35  ;;  %v2920_v24 = vld [vmem:[#allocation10 + $0xfb8] sm:$0xff] }
 0x455   :  { %v6213_v26 = vmul.f32 %v6205_v45, %v6205_v45  ;;  %v6212_v29 = vmul.f32 %v6204_v51, %v6204_v51  ;;  %v8957_v62 = vrot.slane %v6358_v52, %v8728_v19  ;;  %5959 = vmatpush1.bf16.msra.mxu0 %v7936_v38  ;;  %v2912_v38 = vld [vmem:[#allocation10 + $0xf78] sm:$0xff]  ;;  %v7962_v51 = vcombine.low %v2900_v22, %v2904_v35 }
 0x456   :  { %v6219_v32 = vrot.slane %v6211_v55, 4  ;;  %v6214_v59 = vmul.f32 %v6206_v17, %v6206_v17  ;;  %v8960_v43 = vrot.slane %v6359_v20, %v8728_v19  ;;  %6123 = vmatpush1.bf16.msra.mxu1 %v7938_v1  ;;  %5960 = vmatprep.subr.bf16.mxu0 %v7945_v42  ;;  %v7960_v1 = vcombine.low %v2899_v63, %v2903_v0  ;;  %v2919_v17 = vld [vmem:[#allocation10 + $0xfb0] sm:$0xff]  ;;  %v2924_v35 = vld [vmem:[#allocation10 + $0xfd8] sm:$0xff] }
 0x457   :  { %v6231_v60 = vrot.slane %v6213_v26, 4  ;;  %v6225_v61 = vrot.slane %v6212_v29, 4  ;;  %6124 = vmatprep.subr.bf16.mxu1 %v7947_v30  ;;  %v7969_v52 = vcombine.high %v2907_v5, %v2911_v16  ;;  %v7971_v53 = vcombine.high %v2908_v33, %v2912_v38  ;;  %v2923_v0 = vld [vmem:[#allocation10 + $0xfd0] sm:$0xff] }
 0x458   :  { %v6220_v2 = vadd.f32 %v6219_v32, %v6211_v55  ;;  %v6237_v3 = vrot.slane %v6214_v59, 4  ;;  %v6390_v4 = vcombine.low %v8957_v62, %v8960_v43  ;;  %v2915_v55 = vld [vmem:[#allocation10 + $0xf90] sm:$0xff]  ;;  %v7979_v63 = vcombine.high %v2916_v15, %v2920_v24 }
 0x459   :  { %v6232_v28 = vadd.f32 %v6231_v60, %v6213_v26  ;;  %v6226_v31 = vadd.f32 %v6225_v61, %v6212_v29  ;;  %5961 = vmatpush1.bf16.msra.mxu0 %v7944_v34  ;;  %v7977_v60 = vcombine.high %v2915_v55, %v2919_v17 }
 0x45a   :  { %v6221_v21 = vrot.slane %v6220_v2, 2  ;;  %v6238_v41 = vadd.f32 %v6237_v3, %v6214_v59  ;;  %6125 = vmatpush1.bf16.msra.mxu1 %v7946_v56  ;;  %5962 = vmatprep.subr.bf16.mxu0 %v7953_v58  ;;  %v7968_v56 = vcombine.low %v2907_v5, %v2911_v16  ;;  %v7970_v58 = vcombine.low %v2908_v33, %v2912_v38 }
 0x45b   :  { %v6233_v10 = vrot.slane %v6232_v28, 2  ;;  %v6227_v7 = vrot.slane %v6226_v31, 2  ;;  %6126 = vmatprep.subr.bf16.mxu1 %v7955_v54 }
 0x45c   :  { %v6222_v23 = vadd.f32 %v6221_v21, %v6220_v2  ;;  %v6239_v27 = vrot.slane %v6238_v41, 2  ;;  %v2927_v2 = vld [vmem:[#allocation10 + $0xff0] sm:$0xff]  ;;  %v7976_v21 = vcombine.low %v2915_v55, %v2919_v17 }
 0x45d   :  { %v6234_v39 = vadd.f32 %v6233_v10, %v6232_v28  ;;  %v6228_v40 = vadd.f32 %v6227_v7, %v6226_v31  ;;  %5963 = vmatpush1.bf16.msra.mxu0 %v7952_v36  ;;  %v2928_v28 = vld [vmem:[#allocation10 + $0xff8] sm:$0xff]  ;;  %v7984_v7 = vcombine.low %v2923_v0, %v2927_v2  ;;  %v8229_v55 = vld [vmem:[%s9240_s7 + $0x50] sm:$0xff]  }
 0x45e   :  { %v6223_v42 = vrot.slane %v6222_v23, 1  ;;  %v6240_v45 = vadd.f32 %v6239_v27, %v6238_v41  ;;  %6127 = vmatpush1.bf16.msra.mxu1 %v7954_v14  ;;  %5964 = vmatprep.subr.bf16.mxu0 %v7961_v8  ;;  %v7978_v14 = vcombine.low %v2916_v15, %v2920_v24  ;;  %v7985_v8 = vcombine.high %v2923_v0, %v2927_v2  ;;  %v8230_v17 = vld [vmem:[%s9240_s7 + $0xd0] sm:$0xff]   ;;  %v8233_v15 = vld [vmem:[%s9240_s7 + $0x58] sm:$0xff]  }
 0x45f   :  { %v6235_v30 = vrot.slane %v6234_v39, 1  ;;  %v6229_v18 = vrot.slane %v6228_v40, 1  ;;  %6128 = vmatprep.subr.bf16.mxu1 %v7963_v13  ;;  %v7987_v10 = vcombine.high %v2924_v35, %v2928_v28  ;;  %v7986_v13 = vcombine.low %v2924_v35, %v2928_v28  ;;  %v8234_v24 = vld [vmem:[%s9240_s7 + $0xd8] sm:$0xff]   ;;  %v8245_v0 = vld [vmem:[%s9240_s7 + $0x70] sm:$0xff]  }
 0x460   :  { %v6224_v20 = vadd.f32 %v6223_v42, %v6222_v23  ;;  %v6241_v34 = vrot.slane %v6240_v45, 1  ;;  %v8221_v42 = vld [vmem:[%s9240_s7 + $0x40] sm:$0xff]   ;;  %v8246_v2 = vld [vmem:[%s9240_s7 + $0xf0] sm:$0xff]   ;;  %v8249_v35 = vld [vmem:[%s9240_s7 + $0x78] sm:$0xff]  }
 0x461   :  { %v6236_v26 = vadd.f32 %v6235_v30, %v6234_v39  ;;  %v6230_v29 = vadd.f32 %v6229_v18, %v6228_v40  ;;  %5965 = vmatpush1.bf16.msra.mxu0 %v7960_v1  ;;  %v8226_v30 = vld [vmem:[%s9240_s7 + $0xc8] sm:$0xff]   ;;  %v8250_v28 = vld [vmem:[%s9240_s7 + $0xf8] sm:$0xff]  }
 0x462   :  { %v6267_v32 = vmul.f32 0.125, %v6224_v20  ;;  %v6242_v59 = vadd.f32 %v6241_v34, %v6240_v45  ;;  %6129 = vmatpush1.bf16.msra.mxu1 %v7962_v51  ;;  %5966 = vmatprep.subr.bf16.mxu0 %v7969_v52  ;;  %v8223_v45 = vld [vmem:[%s9240_s7] sm:$0xff]   ;;  %v8225_v52 = vld [vmem:[%s9240_s7 + $0x48] sm:$0xff]   ;;  %v8231_v20 = vld [vmem:[%s9240_s7 + $0x10] sm:$0xff]  }
 0x463   :  { %v6269_v61 = vmul.f32 0.125, %v6236_v26  ;;  %v6268_v54 = vmul.f32 0.125, %v6230_v29  ;;  %6130 = vmatprep.subr.bf16.mxu1 %v7971_v53  ;;  %v8224_v51 = vld [vmem:[%s9240_s7 + $0x80] sm:$0xff]   ;;  %v8227_v18 = vld [vmem:[%s9240_s7 + $0x8] sm:$0xff]   ;;  %v8232_v34 = vld [vmem:[%s9240_s7 + $0x90] sm:$0xff]  }
 0x464   :  { %v6275_v3 = vadd.f32 1e-05, %v6267_v32  ;;  %v6270_v22 = vmul.f32 0.125, %v6242_v59  ;;  %v8228_v53 = vld [vmem:[%s9240_s7 + $0x88] sm:$0xff]   ;;  %v8235_v26 = vld [vmem:[%s9240_s7 + $0x18] sm:$0xff]   ;;  %v8238_v32 = vld [vmem:[%s9240_s7 + $0xe0] sm:$0xff]  }
 0x465   :  { %v6277_v31 = vadd.f32 1e-05, %v6269_v61  ;;  %v6276_v36 = vadd.f32 1e-05, %v6268_v54  ;;  %5967 = vmatpush1.bf16.msra.mxu0 %v7968_v56  ;;  %v8236_v29 = vld [vmem:[%s9240_s7 + $0x98] sm:$0xff]   ;;  %v8237_v56 = vld [vmem:[%s9240_s7 + $0x60] sm:$0xff]  }
 0x466   :  { %8301 = vrsqrt.f32 %v6275_v3  ;;  %v6278_v41 = vadd.f32 1e-05, %v6270_v22  ;;  %6131 = vmatpush1.bf16.msra.mxu1 %v7970_v58  ;;  %5968 = vmatprep.subr.bf16.mxu0 %v7977_v60  ;;  %v8239_v59 = vld [vmem:[%s9240_s7 + $0x20] sm:$0xff]   ;;  %v8241_v60 = vld [vmem:[%s9240_s7 + $0x68] sm:$0xff]   ;;  %v8247_v3 = vld [vmem:[%s9240_s7 + $0x30] sm:$0xff]  }
 0x467   :  { %8303 = vrsqrt.f32 %v6277_v31  ;;  %6132 = vmatprep.subr.bf16.mxu1 %v7979_v63  ;;  %v8240_v58 = vld [vmem:[%s9240_s7 + $0xa0] sm:$0xff]   ;;  %v8242_v61 = vld [vmem:[%s9240_s7 + $0xe8] sm:$0xff]   ;;  %v8248_v22 = vld [vmem:[%s9240_s7 + $0xb0] sm:$0xff]  }
 0x468   :  { %8305 = vrsqrt.f32 %v6276_v36  ;;  %v8243_v54 = vld [vmem:[%s9240_s7 + $0x28] sm:$0xff]   ;;  %v8251_v31 = vld [vmem:[%s9240_s7 + $0x38] sm:$0xff]  }
 0x469   :  { %8307 = vrsqrt.f32 %v6278_v41  ;;  %5969 = vmatpush1.bf16.msra.mxu0 %v7976_v21  ;;  %v8244_v63 = vld [vmem:[%s9240_s7 + $0xa8] sm:$0xff]   ;;  %v8252_v36 = vld [vmem:[%s9240_s7 + $0xb8] sm:$0xff]   ;;  %v8253_v21 = vld [vmem:[%s9240_s7 + $0x140] sm:$0xff]  }
 0x46a   :  { %6133 = vmatpush1.bf16.msra.mxu1 %v7978_v14  ;;  %5970 = vmatprep.subr.bf16.mxu0 %v7985_v8  ;;  %v8254_v41 = vld [vmem:[%s9240_s7 + $0x1c0] sm:$0xff]  }
 0x46b   :  { %6134 = vmatprep.subr.bf16.mxu1 %v7987_v10 }
 0x46d   :  { %5971 = vmatpush1.bf16.msra.mxu0 %v7984_v7 }
 0x46e   :  { %6135 = vmatpush1.bf16.msra.mxu1 %v7986_v13  ;;  %8055 = vmatprep.subr.bf16.mxu0 %v8221_v42 }
 0x470   :  { %v8302_v5 = vpop.eup %8301  ;;  %5973 = vmatmul.mubr.bf16.vlgmr.msra.gmra.mrb[12].mxu0 %v8918_v25 }
 0x471   :  { %v8304_v16 = vpop.eup %8303  ;;  %6137 = vmatmul.mubr.bf16.vlgmr.msra.gmra.mrb[12].mxu1 %v8918_v25  ;;  %v8222_v25 = vld [vmem:[%s9240_s7 + $0xc0] sm:$0xff]   ;;  %8056 = vmatpush3.bf16.msra.mxu0 %v8223_v45 }
 0x472   :  { %v8306_v23 = vpop.eup %8305  ;;  %8077 = vmatprep.subr.bf16.mxu1 %v8222_v25  ;;  %8057 = vmatprep.subr.bf16.mxu0 %v8225_v52 }
 0x473   :  { %v8308_v27 = vpop.eup %8307  ;;  %v6299_v33 = vcombine.low %v8302_v5, %v8306_v23  ;;  %8078 = vmatpush3.bf16.msra.mxu1 %v8224_v51 }
 0x474   :  { %v6300_v38 = vcombine.low %v8304_v16, %v8308_v27  ;;  %8079 = vmatprep.subr.bf16.mxu1 %v8226_v30 }
 0x475   :  { %v8967_v39 = vrot.slane %v6299_v33, %v8728_v19  ;;  %8058 = vmatpush3.bf16.msra.mxu0 %v8227_v18 }
 0x476   :  { %v8970_v40 = vrot.slane %v6300_v38, %v8728_v19  ;;  %8059 = vmatprep.subr.bf16.mxu0 %v8229_v55 }
 0x477   :  { %8080 = vmatpush3.bf16.msra.mxu1 %v8228_v53 }
 0x478   :  { %v6331_v1 = vcombine.low %v8967_v39, %v8970_v40  ;;  %8081 = vmatprep.subr.bf16.mxu1 %v8230_v17 }
 0x479   :  { %8060 = vmatpush3.bf16.msra.mxu0 %v8231_v20 }
 0x47a   :  { %8061 = vmatprep.subr.bf16.mxu0 %v8233_v15 }
 0x47b   :  { %8082 = vmatpush3.bf16.msra.mxu1 %v8232_v34 }
 0x47c   :  { %8083 = vmatprep.subr.bf16.mxu1 %v8234_v24 }
 0x47d   :  { %8062 = vmatpush3.bf16.msra.mxu0 %v8235_v26 }
 0x47e   :  { %8063 = vmatprep.subr.bf16.mxu0 %v8237_v56 }
 0x47f   :  { %8084 = vmatpush3.bf16.msra.mxu1 %v8236_v29 }
 0x480   :  { %8085 = vmatprep.subr.bf16.mxu1 %v8238_v32 }
 0x481   :  { %8064 = vmatpush3.bf16.msra.mxu0 %v8239_v59 }
 0x482   :  { %8065 = vmatprep.subr.bf16.mxu0 %v8241_v60 }
 0x483   :  { %8086 = vmatpush3.bf16.msra.mxu1 %v8240_v58 }
 0x484   :  { %8087 = vmatprep.subr.bf16.mxu1 %v8242_v61 }
 0x485   :  { %8066 = vmatpush3.bf16.msra.mxu0 %v8243_v54 }
 0x486   :  { %8067 = vmatprep.subr.bf16.mxu0 %v8245_v0 }
 0x487   :  { %8088 = vmatpush3.bf16.msra.mxu1 %v8244_v63 }
 0x488   :  { %8089 = vmatprep.subr.bf16.mxu1 %v8246_v2 }
 0x489   :  { %8068 = vmatpush3.bf16.msra.mxu0 %v8247_v3 }
 0x48a   :  { %8069 = vmatprep.subr.bf16.mxu0 %v8249_v35 }
 0x48b   :  { %8090 = vmatpush3.bf16.msra.mxu1 %v8248_v22 }
 0x48c   :  { %8091 = vmatprep.subr.bf16.mxu1 %v8250_v28 }
 0x48d   :  { %8070 = vmatpush3.bf16.msra.mxu0 %v8251_v31 }
 0x48e   :  { %8099 = vmatprep.subr.bf16.mxu0 %v8253_v21 }
 0x48f   :  { %8092 = vmatpush3.bf16.msra.mxu1 %v8252_v36 }
 0x490   :  { %8121 = vmatprep.subr.bf16.mxu1 %v8254_v41 }
 0x543   :  { %v9076_v14 = vpop.f32.mrb[12].mxu0 }
 0x544   :  { %v6171_v8 = vrot.slane %v9076_v14, 4  ;;  %v9079_v10 = vpop.f32.mrb[12].mxu1  ;;  %v9081_v7 = vpop.f32.mrb[13].mxu0 }
 0x545   :  { %v6183_v13 = vrot.slane %v9079_v10, 4  ;;  %v6177_v5 = vrot.slane %v9081_v7, 4  ;;  %v9085_v16 = vpop.f32.mrb[13].mxu1  ;;  %v5978_v23 = vpop.f32.mrb[14].mxu0 }
 0x546   :  { %v6172_v27 = vadd.f32 %v6171_v8, %v9076_v14  ;;  %v6189_v33 = vrot.slane %v9085_v16, 4  ;;  %v6142_v38 = vpop.f32.mrb[14].mxu1  ;;  %v5979_v42 = vpop.f32.mrb[15].mxu0 }
 0x547   :  { %v6184_v25 = vadd.f32 %v6183_v13, %v9079_v10  ;;  %v6178_v45 = vadd.f32 %v6177_v5, %v9081_v7  ;;  %v6143_v51 = vpop.f32.mrb[15].mxu1 }
 0x548   :  { %v6173_v52 = vrot.slane %v6172_v27, 2  ;;  %v6190_v30 = vadd.f32 %v6189_v33, %v9085_v16 }
 0x549   :  { %v6185_v18 = vrot.slane %v6184_v25, 2  ;;  %v6179_v53 = vrot.slane %v6178_v45, 2 }
 0x54a   :  { %v6174_v55 = vadd.f32 %v6173_v52, %v6172_v27  ;;  %v6191_v17 = vrot.slane %v6190_v30, 2  ;;  %v6398_v52 = vrot.slane %v6390_v4, %v8728_v19 }
 0x54b   :  { %v6186_v20 = vadd.f32 %v6185_v18, %v6184_v25  ;;  %v6180_v34 = vadd.f32 %v6179_v53, %v6178_v45 }
 0x54c   :  { %v6175_v15 = vrot.slane %v6174_v55, 1  ;;  %v6192_v24 = vadd.f32 %v6191_v17, %v6190_v30 }
 0x54d   :  { %v6187_v26 = vrot.slane %v6186_v20, 1  ;;  %v6181_v29 = vrot.slane %v6180_v34, 1 }
 0x54e   :  { %v6176_v56 = vadd.f32 %v6175_v15, %v6174_v55  ;;  %v6193_v32 = vrot.slane %v6192_v24, 1 }
 0x54f   :  { %v6188_v59 = vadd.f32 %v6187_v26, %v6186_v20  ;;  %v6182_v58 = vadd.f32 %v6181_v29, %v6180_v34 }
 0x550   :  { %v6199_v60 = vmul.f32 0.125, %v6176_v56  ;;  %v6194_v61 = vadd.f32 %v6193_v32, %v6192_v24 }
 0x551   :  { %v6201_v54 = vmul.f32 0.125, %v6188_v59  ;;  %v6200_v63 = vmul.f32 0.125, %v6182_v58 }
 0x552   :  { %v6207_v0 = vsub.f32 %v9076_v14, %v6199_v60  ;;  %v6202_v2 = vmul.f32 0.125, %v6194_v61 }
 0x553   :  { %v6209_v3 = vsub.f32 %v9079_v10, %v6201_v54  ;;  %v6208_v22 = vsub.f32 %v9081_v7, %v6200_v63  ;;  %v6360_v35 = vcombine.low %v6199_v60, %v6200_v63 }
 0x554   :  { %v6215_v28 = vmul.f32 %v6207_v0, %v6207_v0  ;;  %v6210_v31 = vsub.f32 %v9085_v16, %v6202_v2  ;;  %v6361_v36 = vcombine.low %v6201_v54, %v6202_v2 }
 0x555   :  { %v6217_v21 = vmul.f32 %v6209_v3, %v6209_v3  ;;  %v6216_v41 = vmul.f32 %v6208_v22, %v6208_v22  ;;  %v6382_v8 = vrot.slane %v6360_v35, %v8728_v19 }
 0x556   :  { %v6243_v13 = vrot.slane %v6215_v28, 4  ;;  %v6218_v5 = vmul.f32 %v6210_v31, %v6210_v31  ;;  %v6389_v23 = vrot.slane %v6361_v36, %v8728_v19 }
 0x557   :  { %v6255_v27 = vrot.slane %v6217_v21, 4  ;;  %v6249_v33 = vrot.slane %v6216_v41, 4 }
 0x558   :  { %v6244_v38 = vadd.f32 %v6243_v13, %v6215_v28  ;;  %v6261_v42 = vrot.slane %v6218_v5, 4  ;;  %v6391_v25 = vcombine.low %v6382_v8, %v6389_v23 }
 0x559   :  { %v6256_v45 = vadd.f32 %v6255_v27, %v6217_v21  ;;  %v6250_v51 = vadd.f32 %v6249_v33, %v6216_v41  ;;  %v6339_v27 = vrot.slane %v6331_v1, %v8728_v19 }
 0x55a   :  { %v6245_v30 = vrot.slane %v6244_v38, 2  ;;  %v6262_v18 = vadd.f32 %v6261_v42, %v6218_v5  ;;  %v6405_v53 = vrot.slane %v6391_v25, %v8728_v19 }
 0x55b   :  { %v6257_v55 = vrot.slane %v6256_v45, 2  ;;  %v6251_v17 = vrot.slane %v6250_v51, 2 }
 0x55c   :  { %v6246_v20 = vadd.f32 %v6245_v30, %v6244_v38  ;;  %v6263_v34 = vrot.slane %v6262_v18, 2  ;;  %v6406_v15 = vcombine.low %v6398_v52, %v6405_v53  ;;  %v6145_v38 = vld [vmem:[#allocation11] sm:$0xff] }
 0x55d   :  { %v6258_v24 = vadd.f32 %v6257_v55, %v6256_v45  ;;  %v6252_v26 = vadd.f32 %v6251_v17, %v6250_v51  ;;  %v6146_v45 = vld [vmem:[#allocation13] sm:$0xff] }
 0x55e   :  { %v6247_v29 = vrot.slane %v6246_v20, 1  ;;  %v6264_v56 = vadd.f32 %v6263_v34, %v6262_v18 }
 0x55f   :  { %v6259_v32 = vrot.slane %v6258_v24, 1  ;;  %v6253_v59 = vrot.slane %v6252_v26, 1 }
 0x560   :  { %v6248_v58 = vadd.f32 %v6247_v29, %v6246_v20  ;;  %v6265_v60 = vrot.slane %v6264_v56, 1 }
 0x561   :  { %v6260_v61 = vadd.f32 %v6259_v32, %v6258_v24  ;;  %v6254_v62 = vadd.f32 %v6253_v59, %v6252_v26 }
 0x562   :  { %v6271_v43 = vmul.f32 0.125, %v6248_v58  ;;  %v6266_v4 = vadd.f32 %v6265_v60, %v6264_v56 }
 0x563   :  { %v6273_v54 = vmul.f32 0.125, %v6260_v61  ;;  %v6272_v63 = vmul.f32 0.125, %v6254_v62 }
 0x564   :  { %v6279_v0 = vadd.f32 1e-05, %v6271_v43  ;;  %v6274_v2 = vmul.f32 0.125, %v6266_v4 }
 0x565   :  { %v6281_v3 = vadd.f32 1e-05, %v6273_v54  ;;  %v6280_v22 = vadd.f32 1e-05, %v6272_v63 }
 0x566   :  { %8309 = vrsqrt.f32 %v6279_v0  ;;  %v6282_v35 = vadd.f32 1e-05, %v6274_v2  ;;  %v8255_v2 = vld [vmem:[%s9240_s7 + $0x100] sm:$0xff]  }
 0x567   :  { %8311 = vrsqrt.f32 %v6281_v3 }
 0x568   :  { %8313 = vrsqrt.f32 %v6280_v22  ;;  %v8258_v22 = vld [vmem:[%s9240_s7 + $0x1c8] sm:$0xff]  }
 0x569   :  { %8315 = vrsqrt.f32 %v6282_v35 }
 0x570   :  { %v8310_v28 = vpop.eup %8309 }
 0x571   :  { %v8312_v31 = vpop.eup %8311 }
 0x572   :  { %v8314_v36 = vpop.eup %8313 }
 0x573   :  { %v8316_v21 = vpop.eup %8315  ;;  %v6301_v41 = vcombine.low %v8310_v28, %v8314_v36  ;;  %v8260_v36 = vld [vmem:[%s9240_s7 + $0x188] sm:$0xff]  }
 0x574   :  { %v6302_v8 = vcombine.low %v8312_v31, %v8316_v21  ;;  %v8259_v31 = vld [vmem:[%s9240_s7 + $0x108] sm:$0xff]   ;;  %v8261_v21 = vld [vmem:[%s9240_s7 + $0x150] sm:$0xff]  }
 0x575   :  { %v6323_v13 = vrot.slane %v6301_v41, %v8728_v19  ;;  %v8262_v41 = vld [vmem:[%s9240_s7 + $0x1d0] sm:$0xff]  }
 0x576   :  { %v6330_v5 = vrot.slane %v6302_v8, %v8728_v19  ;;  %v8263_v8 = vld [vmem:[%s9240_s7 + $0x110] sm:$0xff]  }
 0x578   :  { %v6332_v23 = vcombine.low %v6323_v13, %v6330_v5  ;;  %v8264_v13 = vld [vmem:[%s9240_s7 + $0x190] sm:$0xff]   ;;  %v8265_v5 = vld [vmem:[%s9240_s7 + $0x158] sm:$0xff]  }
 0x57a   :  { %v6346_v33 = vrot.slane %v6332_v23, %v8728_v19  ;;  %v8266_v23 = vld [vmem:[%s9240_s7 + $0x1d8] sm:$0xff]  }
 0x57c   :  { %v6347_v42 = vcombine.low %v6339_v27, %v6346_v33  ;;  %v8267_v27 = vld [vmem:[%s9240_s7 + $0x118] sm:$0xff]  }
 0x57d   :  { %v8268_v33 = vld [vmem:[%s9240_s7 + $0x198] sm:$0xff]  }
 0x57e   :  { %v6349_v25 = vmul.f32 %v6347_v42, %v6145_v38  ;;  %v8269_v38 = vld [vmem:[%s9240_s7 + $0x160] sm:$0xff]  }
 0x57f   :  { %v8270_v42 = vld [vmem:[%s9240_s7 + $0x1e0] sm:$0xff]  }
 0x580   :  { %v6408_v51 = vmul.f32 %v6406_v15, %v6349_v25  ;;  %v6442_v52 = vrot.slane %v6349_v25, %v8801_v44  ;;  %v6418_v30 = vrot.slane %v6349_v25, %v8804_v46  ;;  %v6426_v18 = vrot.slane %v6349_v25, %v8810_v49 }
 0x581   :  { %v6414_v53 = vrot.slane %v6349_v25, %v8807_v47  ;;  %v6422_v55 = vrot.slane %v6349_v25, %v8813_v50  ;;  %v6434_v39 = vrot.slane %v6349_v25, %v8816_v37  ;;  %v6430_v40 = vrot.slane %v6349_v25, %v8860_v6 }
 0x582   :  { %v6409_v19 = vsub.f32 %v6146_v45, %v6408_v51  ;;  %v6458_v1 = vmul.f32 %v6442_v52, %v9085_v16  ;;  %v6452_v17 = vmul.f32 %v6418_v30, %v8941_v11  ;;  %v6454_v20 = vmul.f32 %v6426_v18, %v8945_v9  ;;  %v8272_v45 = vld [vmem:[%s9240_s7 + $0x1a0] sm:$0xff]   ;;  %v8273_v51 = vld [vmem:[%s9240_s7 + $0x168] sm:$0xff]  }
 0x583   :  { %v6451_v34 = vmul.f32 %v6414_v53, %v8936_v48  ;;  %v6453_v15 = vmul.f32 %v6422_v55, %v8939_v57  ;;  %v6456_v24 = vmul.f32 %v6434_v39, %v9081_v7  ;;  %v6455_v26 = vmul.f32 %v6430_v40, %v9076_v14  ;;  %v8274_v52 = vld [vmem:[%s9240_s7 + $0x1e8] sm:$0xff]   ;;  %v8277_v53 = vld [vmem:[%s9240_s7 + $0x170] sm:$0xff]  }
 0x584   :  { %v6467_v29 = vrot.slane %v6409_v19, %v8804_v46  ;;  %v6475_v56 = vrot.slane %v6409_v19, %v8810_v49  ;;  %v6463_v32 = vrot.slane %v6409_v19, %v8807_v47  ;;  %v6471_v16 = vrot.slane %v6409_v19, %v8813_v50  ;;  %v8275_v30 = vld [vmem:[%s9240_s7 + $0x128] sm:$0xff]   ;;  %v8278_v55 = vld [vmem:[%s9240_s7 + $0x1f0] sm:$0xff]  }
 0x585   :  { %v6483_v11 = vrot.slane %v6409_v19, %v8816_v37  ;;  %v6491_v9 = vrot.slane %v6409_v19, %v8801_v44  ;;  %v6479_v48 = vrot.slane %v6409_v19, %v8860_v6  ;;  %v6438_v57 = vrot.slane %v6349_v25, %v8863_v12  ;;  %v8271_v25 = vld [vmem:[%s9240_s7 + $0x120] sm:$0xff]   ;;  %v8276_v18 = vld [vmem:[%s9240_s7 + $0x1a8] sm:$0xff]   ;;  %v8279_v39 = vld [vmem:[%s9240_s7 + $0x130] sm:$0xff]  }
 0x586   :  { %v6501_v59 = vadd.f32 %v6467_v29, %v6452_v17  ;;  %v6503_v7 = vadd.f32 %v6475_v56, %v6454_v20  ;;  %v6500_v58 = vadd.f32 %v6463_v32, %v6451_v34  ;;  %v6502_v14 = vadd.f32 %v6471_v16, %v6453_v15  ;;  %v8280_v40 = vld [vmem:[%s9240_s7 + $0x1b0] sm:$0xff]   ;;  %v8283_v17 = vld [vmem:[%s9240_s7 + $0x138] sm:$0xff]  }
 0x587   :  { %v6505_v60 = vadd.f32 %v6483_v11, %v6456_v24  ;;  %v6507_v46 = vadd.f32 %v6491_v9, %v6458_v1  ;;  %v9132_v61 = vadd.f32 %v6479_v48, %v6455_v26  ;;  %v6457_v47 = vmul.f32 %v6438_v57, %v9079_v10  ;;  %v8256_v10 = vld [vmem:[%s9240_s7 + $0x180] sm:$0xff]   ;;  %v8282_v1 = vld [vmem:[%s9240_s7 + $0x1f8] sm:$0xff]   ;;  %v7988_v32 = vld [vmem:[#allocation14] ss:$0 sm:$0xff] }
 0x588   :  { %v6509_v49 = vmax.f32 %v6501_v59, 0.0  ;;  %v6511_v50 = vmax.f32 %v6503_v7, 0.0  ;;  %v6508_v62 = vmax.f32 %v6500_v58, 0.0  ;;  %v6510_v37 = vmax.f32 %v6502_v14, 0.0  ;;  %v8284_v20 = vld [vmem:[%s9240_s7 + $0x1b8] sm:$0xff]  }
 0x589   :  { %v6513_v43 = vmax.f32 %v6505_v60, 0.0  ;;  %v6515_v44 = vmax.f32 %v6507_v46, 0.0  ;;  %v6487_v6 = vrot.slane %v6409_v19, %v8863_v12  ;;  %v8257_v12 = vld [vmem:[%s9240_s7 + $0x148] sm:$0xff]   ;;  %v8281_v19 = vld [vmem:[%s9240_s7 + $0x178] sm:$0xff]   ;;  %v6512_v34 = vmax.f32 %v9132_v61, 0.0 }
 0x58a   :  { %v6517_v4 = vpack.c.bf16 %v6509_v49, %v6509_v49  ;;  %v6519_v54 = vpack.c.bf16 %v6511_v50, %v6511_v50  ;;  %v6516_v63 = vpack.c.bf16 %v6508_v62, %v6508_v62  ;;  %v6518_v0 = vpack.c.bf16 %v6510_v37, %v6510_v37 }
 0x58b   :  { %v9142_v3 = vadd.f32 %v6487_v6, %v6457_v47  ;;  %v6521_v35 = vpack.c.bf16 %v6513_v43, %v6513_v43  ;;  %v6523_v28 = vpack.c.bf16 %v6515_v44, %v6515_v44  ;;  %v6520_v24 = vpack.c.bf16 %v6512_v34, %v6512_v34 }
 0x58c   :  { %7075 = vmatprep.mubr.bf16.mxu0 %v6517_v4  ;;  %7115 = vmatprep.mubr.bf16.mxu1 %v6519_v54 }
 0x58d   :  { %7076 = vmatmul.mubr.bf16.vlgmr.msra.gmra.mrb[16].mxu0 %v6516_v63  ;;  %7116 = vmatmul.mubr.bf16.vlgmr.msra.gmra.mrb[16].mxu1 %v6518_v0  ;;  %v6514_v15 = vmax.f32 %v9142_v3, 0.0 }
 0x58e   :  { %8100 = vmatpush3.bf16.msra.mxu0 %v8255_v2  ;;  %8122 = vmatpush3.bf16.msra.mxu1 %v8256_v10 }
 0x58f   :  { %7155 = vmatprep.mubr.bf16.mxu0 %v6521_v35  ;;  %7195 = vmatprep.mubr.bf16.mxu1 %v6523_v28  ;;  %v6522_v26 = vpack.c.bf16 %v6514_v15, %v6514_v15 }
 0x590   :  { %8101 = vmatprep.subr.bf16.mxu0 %v8257_v12  ;;  %8123 = vmatprep.subr.bf16.mxu1 %v8258_v22 }
 0x592   :  { %8102 = vmatpush3.bf16.msra.mxu0 %v8259_v31  ;;  %8124 = vmatpush3.bf16.msra.mxu1 %v8260_v36 }
 0x593   :  { %8103 = vmatprep.subr.bf16.mxu0 %v8261_v21  ;;  %8125 = vmatprep.subr.bf16.mxu1 %v8262_v41 }
 0x596   :  { %8104 = vmatpush3.bf16.msra.mxu0 %v8263_v8  ;;  %8126 = vmatpush3.bf16.msra.mxu1 %v8264_v13 }
 0x597   :  { %8105 = vmatprep.subr.bf16.mxu0 %v8265_v5  ;;  %8127 = vmatprep.subr.bf16.mxu1 %v8266_v23 }
 0x59a   :  { %8106 = vmatpush3.bf16.msra.mxu0 %v8267_v27  ;;  %8128 = vmatpush3.bf16.msra.mxu1 %v8268_v33 }
 0x59b   :  { %8107 = vmatprep.subr.bf16.mxu0 %v8269_v38  ;;  %8129 = vmatprep.subr.bf16.mxu1 %v8270_v42 }
 0x59e   :  { %8108 = vmatpush3.bf16.msra.mxu0 %v8271_v25  ;;  %8130 = vmatpush3.bf16.msra.mxu1 %v8272_v45 }
 0x59f   :  { %8109 = vmatprep.subr.bf16.mxu0 %v8273_v51  ;;  %8131 = vmatprep.subr.bf16.mxu1 %v8274_v52 }
 0x5a2   :  { %8110 = vmatpush3.bf16.msra.mxu0 %v8275_v30  ;;  %8132 = vmatpush3.bf16.msra.mxu1 %v8276_v18 }
 0x5a3   :  { %8111 = vmatprep.subr.bf16.mxu0 %v8277_v53  ;;  %8133 = vmatprep.subr.bf16.mxu1 %v8278_v55 }
 0x5a6   :  { %8112 = vmatpush3.bf16.msra.mxu0 %v8279_v39  ;;  %8134 = vmatpush3.bf16.msra.mxu1 %v8280_v40 }
 0x5a7   :  { %8113 = vmatprep.subr.bf16.mxu0 %v8281_v19  ;;  %8135 = vmatprep.subr.bf16.mxu1 %v8282_v1 }
 0x5aa   :  { %8114 = vmatpush3.bf16.msra.mxu0 %v8283_v17  ;;  %8136 = vmatpush3.bf16.msra.mxu1 %v8284_v20 }
 0x5ad   :  { %7156 = vmatmul.mubr.bf16.vlgmr.msra.gmra.mrb[20].mxu0 %v6520_v24  ;;  %7196 = vmatmul.mubr.bf16.vlgmr.msra.gmra.mrb[20].mxu1 %v6522_v26 }
 0x660   :  { %v8071_v29 = vpop.f32.mrb[16].mxu0  ;;  %v8093_v56 = vpop.f32.mrb[16].mxu1 }
 0x661   :  { %v8072_v16 = vpop.f32.mrb[17].mxu0  ;;  %v8094_v11 = vpop.f32.mrb[17].mxu1 }
 0x662   :  { %v8073_v9 = vadd.f32 %v8072_v16, %v8071_v29  ;;  %v8095_v48 = vadd.f32 %v8094_v11, %v8093_v56  ;;  %v8074_v57 = vpop.f32.mrb[18].mxu0  ;;  %v8096_v59 = vpop.f32.mrb[18].mxu1 }
 0x663   :  { %v8075_v7 = vpop.f32.mrb[19].mxu0  ;;  %v8097_v58 = vpop.f32.mrb[19].mxu1 }
 0x664   :  { %v7078_v14 = vadd.f32 %v8073_v9, %v7988_v32 }
 0x666   :  { %v7118_v60 = vadd.f32 %v8095_v48, %v7078_v14 }
 0x680   :  { %v8115_v46 = vpop.f32.mrb[20].mxu0  ;;  %v8137_v61 = vpop.f32.mrb[20].mxu1 }
 0x681   :  { %v8116_v47 = vpop.f32.mrb[21].mxu0  ;;  %v8138_v49 = vpop.f32.mrb[21].mxu1 }
 0x682   :  { %v8117_v50 = vadd.f32 %v8116_v47, %v8115_v46  ;;  %v8139_v62 = vadd.f32 %v8138_v49, %v8137_v61  ;;  %v8118_v37 = vpop.f32.mrb[22].mxu0  ;;  %v8140_v43 = vpop.f32.mrb[22].mxu1 }
 0x683   :  { %v8119_v44 = vpop.f32.mrb[23].mxu0  ;;  %v8141_v6 = vpop.f32.mrb[23].mxu1 }
 0x684   :  { %v7158_v4 = vadd.f32 %v8117_v50, %v7118_v60 }
 0x686   :  { %v7198_v54 = vadd.f32 %v8139_v62, %v7158_v4 }
 0x688   :  { %7204 = vst.msk [vmem:[%s9242_s9] sm:$0xff] %vm7203_vm3, %v7198_v54 }
 0x689   :  { %7209 = vsyncpa [#allocation4], 1 }
 0x68a   :  { %7210 = vsyncpa [#allocation6], 1 }
 0x68b   :  { %7211 = vsyncpa [#allocation9], 1 }
 0x68c   :  { %7212 = vsyncpa [#allocation12], 1 }
 0x68d   :  { %7213 = vsyncpa [#allocation15], 1 }

</bundles_post_ra>
